<compile_context>
chip_gen: v6e
topology: v6e:2x2x1
jax: 0.10.0
libtpu: 0.0.40
codegen_flags: <defaults>
</compile_context>

<pallas_src>
import math
import functools
import numpy as np
import jax
import jax.numpy as jnp
from jax.experimental import pallas as pl
from jax.experimental.pallas import tpu as pltpu


# ------------------------------ fused kernel ------------------------------

def _ln(x, g, b, eps):
    mean = jnp.mean(x, axis=-1, keepdims=True)
    xc = x - mean
    var = jnp.mean(xc * xc, axis=-1, keepdims=True)
    return xc * jax.lax.rsqrt(var + eps) * g + b


def _fused_trans_kernel(src_ref, pe_ref, amask_ref,
                        wq_ref, bq_ref, wk_ref, bk_ref, wv_ref, bv_ref,
                        wo_ref, bo_ref,
                        ln1g_ref, ln1b_ref, w1_ref, b1_ref, w2_ref, b2_ref,
                        ln2g_ref, ln2b_ref,
                        a_ref, wg1_ref, bg1_ref, wg2_ref, bg2_ref,
                        wd_ref, bd_ref,
                        o_ref, *, n_head, num_layers, d_model, eps, ffn_dtype):
    D = d_model
    hd = D // n_head
    scale = 1.0 / math.sqrt(hd)

    # Positional encoding (pe_ref already tiled over the batch block).
    x = src_ref[...] + pe_ref[...]                               # (R, D) f32
    amask = amask_ref[...]                                       # (R, R), 0 / -1e30

    # ---------------- Transformer encoder layers (static unroll) ----------
    for l in range(num_layers):
        # separate (lane-aligned) Q/K/V projections over all flattened rows
        q = jnp.dot(x, wq_ref[l], preferred_element_type=jnp.float32) + bq_ref[l]
        k = jnp.dot(x, wk_ref[l], preferred_element_type=jnp.float32) + bk_ref[l]
        v = jnp.dot(x, wv_ref[l], preferred_element_type=jnp.float32) + bv_ref[l]
        wo_l = wo_ref[l]                                         # (D, D)

        # per-head attention over the whole row block, Wo folded in (no concat)
        ao = jnp.zeros_like(x)
        for h in range(n_head):
            lo = h * hd
            qh = q[:, lo:lo + hd]
            kh = k[:, lo:lo + hd]
            vh = v[:, lo:lo + hd]
            s = jnp.dot(qh, kh.T, preferred_element_type=jnp.float32) * scale
            s = s + amask                                        # block-diag over batch
            m = jnp.max(s, axis=-1, keepdims=True)
            p = jnp.exp(s - m)                                   # un-normalized probs
            denom = jnp.sum(p, axis=-1, keepdims=True)
            oh = jnp.dot(p, vh, preferred_element_type=jnp.float32)
            oh = oh * pl.reciprocal(denom, approx=True)          # deferred softmax norm
            ao = ao + jnp.dot(oh, wo_l[lo:lo + hd, :],
                              preferred_element_type=jnp.float32)

        # post-norm residual 1 (out-proj bias added once)
        x = _ln(x + ao + bo_ref[l], ln1g_ref[l], ln1b_ref[l], eps)

        # FFN: bf16 matmul operands, f32 accumulation; (R, 2048) stays in VMEM.
        # TODO(synk): chunk along the 2048 axis if Bt*S grows large (v7x 64MiB VMEM).
        ff = jnp.dot(x.astype(ffn_dtype), w1_ref[l],
                     preferred_element_type=jnp.float32) + b1_ref[l]
        ff = jnp.maximum(ff, 0.0)
        ff = jnp.dot(ff.astype(ffn_dtype), w2_ref[l],
                     preferred_element_type=jnp.float32) + b2_ref[l]

        # post-norm residual 2
        x = _ln(x + ff, ln2g_ref[l], ln2b_ref[l], eps)

    # ---------------- fused GCN stack + decoder ---------------------------
    a = a_ref[...]                                               # (R, R) block-diag A_norm
    h = jnp.maximum(x, 0.0)                                      # relu(drop(memory))
    h = jnp.dot(a, jnp.dot(h, wg1_ref[...],
                           preferred_element_type=jnp.float32),
                preferred_element_type=jnp.float32) + bg1_ref[...]
    h = jnp.maximum(h, 0.0)                                      # relu(drop(gnn1))
    h = jnp.dot(a, jnp.dot(h, wg2_ref[...],
                           preferred_element_type=jnp.float32),
                preferred_element_type=jnp.float32) + bg2_ref[...]
    h = jnp.maximum(h, 0.0)                                      # relu(drop(gnn2))

    # decoder: weight padded to 128 lanes -> lane-dense (unmasked) store
    o_ref[...] = jnp.dot(h, wd_ref[...],
                         preferred_element_type=jnp.float32) + bd_ref[...]


# ----------------------------- glue / params ------------------------------

def make_positional_encoding(length_max, d_model):
    pe = np.zeros((length_max, d_model), dtype=np.float32)
    position = np.arange(0, length_max, dtype=np.float32)[:, None]
    div_term = np.exp(np.arange(0, d_model, 2, dtype=np.float32)
                      * -(math.log(10000.0) / d_model))
    pe[:, 0::2] = np.sin(position * div_term)
    pe[:, 1::2] = np.cos(position * div_term)
    return jnp.asarray(pe)


def make_gcn_adjacency(num_nodes, k):
    # adm_style == 'ts_un': node i <-> nodes within distance k; then GCN norm.
    A = np.zeros((num_nodes, num_nodes), dtype=np.float32)
    for i in range(num_nodes):
        left = max(0, i - k)
        right = min(num_nodes - 1, i + k)
        for j in range(left, right + 1):
            if j != i:
                A[i, j] = 1.0
    A_hat = A + np.eye(num_nodes, dtype=np.float32)       # add self loops
    deg = A_hat.sum(axis=1)
    d_inv_sqrt = 1.0 / np.sqrt(deg)
    return d_inv_sqrt[:, None] * A_hat * d_inv_sqrt[None, :]   # numpy (host)


def _dense_init(key, fan_in, shape):
    # TODO(synk): PyTorch uses xavier/kaiming defaults; exact parity needs real weights.
    return jax.random.normal(key, shape, jnp.float32) / math.sqrt(fan_in)


def init_params(key, d_model, n_head, num_layers, dim_ff, out_dim,
                gnn_hidden=32, out_pad=128, ffn_dtype=jnp.bfloat16):
    D, F, L, G = d_model, dim_ff, num_layers, gnn_hidden
    keys = iter(jax.random.split(key, 6 * L + 3))
    wq = jnp.stack([_dense_init(next(keys), D, (D, D)) for _ in range(L)])
    wk = jnp.stack([_dense_init(next(keys), D, (D, D)) for _ in range(L)])
    wv = jnp.stack([_dense_init(next(keys), D, (D, D)) for _ in range(L)])
    wo = jnp.stack([_dense_init(next(keys), D, (D, D)) for _ in range(L)])
    w1 = jnp.stack([_dense_init(next(keys), D, (D, F)) for _ in range(L)])
    w2 = jnp.stack([_dense_init(next(keys), F, (F, D)) for _ in range(L)])
    wg1 = _dense_init(next(keys), D, (D, G))
    wg2 = _dense_init(next(keys), G, (G, D))
    wd = _dense_init(next(keys), D, (D, out_dim))
    wd_pad = jnp.pad(wd, ((0, 0), (0, out_pad - out_dim)))
    return dict(
        wq=wq, bq=jnp.zeros((L, 1, D), jnp.float32),
        wk=wk, bk=jnp.zeros((L, 1, D), jnp.float32),
        wv=wv, bv=jnp.zeros((L, 1, D), jnp.float32),
        wo=wo, bo=jnp.zeros((L, 1, D), jnp.float32),
        ln1_g=jnp.ones((L, 1, D), jnp.float32),
        ln1_b=jnp.zeros((L, 1, D), jnp.float32),
        w1=w1.astype(ffn_dtype), b1=jnp.zeros((L, 1, F), jnp.float32),
        w2=w2.astype(ffn_dtype), b2=jnp.zeros((L, 1, D), jnp.float32),
        ln2_g=jnp.ones((L, 1, D), jnp.float32),
        ln2_b=jnp.zeros((L, 1, D), jnp.float32),
        wg1=wg1, bg1=jnp.zeros((1, G), jnp.float32),
        wg2=wg2, bg2=jnp.zeros((1, D), jnp.float32),
        wd_pad=wd_pad, bd_pad=jnp.zeros((1, out_pad), jnp.float32),
    )


# ----------------------------- forward pass --------------------------------

def trans_forward(src, params, pe, a_norm_np, n_head, out_dim, block_batch=None):
    B, S, D = src.shape
    L = params['wq'].shape[0]
    F = params['w1'].shape[-1]
    G = params['wg1'].shape[-1]
    OP = params['wd_pad'].shape[-1]                       # padded output lanes

    # Batch elements processed per grid step; whole batch in one block for the
    # tiny demo (grid=(1,)).  On v7x pick block_batch = B // 2 so both
    # TensorCores get a grid step.
    Bt = B if block_batch is None else block_batch
    assert B % Bt == 0
    R = Bt * S                                            # flattened matmul rows

    # Host-side constants for the flattened batch block.
    src_flat = src.reshape(B * S, D)
    pe_block = jnp.tile(pe[:S], (Bt, 1))                  # (R, D)
    same_seq = np.kron(np.eye(Bt, dtype=np.float32), np.ones((S, S), np.float32))
    amask = jnp.asarray((1.0 - same_seq) * -1e30)         # (R, R) additive attn mask
    a_block = jnp.asarray(np.kron(np.eye(Bt, dtype=np.float32),
                                  np.asarray(a_norm_np, np.float32)))   # (R, R)

    def const(shape):
        n = len(shape)
        return pl.BlockSpec(shape, lambda *args, _n=n: (0,) * _n)

    in_specs = [
        pl.BlockSpec((R, D), lambda b: (b, 0)),           # src (flattened batch block)
        const((R, D)),                                    # pe (tiled)
        const((R, R)),                                    # attention block-diag mask
        const((L, D, D)), const((L, 1, D)),               # wq, bq
        const((L, D, D)), const((L, 1, D)),               # wk, bk
        const((L, D, D)), const((L, 1, D)),               # wv, bv
        const((L, D, D)), const((L, 1, D)),               # wo, bo
        const((L, 1, D)), const((L, 1, D)),               # ln1 gamma, beta
        const((L, D, F)), const((L, 1, F)),               # w1 (bf16), b1
        const((L, F, D)), const((L, 1, D)),               # w2 (bf16), b2
        const((L, 1, D)), const((L, 1, D)),               # ln2 gamma, beta
        const((R, R)),                                    # block-diag A_norm
        const((D, G)), const((1, G)),                     # wg1, bg1
        const((G, D)), const((1, D)),                     # wg2, bg2
        const((D, OP)), const((1, OP)),                   # wd_pad, bd_pad
    ]
    out_spec = pl.BlockSpec((R, OP), lambda b: (b, 0))

    kernel = functools.partial(_fused_trans_kernel, n_head=n_head,
                               num_layers=L, d_model=D, eps=1e-5,
                               ffn_dtype=params['w1'].dtype)

    out = pl.pallas_call(
        kernel,
        out_shape=jax.ShapeDtypeStruct((B * S, OP), jnp.float32),
        grid=(B // Bt,),
        in_specs=in_specs,
        out_specs=out_spec,
        compiler_params=pltpu.CompilerParams(
            dimension_semantics=("parallel",)),
    )(src_flat, pe_block, amask,
      params['wq'], params['bq'], params['wk'], params['bk'],
      params['wv'], params['bv'], params['wo'], params['bo'],
      params['ln1_g'], params['ln1_b'], params['w1'], params['b1'],
      params['w2'], params['b2'], params['ln2_g'], params['ln2_b'],
      a_block,
      params['wg1'], params['bg1'], params['wg2'], params['bg2'],
      params['wd_pad'], params['bd_pad'])

    return out.reshape(B, S, OP)[:, :, :out_dim]          # drop lane padding


# --------------------------------- main -------------------------------------

if __name__ == "__main__":
    # hyperparameters (small, consistent with the module's constructor)
    B, S = 2, 8
    d_model, out_dim, n_head, num_layers = 32, 4, 4, 2
    length_max, k_graph = 64, 2
    dim_ff = 2048  # nn.TransformerEncoderLayer default dim_feedforward

    key = jax.random.PRNGKey(0)
    k_in, k_par = jax.random.split(key)

    src = jax.random.normal(k_in, (B, S, d_model), jnp.float32)
    params = init_params(k_par, d_model, n_head, num_layers, dim_ff, out_dim)
    pe = make_positional_encoding(length_max, d_model)
    a_norm = make_gcn_adjacency(S, k_graph)               # GCN graph over seq positions

    out = trans_forward(src, params, pe, a_norm, n_head, out_dim)
    out = jax.block_until_ready(out)
    assert out.shape == (B, S, out_dim)
    assert bool(jnp.all(jnp.isfinite(out)))
    print("KERNEL_OK")
</pallas_src>

<mosaic_0001>
module attributes {stable_mosaic.version = 11 : i64} {
  func.func @_fused_trans_kernel(%arg0: i32, %arg1: memref<16x32xf32, #tpu.memory_space<vmem>>, %arg2: memref<16x32xf32, #tpu.memory_space<vmem>>, %arg3: memref<16x16xf32, #tpu.memory_space<vmem>>, %arg4: memref<2x32x32xf32, #tpu.memory_space<vmem>>, %arg5: memref<2x1x32xf32, #tpu.memory_space<vmem>>, %arg6: memref<2x32x32xf32, #tpu.memory_space<vmem>>, %arg7: memref<2x1x32xf32, #tpu.memory_space<vmem>>, %arg8: memref<2x32x32xf32, #tpu.memory_space<vmem>>, %arg9: memref<2x1x32xf32, #tpu.memory_space<vmem>>, %arg10: memref<2x32x32xf32, #tpu.memory_space<vmem>>, %arg11: memref<2x1x32xf32, #tpu.memory_space<vmem>>, %arg12: memref<2x1x32xf32, #tpu.memory_space<vmem>>, %arg13: memref<2x1x32xf32, #tpu.memory_space<vmem>>, %arg14: memref<2x32x2048xbf16, #tpu.memory_space<vmem>>, %arg15: memref<2x1x2048xf32, #tpu.memory_space<vmem>>, %arg16: memref<2x2048x32xbf16, #tpu.memory_space<vmem>>, %arg17: memref<2x1x32xf32, #tpu.memory_space<vmem>>, %arg18: memref<2x1x32xf32, #tpu.memory_space<vmem>>, %arg19: memref<2x1x32xf32, #tpu.memory_space<vmem>>, %arg20: memref<16x16xf32, #tpu.memory_space<vmem>>, %arg21: memref<32x32xf32, #tpu.memory_space<vmem>>, %arg22: memref<1x32xf32, #tpu.memory_space<vmem>>, %arg23: memref<32x32xf32, #tpu.memory_space<vmem>>, %arg24: memref<1x32xf32, #tpu.memory_space<vmem>>, %arg25: memref<32x128xf32, #tpu.memory_space<vmem>>, %arg26: memref<1x128xf32, #tpu.memory_space<vmem>>, %arg27: memref<16x128xf32, #tpu.memory_space<vmem>>) attributes {dimension_semantics = [#tpu.dimension_semantics<parallel>], iteration_bounds = array<i64: 1>, scalar_prefetch = 0 : i64, scratch_operands = 0 : i64, tpu.core_type = #tpu.core_type<tc>, window_params = [{transform_indices = @transform_0, window_bounds = array<i64: 16, 32>}, {pipeline_mode = #tpu.pipeline_mode<synchronous>, transform_indices = @transform_1, window_bounds = array<i64: 16, 32>}, {pipeline_mode = #tpu.pipeline_mode<synchronous>, transform_indices = @transform_2, window_bounds = array<i64: 16, 16>}, {pipeline_mode = #tpu.pipeline_mode<synchronous>, transform_indices = @transform_3, window_bounds = array<i64: 2, 32, 32>}, {pipeline_mode = #tpu.pipeline_mode<synchronous>, transform_indices = @transform_4, window_bounds = array<i64: 2, 1, 32>}, {pipeline_mode = #tpu.pipeline_mode<synchronous>, transform_indices = @transform_5, window_bounds = array<i64: 2, 32, 32>}, {pipeline_mode = #tpu.pipeline_mode<synchronous>, transform_indices = @transform_6, window_bounds = array<i64: 2, 1, 32>}, {pipeline_mode = #tpu.pipeline_mode<synchronous>, transform_indices = @transform_7, window_bounds = array<i64: 2, 32, 32>}, {pipeline_mode = #tpu.pipeline_mode<synchronous>, transform_indices = @transform_8, window_bounds = array<i64: 2, 1, 32>}, {pipeline_mode = #tpu.pipeline_mode<synchronous>, transform_indices = @transform_9, window_bounds = array<i64: 2, 32, 32>}, {pipeline_mode = #tpu.pipeline_mode<synchronous>, transform_indices = @transform_10, window_bounds = array<i64: 2, 1, 32>}, {pipeline_mode = #tpu.pipeline_mode<synchronous>, transform_indices = @transform_11, window_bounds = array<i64: 2, 1, 32>}, {pipeline_mode = #tpu.pipeline_mode<synchronous>, transform_indices = @transform_12, window_bounds = array<i64: 2, 1, 32>}, {pipeline_mode = #tpu.pipeline_mode<synchronous>, transform_indices = @transform_13, window_bounds = array<i64: 2, 32, 2048>}, {pipeline_mode = #tpu.pipeline_mode<synchronous>, transform_indices = @transform_14, window_bounds = array<i64: 2, 1, 2048>}, {pipeline_mode = #tpu.pipeline_mode<synchronous>, transform_indices = @transform_15, window_bounds = array<i64: 2, 2048, 32>}, {pipeline_mode = #tpu.pipeline_mode<synchronous>, transform_indices = @transform_16, window_bounds = array<i64: 2, 1, 32>}, {pipeline_mode = #tpu.pipeline_mode<synchronous>, transform_indices = @transform_17, window_bounds = array<i64: 2, 1, 32>}, {pipeline_mode = #tpu.pipeline_mode<synchronous>, transform_indices = @transform_18, window_bounds = array<i64: 2, 1, 32>}, {pipeline_mode = #tpu.pipeline_mode<synchronous>, transform_indices = @transform_19, window_bounds = array<i64: 16, 16>}, {pipeline_mode = #tpu.pipeline_mode<synchronous>, transform_indices = @transform_20, window_bounds = array<i64: 32, 32>}, {pipeline_mode = #tpu.pipeline_mode<synchronous>, transform_indices = @transform_21, window_bounds = array<i64: 1, 32>}, {pipeline_mode = #tpu.pipeline_mode<synchronous>, transform_indices = @transform_22, window_bounds = array<i64: 32, 32>}, {pipeline_mode = #tpu.pipeline_mode<synchronous>, transform_indices = @transform_23, window_bounds = array<i64: 1, 32>}, {pipeline_mode = #tpu.pipeline_mode<synchronous>, transform_indices = @transform_24, window_bounds = array<i64: 32, 128>}, {pipeline_mode = #tpu.pipeline_mode<synchronous>, transform_indices = @transform_25, window_bounds = array<i64: 1, 128>}, {transform_indices = @transform_26, window_bounds = array<i64: 16, 128>}]} {
    %c0 = arith.constant 0 : index
    %c0_0 = arith.constant 0 : index
    %0 = vector.load %arg1[%c0, %c0_0] : memref<16x32xf32, #tpu.memory_space<vmem>>, vector<16x32xf32>
    %c0_1 = arith.constant 0 : index
    %c0_2 = arith.constant 0 : index
    %1 = vector.load %arg2[%c0_1, %c0_2] : memref<16x32xf32, #tpu.memory_space<vmem>>, vector<16x32xf32>
    %2 = arith.addf %0, %1 : vector<16x32xf32>
    %c0_3 = arith.constant 0 : index
    %c0_4 = arith.constant 0 : index
    %3 = vector.load %arg3[%c0_3, %c0_4] : memref<16x16xf32, #tpu.memory_space<vmem>>, vector<16x16xf32>
    %c0_5 = arith.constant 0 : index
    %c0_6 = arith.constant 0 : index
    %c0_7 = arith.constant 0 : index
    %4 = vector.load %arg4[%c0_5, %c0_6, %c0_7] : memref<2x32x32xf32, #tpu.memory_space<vmem>>, vector<1x32x32xf32>
    %5 = vector.shape_cast %4 : vector<1x32x32xf32> to vector<32x32xf32>
    %cst = arith.constant dense<0.000000e+00> : vector<16x32xf32>
    %6 = tpu.matmul %2, %5, %cst {dimension_numbers = #tpu.dot_dimension_numbers<[1], [0], [0], [1], [0, 0, 1, 1], [], []>} : vector<16x32xf32>, vector<32x32xf32>, vector<16x32xf32> -> vector<16x32xf32>
    %c0_8 = arith.constant 0 : index
    %c0_9 = arith.constant 0 : index
    %c0_10 = arith.constant 0 : index
    %7 = vector.load %arg5[%c0_8, %c0_9, %c0_10] : memref<2x1x32xf32, #tpu.memory_space<vmem>>, vector<1x1x32xf32>
    %8 = vector.shape_cast %7 : vector<1x1x32xf32> to vector<1x32xf32>
    %9 = vector.broadcast %8 : vector<1x32xf32> to vector<16x32xf32>
    %10 = arith.addf %6, %9 : vector<16x32xf32>
    %c0_11 = arith.constant 0 : index
    %c0_12 = arith.constant 0 : index
    %c0_13 = arith.constant 0 : index
    %11 = vector.load %arg6[%c0_11, %c0_12, %c0_13] : memref<2x32x32xf32, #tpu.memory_space<vmem>>, vector<1x32x32xf32>
    %12 = vector.shape_cast %11 : vector<1x32x32xf32> to vector<32x32xf32>
    %cst_14 = arith.constant dense<0.000000e+00> : vector<16x32xf32>
    %13 = tpu.matmul %2, %12, %cst_14 {dimension_numbers = #tpu.dot_dimension_numbers<[1], [0], [0], [1], [0, 0, 1, 1], [], []>} : vector<16x32xf32>, vector<32x32xf32>, vector<16x32xf32> -> vector<16x32xf32>
    %c0_15 = arith.constant 0 : index
    %c0_16 = arith.constant 0 : index
    %c0_17 = arith.constant 0 : index
    %14 = vector.load %arg7[%c0_15, %c0_16, %c0_17] : memref<2x1x32xf32, #tpu.memory_space<vmem>>, vector<1x1x32xf32>
    %15 = vector.shape_cast %14 : vector<1x1x32xf32> to vector<1x32xf32>
    %16 = vector.broadcast %15 : vector<1x32xf32> to vector<16x32xf32>
    %17 = arith.addf %13, %16 : vector<16x32xf32>
    %c0_18 = arith.constant 0 : index
    %c0_19 = arith.constant 0 : index
    %c0_20 = arith.constant 0 : index
    %18 = vector.load %arg8[%c0_18, %c0_19, %c0_20] : memref<2x32x32xf32, #tpu.memory_space<vmem>>, vector<1x32x32xf32>
    %19 = vector.shape_cast %18 : vector<1x32x32xf32> to vector<32x32xf32>
    %cst_21 = arith.constant dense<0.000000e+00> : vector<16x32xf32>
    %20 = tpu.matmul %2, %19, %cst_21 {dimension_numbers = #tpu.dot_dimension_numbers<[1], [0], [0], [1], [0, 0, 1, 1], [], []>} : vector<16x32xf32>, vector<32x32xf32>, vector<16x32xf32> -> vector<16x32xf32>
    %c0_22 = arith.constant 0 : index
    %c0_23 = arith.constant 0 : index
    %c0_24 = arith.constant 0 : index
    %21 = vector.load %arg9[%c0_22, %c0_23, %c0_24] : memref<2x1x32xf32, #tpu.memory_space<vmem>>, vector<1x1x32xf32>
    %22 = vector.shape_cast %21 : vector<1x1x32xf32> to vector<1x32xf32>
    %23 = vector.broadcast %22 : vector<1x32xf32> to vector<16x32xf32>
    %24 = arith.addf %20, %23 : vector<16x32xf32>
    %c0_25 = arith.constant 0 : index
    %c0_26 = arith.constant 0 : index
    %c0_27 = arith.constant 0 : index
    %25 = vector.load %arg10[%c0_25, %c0_26, %c0_27] : memref<2x32x32xf32, #tpu.memory_space<vmem>>, vector<1x32x32xf32>
    %26 = vector.shape_cast %25 : vector<1x32x32xf32> to vector<32x32xf32>
    %cst_28 = arith.constant 0.000000e+00 : f32
    %27 = vector.broadcast %cst_28 : f32 to vector<16x32xf32>
    %28 = vector.extract_strided_slice %10 {offsets = [0, 0], sizes = [16, 8], strides = [1, 1]} : vector<16x32xf32> to vector<16x8xf32>
    %29 = vector.extract_strided_slice %17 {offsets = [0, 0], sizes = [16, 8], strides = [1, 1]} : vector<16x32xf32> to vector<16x8xf32>
    %30 = vector.extract_strided_slice %24 {offsets = [0, 0], sizes = [16, 8], strides = [1, 1]} : vector<16x32xf32> to vector<16x8xf32>
    %31 = tpu.transpose %29, [1, 0] : vector<16x8xf32> -> vector<8x16xf32>
    %cst_29 = arith.constant dense<0.000000e+00> : vector<16x16xf32>
    %32 = tpu.matmul %28, %31, %cst_29 {dimension_numbers = #tpu.dot_dimension_numbers<[1], [0], [0], [1], [0, 0, 1, 1], [], []>} : vector<16x8xf32>, vector<8x16xf32>, vector<16x16xf32> -> vector<16x16xf32>
    %cst_30 = arith.constant 0.353553385 : f32
    %33 = vector.broadcast %cst_30 : f32 to vector<16x16xf32>
    %34 = arith.mulf %32, %33 : vector<16x16xf32>
    %35 = arith.addf %34, %3 : vector<16x16xf32>
    %cst_31 = arith.constant dense<0xFF800000> : vector<16xf32>
    %36 = vector.multi_reduction <maximumf>, %35, %cst_31 [1] : vector<16x16xf32> to vector<16xf32>
    %37 = vector.shape_cast %36 : vector<16xf32> to vector<16x1xf32>
    %38 = vector.broadcast %37 : vector<16x1xf32> to vector<16x16xf32>
    %39 = arith.subf %35, %38 : vector<16x16xf32>
    %40 = math.exp %39 : vector<16x16xf32>
    %cst_32 = arith.constant dense<0.000000e+00> : vector<16xf32>
    %41 = vector.multi_reduction <add>, %40, %cst_32 [1] : vector<16x16xf32> to vector<16xf32>
    %42 = vector.shape_cast %41 : vector<16xf32> to vector<16x1xf32>
    %cst_33 = arith.constant dense<0.000000e+00> : vector<16x8xf32>
    %43 = tpu.matmul %40, %30, %cst_33 {dimension_numbers = #tpu.dot_dimension_numbers<[1], [0], [0], [1], [0, 0, 1, 1], [], []>} : vector<16x16xf32>, vector<16x8xf32>, vector<16x8xf32> -> vector<16x8xf32>
    %44 = tpu.reciprocal %42 {approx = true} : vector<16x1xf32> -> vector<16x1xf32>
    %45 = vector.broadcast %44 : vector<16x1xf32> to vector<16x8xf32>
    %46 = arith.mulf %43, %45 : vector<16x8xf32>
    %47 = vector.extract_strided_slice %26 {offsets = [0, 0], sizes = [8, 32], strides = [1, 1]} : vector<32x32xf32> to vector<8x32xf32>
    %cst_34 = arith.constant dense<0.000000e+00> : vector<16x32xf32>
    %48 = tpu.matmul %46, %47, %cst_34 {dimension_numbers = #tpu.dot_dimension_numbers<[1], [0], [0], [1], [0, 0, 1, 1], [], []>} : vector<16x8xf32>, vector<8x32xf32>, vector<16x32xf32> -> vector<16x32xf32>
    %49 = arith.addf %27, %48 : vector<16x32xf32>
    %50 = vector.extract_strided_slice %10 {offsets = [0, 8], sizes = [16, 8], strides = [1, 1]} : vector<16x32xf32> to vector<16x8xf32>
    %51 = vector.extract_strided_slice %17 {offsets = [0, 8], sizes = [16, 8], strides = [1, 1]} : vector<16x32xf32> to vector<16x8xf32>
    %52 = vector.extract_strided_slice %24 {offsets = [0, 8], sizes = [16, 8], strides = [1, 1]} : vector<16x32xf32> to vector<16x8xf32>
    %53 = tpu.transpose %51, [1, 0] : vector<16x8xf32> -> vector<8x16xf32>
    %cst_35 = arith.constant dense<0.000000e+00> : vector<16x16xf32>
    %54 = tpu.matmul %50, %53, %cst_35 {dimension_numbers = #tpu.dot_dimension_numbers<[1], [0], [0], [1], [0, 0, 1, 1], [], []>} : vector<16x8xf32>, vector<8x16xf32>, vector<16x16xf32> -> vector<16x16xf32>
    %cst_36 = arith.constant 0.353553385 : f32
    %55 = vector.broadcast %cst_36 : f32 to vector<16x16xf32>
    %56 = arith.mulf %54, %55 : vector<16x16xf32>
    %57 = arith.addf %56, %3 : vector<16x16xf32>
    %cst_37 = arith.constant dense<0xFF800000> : vector<16xf32>
    %58 = vector.multi_reduction <maximumf>, %57, %cst_37 [1] : vector<16x16xf32> to vector<16xf32>
    %59 = vector.shape_cast %58 : vector<16xf32> to vector<16x1xf32>
    %60 = vector.broadcast %59 : vector<16x1xf32> to vector<16x16xf32>
    %61 = arith.subf %57, %60 : vector<16x16xf32>
    %62 = math.exp %61 : vector<16x16xf32>
    %cst_38 = arith.constant dense<0.000000e+00> : vector<16xf32>
    %63 = vector.multi_reduction <add>, %62, %cst_38 [1] : vector<16x16xf32> to vector<16xf32>
    %64 = vector.shape_cast %63 : vector<16xf32> to vector<16x1xf32>
    %cst_39 = arith.constant dense<0.000000e+00> : vector<16x8xf32>
    %65 = tpu.matmul %62, %52, %cst_39 {dimension_numbers = #tpu.dot_dimension_numbers<[1], [0], [0], [1], [0, 0, 1, 1], [], []>} : vector<16x16xf32>, vector<16x8xf32>, vector<16x8xf32> -> vector<16x8xf32>
    %66 = tpu.reciprocal %64 {approx = true} : vector<16x1xf32> -> vector<16x1xf32>
    %67 = vector.broadcast %66 : vector<16x1xf32> to vector<16x8xf32>
    %68 = arith.mulf %65, %67 : vector<16x8xf32>
    %69 = vector.extract_strided_slice %26 {offsets = [8, 0], sizes = [8, 32], strides = [1, 1]} : vector<32x32xf32> to vector<8x32xf32>
    %cst_40 = arith.constant dense<0.000000e+00> : vector<16x32xf32>
    %70 = tpu.matmul %68, %69, %cst_40 {dimension_numbers = #tpu.dot_dimension_numbers<[1], [0], [0], [1], [0, 0, 1, 1], [], []>} : vector<16x8xf32>, vector<8x32xf32>, vector<16x32xf32> -> vector<16x32xf32>
    %71 = arith.addf %49, %70 : vector<16x32xf32>
    %72 = vector.extract_strided_slice %10 {offsets = [0, 16], sizes = [16, 8], strides = [1, 1]} : vector<16x32xf32> to vector<16x8xf32>
    %73 = vector.extract_strided_slice %17 {offsets = [0, 16], sizes = [16, 8], strides = [1, 1]} : vector<16x32xf32> to vector<16x8xf32>
    %74 = vector.extract_strided_slice %24 {offsets = [0, 16], sizes = [16, 8], strides = [1, 1]} : vector<16x32xf32> to vector<16x8xf32>
    %75 = tpu.transpose %73, [1, 0] : vector<16x8xf32> -> vector<8x16xf32>
    %cst_41 = arith.constant dense<0.000000e+00> : vector<16x16xf32>
    %76 = tpu.matmul %72, %75, %cst_41 {dimension_numbers = #tpu.dot_dimension_numbers<[1], [0], [0], [1], [0, 0, 1, 1], [], []>} : vector<16x8xf32>, vector<8x16xf32>, vector<16x16xf32> -> vector<16x16xf32>
    %cst_42 = arith.constant 0.353553385 : f32
    %77 = vector.broadcast %cst_42 : f32 to vector<16x16xf32>
    %78 = arith.mulf %76, %77 : vector<16x16xf32>
    %79 = arith.addf %78, %3 : vector<16x16xf32>
    %cst_43 = arith.constant dense<0xFF800000> : vector<16xf32>
    %80 = vector.multi_reduction <maximumf>, %79, %cst_43 [1] : vector<16x16xf32> to vector<16xf32>
    %81 = vector.shape_cast %80 : vector<16xf32> to vector<16x1xf32>
    %82 = vector.broadcast %81 : vector<16x1xf32> to vector<16x16xf32>
    %83 = arith.subf %79, %82 : vector<16x16xf32>
    %84 = math.exp %83 : vector<16x16xf32>
    %cst_44 = arith.constant dense<0.000000e+00> : vector<16xf32>
    %85 = vector.multi_reduction <add>, %84, %cst_44 [1] : vector<16x16xf32> to vector<16xf32>
    %86 = vector.shape_cast %85 : vector<16xf32> to vector<16x1xf32>
    %cst_45 = arith.constant dense<0.000000e+00> : vector<16x8xf32>
    %87 = tpu.matmul %84, %74, %cst_45 {dimension_numbers = #tpu.dot_dimension_numbers<[1], [0], [0], [1], [0, 0, 1, 1], [], []>} : vector<16x16xf32>, vector<16x8xf32>, vector<16x8xf32> -> vector<16x8xf32>
    %88 = tpu.reciprocal %86 {approx = true} : vector<16x1xf32> -> vector<16x1xf32>
    %89 = vector.broadcast %88 : vector<16x1xf32> to vector<16x8xf32>
    %90 = arith.mulf %87, %89 : vector<16x8xf32>
    %91 = vector.extract_strided_slice %26 {offsets = [16, 0], sizes = [8, 32], strides = [1, 1]} : vector<32x32xf32> to vector<8x32xf32>
    %cst_46 = arith.constant dense<0.000000e+00> : vector<16x32xf32>
    %92 = tpu.matmul %90, %91, %cst_46 {dimension_numbers = #tpu.dot_dimension_numbers<[1], [0], [0], [1], [0, 0, 1, 1], [], []>} : vector<16x8xf32>, vector<8x32xf32>, vector<16x32xf32> -> vector<16x32xf32>
    %93 = arith.addf %71, %92 : vector<16x32xf32>
    %94 = vector.extract_strided_slice %10 {offsets = [0, 24], sizes = [16, 8], strides = [1, 1]} : vector<16x32xf32> to vector<16x8xf32>
    %95 = vector.extract_strided_slice %17 {offsets = [0, 24], sizes = [16, 8], strides = [1, 1]} : vector<16x32xf32> to vector<16x8xf32>
    %96 = vector.extract_strided_slice %24 {offsets = [0, 24], sizes = [16, 8], strides = [1, 1]} : vector<16x32xf32> to vector<16x8xf32>
    %97 = tpu.transpose %95, [1, 0] : vector<16x8xf32> -> vector<8x16xf32>
    %cst_47 = arith.constant dense<0.000000e+00> : vector<16x16xf32>
    %98 = tpu.matmul %94, %97, %cst_47 {dimension_numbers = #tpu.dot_dimension_numbers<[1], [0], [0], [1], [0, 0, 1, 1], [], []>} : vector<16x8xf32>, vector<8x16xf32>, vector<16x16xf32> -> vector<16x16xf32>
    %cst_48 = arith.constant 0.353553385 : f32
    %99 = vector.broadcast %cst_48 : f32 to vector<16x16xf32>
    %100 = arith.mulf %98, %99 : vector<16x16xf32>
    %101 = arith.addf %100, %3 : vector<16x16xf32>
    %cst_49 = arith.constant dense<0xFF800000> : vector<16xf32>
    %102 = vector.multi_reduction <maximumf>, %101, %cst_49 [1] : vector<16x16xf32> to vector<16xf32>
    %103 = vector.shape_cast %102 : vector<16xf32> to vector<16x1xf32>
    %104 = vector.broadcast %103 : vector<16x1xf32> to vector<16x16xf32>
    %105 = arith.subf %101, %104 : vector<16x16xf32>
    %106 = math.exp %105 : vector<16x16xf32>
    %cst_50 = arith.constant dense<0.000000e+00> : vector<16xf32>
    %107 = vector.multi_reduction <add>, %106, %cst_50 [1] : vector<16x16xf32> to vector<16xf32>
    %108 = vector.shape_cast %107 : vector<16xf32> to vector<16x1xf32>
    %cst_51 = arith.constant dense<0.000000e+00> : vector<16x8xf32>
    %109 = tpu.matmul %106, %96, %cst_51 {dimension_numbers = #tpu.dot_dimension_numbers<[1], [0], [0], [1], [0, 0, 1, 1], [], []>} : vector<16x16xf32>, vector<16x8xf32>, vector<16x8xf32> -> vector<16x8xf32>
    %110 = tpu.reciprocal %108 {approx = true} : vector<16x1xf32> -> vector<16x1xf32>
    %111 = vector.broadcast %110 : vector<16x1xf32> to vector<16x8xf32>
    %112 = arith.mulf %109, %111 : vector<16x8xf32>
    %113 = vector.extract_strided_slice %26 {offsets = [24, 0], sizes = [8, 32], strides = [1, 1]} : vector<32x32xf32> to vector<8x32xf32>
    %cst_52 = arith.constant dense<0.000000e+00> : vector<16x32xf32>
    %114 = tpu.matmul %112, %113, %cst_52 {dimension_numbers = #tpu.dot_dimension_numbers<[1], [0], [0], [1], [0, 0, 1, 1], [], []>} : vector<16x8xf32>, vector<8x32xf32>, vector<16x32xf32> -> vector<16x32xf32>
    %115 = arith.addf %93, %114 : vector<16x32xf32>
    %116 = arith.addf %2, %115 : vector<16x32xf32>
    %c0_53 = arith.constant 0 : index
    %c0_54 = arith.constant 0 : index
    %c0_55 = arith.constant 0 : index
    %117 = vector.load %arg11[%c0_53, %c0_54, %c0_55] : memref<2x1x32xf32, #tpu.memory_space<vmem>>, vector<1x1x32xf32>
    %118 = vector.shape_cast %117 : vector<1x1x32xf32> to vector<1x32xf32>
    %119 = vector.broadcast %118 : vector<1x32xf32> to vector<16x32xf32>
    %120 = arith.addf %116, %119 : vector<16x32xf32>
    %c0_56 = arith.constant 0 : index
    %c0_57 = arith.constant 0 : index
    %c0_58 = arith.constant 0 : index
    %121 = vector.load %arg12[%c0_56, %c0_57, %c0_58] : memref<2x1x32xf32, #tpu.memory_space<vmem>>, vector<1x1x32xf32>
    %122 = vector.shape_cast %121 : vector<1x1x32xf32> to vector<1x32xf32>
    %c0_59 = arith.constant 0 : index
    %c0_60 = arith.constant 0 : index
    %c0_61 = arith.constant 0 : index
    %123 = vector.load %arg13[%c0_59, %c0_60, %c0_61] : memref<2x1x32xf32, #tpu.memory_space<vmem>>, vector<1x1x32xf32>
    %124 = vector.shape_cast %123 : vector<1x1x32xf32> to vector<1x32xf32>
    %cst_62 = arith.constant dense<0.000000e+00> : vector<16xf32>
    %125 = vector.multi_reduction <add>, %120, %cst_62 [1] : vector<16x32xf32> to vector<16xf32>
    %126 = vector.shape_cast %125 : vector<16xf32> to vector<16x1xf32>
    %cst_63 = arith.constant 3.200000e+01 : f32
    %127 = vector.broadcast %cst_63 : f32 to vector<16x1xf32>
    %128 = arith.divf %126, %127 : vector<16x1xf32>
    %129 = vector.broadcast %128 : vector<16x1xf32> to vector<16x32xf32>
    %130 = arith.subf %120, %129 : vector<16x32xf32>
    %131 = arith.mulf %130, %130 : vector<16x32xf32>
    %cst_64 = arith.constant dense<0.000000e+00> : vector<16xf32>
    %132 = vector.multi_reduction <add>, %131, %cst_64 [1] : vector<16x32xf32> to vector<16xf32>
    %133 = vector.shape_cast %132 : vector<16xf32> to vector<16x1xf32>
    %cst_65 = arith.constant 3.200000e+01 : f32
    %134 = vector.broadcast %cst_65 : f32 to vector<16x1xf32>
    %135 = arith.divf %133, %134 : vector<16x1xf32>
    %cst_66 = arith.constant 9.99999974E-6 : f32
    %136 = vector.broadcast %cst_66 : f32 to vector<16x1xf32>
    %137 = arith.addf %135, %136 : vector<16x1xf32>
    %138 = math.rsqrt %137 : vector<16x1xf32>
    %139 = vector.broadcast %138 : vector<16x1xf32> to vector<16x32xf32>
    %140 = arith.mulf %130, %139 : vector<16x32xf32>
    %141 = vector.broadcast %122 : vector<1x32xf32> to vector<16x32xf32>
    %142 = arith.mulf %140, %141 : vector<16x32xf32>
    %143 = vector.broadcast %124 : vector<1x32xf32> to vector<16x32xf32>
    %144 = arith.addf %142, %143 : vector<16x32xf32>
    %145 = arith.truncf %144 : vector<16x32xf32> to vector<16x32xbf16>
    %c0_67 = arith.constant 0 : index
    %c0_68 = arith.constant 0 : index
    %c0_69 = arith.constant 0 : index
    %146 = vector.load %arg14[%c0_67, %c0_68, %c0_69] : memref<2x32x2048xbf16, #tpu.memory_space<vmem>>, vector<1x32x2048xbf16>
    %147 = vector.shape_cast %146 : vector<1x32x2048xbf16> to vector<32x2048xbf16>
    %cst_70 = arith.constant dense<0.000000e+00> : vector<16x2048xf32>
    %148 = tpu.matmul %145, %147, %cst_70 {dimension_numbers = #tpu.dot_dimension_numbers<[1], [0], [0], [1], [0, 0, 1, 1], [], []>} : vector<16x32xbf16>, vector<32x2048xbf16>, vector<16x2048xf32> -> vector<16x2048xf32>
    %c0_71 = arith.constant 0 : index
    %c0_72 = arith.constant 0 : index
    %c0_73 = arith.constant 0 : index
    %149 = vector.load %arg15[%c0_71, %c0_72, %c0_73] : memref<2x1x2048xf32, #tpu.memory_space<vmem>>, vector<1x1x2048xf32>
    %150 = vector.shape_cast %149 : vector<1x1x2048xf32> to vector<1x2048xf32>
    %151 = vector.broadcast %150 : vector<1x2048xf32> to vector<16x2048xf32>
    %152 = arith.addf %148, %151 : vector<16x2048xf32>
    %cst_74 = arith.constant 0.000000e+00 : f32
    %153 = vector.broadcast %cst_74 : f32 to vector<16x2048xf32>
    %154 = arith.maximumf %152, %153 : vector<16x2048xf32>
    %155 = arith.truncf %154 : vector<16x2048xf32> to vector<16x2048xbf16>
    %c0_75 = arith.constant 0 : index
    %c0_76 = arith.constant 0 : index
    %c0_77 = arith.constant 0 : index
    %156 = vector.load %arg16[%c0_75, %c0_76, %c0_77] : memref<2x2048x32xbf16, #tpu.memory_space<vmem>>, vector<1x2048x32xbf16>
    %157 = vector.shape_cast %156 : vector<1x2048x32xbf16> to vector<2048x32xbf16>
    %cst_78 = arith.constant dense<0.000000e+00> : vector<16x32xf32>
    %158 = tpu.matmul %155, %157, %cst_78 {dimension_numbers = #tpu.dot_dimension_numbers<[1], [0], [0], [1], [0, 0, 1, 1], [], []>} : vector<16x2048xbf16>, vector<2048x32xbf16>, vector<16x32xf32> -> vector<16x32xf32>
    %c0_79 = arith.constant 0 : index
    %c0_80 = arith.constant 0 : index
    %c0_81 = arith.constant 0 : index
    %159 = vector.load %arg17[%c0_79, %c0_80, %c0_81] : memref<2x1x32xf32, #tpu.memory_space<vmem>>, vector<1x1x32xf32>
    %160 = vector.shape_cast %159 : vector<1x1x32xf32> to vector<1x32xf32>
    %161 = vector.broadcast %160 : vector<1x32xf32> to vector<16x32xf32>
    %162 = arith.addf %158, %161 : vector<16x32xf32>
    %163 = arith.addf %144, %162 : vector<16x32xf32>
    %c0_82 = arith.constant 0 : index
    %c0_83 = arith.constant 0 : index
    %c0_84 = arith.constant 0 : index
    %164 = vector.load %arg18[%c0_82, %c0_83, %c0_84] : memref<2x1x32xf32, #tpu.memory_space<vmem>>, vector<1x1x32xf32>
    %165 = vector.shape_cast %164 : vector<1x1x32xf32> to vector<1x32xf32>
    %c0_85 = arith.constant 0 : index
    %c0_86 = arith.constant 0 : index
    %c0_87 = arith.constant 0 : index
    %166 = vector.load %arg19[%c0_85, %c0_86, %c0_87] : memref<2x1x32xf32, #tpu.memory_space<vmem>>, vector<1x1x32xf32>
    %167 = vector.shape_cast %166 : vector<1x1x32xf32> to vector<1x32xf32>
    %cst_88 = arith.constant dense<0.000000e+00> : vector<16xf32>
    %168 = vector.multi_reduction <add>, %163, %cst_88 [1] : vector<16x32xf32> to vector<16xf32>
    %169 = vector.shape_cast %168 : vector<16xf32> to vector<16x1xf32>
    %cst_89 = arith.constant 3.200000e+01 : f32
    %170 = vector.broadcast %cst_89 : f32 to vector<16x1xf32>
    %171 = arith.divf %169, %170 : vector<16x1xf32>
    %172 = vector.broadcast %171 : vector<16x1xf32> to vector<16x32xf32>
    %173 = arith.subf %163, %172 : vector<16x32xf32>
    %174 = arith.mulf %173, %173 : vector<16x32xf32>
    %cst_90 = arith.constant dense<0.000000e+00> : vector<16xf32>
    %175 = vector.multi_reduction <add>, %174, %cst_90 [1] : vector<16x32xf32> to vector<16xf32>
    %176 = vector.shape_cast %175 : vector<16xf32> to vector<16x1xf32>
    %cst_91 = arith.constant 3.200000e+01 : f32
    %177 = vector.broadcast %cst_91 : f32 to vector<16x1xf32>
    %178 = arith.divf %176, %177 : vector<16x1xf32>
    %cst_92 = arith.constant 9.99999974E-6 : f32
    %179 = vector.broadcast %cst_92 : f32 to vector<16x1xf32>
    %180 = arith.addf %178, %179 : vector<16x1xf32>
    %181 = math.rsqrt %180 : vector<16x1xf32>
    %182 = vector.broadcast %181 : vector<16x1xf32> to vector<16x32xf32>
    %183 = arith.mulf %173, %182 : vector<16x32xf32>
    %184 = vector.broadcast %165 : vector<1x32xf32> to vector<16x32xf32>
    %185 = arith.mulf %183, %184 : vector<16x32xf32>
    %186 = vector.broadcast %167 : vector<1x32xf32> to vector<16x32xf32>
    %187 = arith.addf %185, %186 : vector<16x32xf32>
    %c1 = arith.constant 1 : index
    %c0_93 = arith.constant 0 : index
    %c0_94 = arith.constant 0 : index
    %188 = vector.load %arg4[%c1, %c0_93, %c0_94] : memref<2x32x32xf32, #tpu.memory_space<vmem>>, vector<1x32x32xf32>
    %189 = vector.shape_cast %188 : vector<1x32x32xf32> to vector<32x32xf32>
    %cst_95 = arith.constant dense<0.000000e+00> : vector<16x32xf32>
    %190 = tpu.matmul %187, %189, %cst_95 {dimension_numbers = #tpu.dot_dimension_numbers<[1], [0], [0], [1], [0, 0, 1, 1], [], []>} : vector<16x32xf32>, vector<32x32xf32>, vector<16x32xf32> -> vector<16x32xf32>
    %c1_96 = arith.constant 1 : index
    %c0_97 = arith.constant 0 : index
    %c0_98 = arith.constant 0 : index
    %191 = vector.load %arg5[%c1_96, %c0_97, %c0_98] : memref<2x1x32xf32, #tpu.memory_space<vmem>>, vector<1x1x32xf32>
    %192 = vector.shape_cast %191 : vector<1x1x32xf32> to vector<1x32xf32>
    %193 = vector.broadcast %192 : vector<1x32xf32> to vector<16x32xf32>
    %194 = arith.addf %190, %193 : vector<16x32xf32>
    %c1_99 = arith.constant 1 : index
    %c0_100 = arith.constant 0 : index
    %c0_101 = arith.constant 0 : index
    %195 = vector.load %arg6[%c1_99, %c0_100, %c0_101] : memref<2x32x32xf32, #tpu.memory_space<vmem>>, vector<1x32x32xf32>
    %196 = vector.shape_cast %195 : vector<1x32x32xf32> to vector<32x32xf32>
    %cst_102 = arith.constant dense<0.000000e+00> : vector<16x32xf32>
    %197 = tpu.matmul %187, %196, %cst_102 {dimension_numbers = #tpu.dot_dimension_numbers<[1], [0], [0], [1], [0, 0, 1, 1], [], []>} : vector<16x32xf32>, vector<32x32xf32>, vector<16x32xf32> -> vector<16x32xf32>
    %c1_103 = arith.constant 1 : index
    %c0_104 = arith.constant 0 : index
    %c0_105 = arith.constant 0 : index
    %198 = vector.load %arg7[%c1_103, %c0_104, %c0_105] : memref<2x1x32xf32, #tpu.memory_space<vmem>>, vector<1x1x32xf32>
    %199 = vector.shape_cast %198 : vector<1x1x32xf32> to vector<1x32xf32>
    %200 = vector.broadcast %199 : vector<1x32xf32> to vector<16x32xf32>
    %201 = arith.addf %197, %200 : vector<16x32xf32>
    %c1_106 = arith.constant 1 : index
    %c0_107 = arith.constant 0 : index
    %c0_108 = arith.constant 0 : index
    %202 = vector.load %arg8[%c1_106, %c0_107, %c0_108] : memref<2x32x32xf32, #tpu.memory_space<vmem>>, vector<1x32x32xf32>
    %203 = vector.shape_cast %202 : vector<1x32x32xf32> to vector<32x32xf32>
    %cst_109 = arith.constant dense<0.000000e+00> : vector<16x32xf32>
    %204 = tpu.matmul %187, %203, %cst_109 {dimension_numbers = #tpu.dot_dimension_numbers<[1], [0], [0], [1], [0, 0, 1, 1], [], []>} : vector<16x32xf32>, vector<32x32xf32>, vector<16x32xf32> -> vector<16x32xf32>
    %c1_110 = arith.constant 1 : index
    %c0_111 = arith.constant 0 : index
    %c0_112 = arith.constant 0 : index
    %205 = vector.load %arg9[%c1_110, %c0_111, %c0_112] : memref<2x1x32xf32, #tpu.memory_space<vmem>>, vector<1x1x32xf32>
    %206 = vector.shape_cast %205 : vector<1x1x32xf32> to vector<1x32xf32>
    %207 = vector.broadcast %206 : vector<1x32xf32> to vector<16x32xf32>
    %208 = arith.addf %204, %207 : vector<16x32xf32>
    %c1_113 = arith.constant 1 : index
    %c0_114 = arith.constant 0 : index
    %c0_115 = arith.constant 0 : index
    %209 = vector.load %arg10[%c1_113, %c0_114, %c0_115] : memref<2x32x32xf32, #tpu.memory_space<vmem>>, vector<1x32x32xf32>
    %210 = vector.shape_cast %209 : vector<1x32x32xf32> to vector<32x32xf32>
    %cst_116 = arith.constant 0.000000e+00 : f32
    %211 = vector.broadcast %cst_116 : f32 to vector<16x32xf32>
    %212 = vector.extract_strided_slice %194 {offsets = [0, 0], sizes = [16, 8], strides = [1, 1]} : vector<16x32xf32> to vector<16x8xf32>
    %213 = vector.extract_strided_slice %201 {offsets = [0, 0], sizes = [16, 8], strides = [1, 1]} : vector<16x32xf32> to vector<16x8xf32>
    %214 = vector.extract_strided_slice %208 {offsets = [0, 0], sizes = [16, 8], strides = [1, 1]} : vector<16x32xf32> to vector<16x8xf32>
    %215 = tpu.transpose %213, [1, 0] : vector<16x8xf32> -> vector<8x16xf32>
    %cst_117 = arith.constant dense<0.000000e+00> : vector<16x16xf32>
    %216 = tpu.matmul %212, %215, %cst_117 {dimension_numbers = #tpu.dot_dimension_numbers<[1], [0], [0], [1], [0, 0, 1, 1], [], []>} : vector<16x8xf32>, vector<8x16xf32>, vector<16x16xf32> -> vector<16x16xf32>
    %cst_118 = arith.constant 0.353553385 : f32
    %217 = vector.broadcast %cst_118 : f32 to vector<16x16xf32>
    %218 = arith.mulf %216, %217 : vector<16x16xf32>
    %219 = arith.addf %218, %3 : vector<16x16xf32>
    %cst_119 = arith.constant dense<0xFF800000> : vector<16xf32>
    %220 = vector.multi_reduction <maximumf>, %219, %cst_119 [1] : vector<16x16xf32> to vector<16xf32>
    %221 = vector.shape_cast %220 : vector<16xf32> to vector<16x1xf32>
    %222 = vector.broadcast %221 : vector<16x1xf32> to vector<16x16xf32>
    %223 = arith.subf %219, %222 : vector<16x16xf32>
    %224 = math.exp %223 : vector<16x16xf32>
    %cst_120 = arith.constant dense<0.000000e+00> : vector<16xf32>
    %225 = vector.multi_reduction <add>, %224, %cst_120 [1] : vector<16x16xf32> to vector<16xf32>
    %226 = vector.shape_cast %225 : vector<16xf32> to vector<16x1xf32>
    %cst_121 = arith.constant dense<0.000000e+00> : vector<16x8xf32>
    %227 = tpu.matmul %224, %214, %cst_121 {dimension_numbers = #tpu.dot_dimension_numbers<[1], [0], [0], [1], [0, 0, 1, 1], [], []>} : vector<16x16xf32>, vector<16x8xf32>, vector<16x8xf32> -> vector<16x8xf32>
    %228 = tpu.reciprocal %226 {approx = true} : vector<16x1xf32> -> vector<16x1xf32>
    %229 = vector.broadcast %228 : vector<16x1xf32> to vector<16x8xf32>
    %230 = arith.mulf %227, %229 : vector<16x8xf32>
    %231 = vector.extract_strided_slice %210 {offsets = [0, 0], sizes = [8, 32], strides = [1, 1]} : vector<32x32xf32> to vector<8x32xf32>
    %cst_122 = arith.constant dense<0.000000e+00> : vector<16x32xf32>
    %232 = tpu.matmul %230, %231, %cst_122 {dimension_numbers = #tpu.dot_dimension_numbers<[1], [0], [0], [1], [0, 0, 1, 1], [], []>} : vector<16x8xf32>, vector<8x32xf32>, vector<16x32xf32> -> vector<16x32xf32>
    %233 = arith.addf %211, %232 : vector<16x32xf32>
    %234 = vector.extract_strided_slice %194 {offsets = [0, 8], sizes = [16, 8], strides = [1, 1]} : vector<16x32xf32> to vector<16x8xf32>
    %235 = vector.extract_strided_slice %201 {offsets = [0, 8], sizes = [16, 8], strides = [1, 1]} : vector<16x32xf32> to vector<16x8xf32>
    %236 = vector.extract_strided_slice %208 {offsets = [0, 8], sizes = [16, 8], strides = [1, 1]} : vector<16x32xf32> to vector<16x8xf32>
    %237 = tpu.transpose %235, [1, 0] : vector<16x8xf32> -> vector<8x16xf32>
    %cst_123 = arith.constant dense<0.000000e+00> : vector<16x16xf32>
    %238 = tpu.matmul %234, %237, %cst_123 {dimension_numbers = #tpu.dot_dimension_numbers<[1], [0], [0], [1], [0, 0, 1, 1], [], []>} : vector<16x8xf32>, vector<8x16xf32>, vector<16x16xf32> -> vector<16x16xf32>
    %cst_124 = arith.constant 0.353553385 : f32
    %239 = vector.broadcast %cst_124 : f32 to vector<16x16xf32>
    %240 = arith.mulf %238, %239 : vector<16x16xf32>
    %241 = arith.addf %240, %3 : vector<16x16xf32>
    %cst_125 = arith.constant dense<0xFF800000> : vector<16xf32>
    %242 = vector.multi_reduction <maximumf>, %241, %cst_125 [1] : vector<16x16xf32> to vector<16xf32>
    %243 = vector.shape_cast %242 : vector<16xf32> to vector<16x1xf32>
    %244 = vector.broadcast %243 : vector<16x1xf32> to vector<16x16xf32>
    %245 = arith.subf %241, %244 : vector<16x16xf32>
    %246 = math.exp %245 : vector<16x16xf32>
    %cst_126 = arith.constant dense<0.000000e+00> : vector<16xf32>
    %247 = vector.multi_reduction <add>, %246, %cst_126 [1] : vector<16x16xf32> to vector<16xf32>
    %248 = vector.shape_cast %247 : vector<16xf32> to vector<16x1xf32>
    %cst_127 = arith.constant dense<0.000000e+00> : vector<16x8xf32>
    %249 = tpu.matmul %246, %236, %cst_127 {dimension_numbers = #tpu.dot_dimension_numbers<[1], [0], [0], [1], [0, 0, 1, 1], [], []>} : vector<16x16xf32>, vector<16x8xf32>, vector<16x8xf32> -> vector<16x8xf32>
    %250 = tpu.reciprocal %248 {approx = true} : vector<16x1xf32> -> vector<16x1xf32>
    %251 = vector.broadcast %250 : vector<16x1xf32> to vector<16x8xf32>
    %252 = arith.mulf %249, %251 : vector<16x8xf32>
    %253 = vector.extract_strided_slice %210 {offsets = [8, 0], sizes = [8, 32], strides = [1, 1]} : vector<32x32xf32> to vector<8x32xf32>
    %cst_128 = arith.constant dense<0.000000e+00> : vector<16x32xf32>
    %254 = tpu.matmul %252, %253, %cst_128 {dimension_numbers = #tpu.dot_dimension_numbers<[1], [0], [0], [1], [0, 0, 1, 1], [], []>} : vector<16x8xf32>, vector<8x32xf32>, vector<16x32xf32> -> vector<16x32xf32>
    %255 = arith.addf %233, %254 : vector<16x32xf32>
    %256 = vector.extract_strided_slice %194 {offsets = [0, 16], sizes = [16, 8], strides = [1, 1]} : vector<16x32xf32> to vector<16x8xf32>
    %257 = vector.extract_strided_slice %201 {offsets = [0, 16], sizes = [16, 8], strides = [1, 1]} : vector<16x32xf32> to vector<16x8xf32>
    %258 = vector.extract_strided_slice %208 {offsets = [0, 16], sizes = [16, 8], strides = [1, 1]} : vector<16x32xf32> to vector<16x8xf32>
    %259 = tpu.transpose %257, [1, 0] : vector<16x8xf32> -> vector<8x16xf32>
    %cst_129 = arith.constant dense<0.000000e+00> : vector<16x16xf32>
    %260 = tpu.matmul %256, %259, %cst_129 {dimension_numbers = #tpu.dot_dimension_numbers<[1], [0], [0], [1], [0, 0, 1, 1], [], []>} : vector<16x8xf32>, vector<8x16xf32>, vector<16x16xf32> -> vector<16x16xf32>
    %cst_130 = arith.constant 0.353553385 : f32
    %261 = vector.broadcast %cst_130 : f32 to vector<16x16xf32>
    %262 = arith.mulf %260, %261 : vector<16x16xf32>
    %263 = arith.addf %262, %3 : vector<16x16xf32>
    %cst_131 = arith.constant dense<0xFF800000> : vector<16xf32>
    %264 = vector.multi_reduction <maximumf>, %263, %cst_131 [1] : vector<16x16xf32> to vector<16xf32>
    %265 = vector.shape_cast %264 : vector<16xf32> to vector<16x1xf32>
    %266 = vector.broadcast %265 : vector<16x1xf32> to vector<16x16xf32>
    %267 = arith.subf %263, %266 : vector<16x16xf32>
    %268 = math.exp %267 : vector<16x16xf32>
    %cst_132 = arith.constant dense<0.000000e+00> : vector<16xf32>
    %269 = vector.multi_reduction <add>, %268, %cst_132 [1] : vector<16x16xf32> to vector<16xf32>
    %270 = vector.shape_cast %269 : vector<16xf32> to vector<16x1xf32>
    %cst_133 = arith.constant dense<0.000000e+00> : vector<16x8xf32>
    %271 = tpu.matmul %268, %258, %cst_133 {dimension_numbers = #tpu.dot_dimension_numbers<[1], [0], [0], [1], [0, 0, 1, 1], [], []>} : vector<16x16xf32>, vector<16x8xf32>, vector<16x8xf32> -> vector<16x8xf32>
    %272 = tpu.reciprocal %270 {approx = true} : vector<16x1xf32> -> vector<16x1xf32>
    %273 = vector.broadcast %272 : vector<16x1xf32> to vector<16x8xf32>
    %274 = arith.mulf %271, %273 : vector<16x8xf32>
    %275 = vector.extract_strided_slice %210 {offsets = [16, 0], sizes = [8, 32], strides = [1, 1]} : vector<32x32xf32> to vector<8x32xf32>
    %cst_134 = arith.constant dense<0.000000e+00> : vector<16x32xf32>
    %276 = tpu.matmul %274, %275, %cst_134 {dimension_numbers = #tpu.dot_dimension_numbers<[1], [0], [0], [1], [0, 0, 1, 1], [], []>} : vector<16x8xf32>, vector<8x32xf32>, vector<16x32xf32> -> vector<16x32xf32>
    %277 = arith.addf %255, %276 : vector<16x32xf32>
    %278 = vector.extract_strided_slice %194 {offsets = [0, 24], sizes = [16, 8], strides = [1, 1]} : vector<16x32xf32> to vector<16x8xf32>
    %279 = vector.extract_strided_slice %201 {offsets = [0, 24], sizes = [16, 8], strides = [1, 1]} : vector<16x32xf32> to vector<16x8xf32>
    %280 = vector.extract_strided_slice %208 {offsets = [0, 24], sizes = [16, 8], strides = [1, 1]} : vector<16x32xf32> to vector<16x8xf32>
    %281 = tpu.transpose %279, [1, 0] : vector<16x8xf32> -> vector<8x16xf32>
    %cst_135 = arith.constant dense<0.000000e+00> : vector<16x16xf32>
    %282 = tpu.matmul %278, %281, %cst_135 {dimension_numbers = #tpu.dot_dimension_numbers<[1], [0], [0], [1], [0, 0, 1, 1], [], []>} : vector<16x8xf32>, vector<8x16xf32>, vector<16x16xf32> -> vector<16x16xf32>
    %cst_136 = arith.constant 0.353553385 : f32
    %283 = vector.broadcast %cst_136 : f32 to vector<16x16xf32>
    %284 = arith.mulf %282, %283 : vector<16x16xf32>
    %285 = arith.addf %284, %3 : vector<16x16xf32>
    %cst_137 = arith.constant dense<0xFF800000> : vector<16xf32>
    %286 = vector.multi_reduction <maximumf>, %285, %cst_137 [1] : vector<16x16xf32> to vector<16xf32>
    %287 = vector.shape_cast %286 : vector<16xf32> to vector<16x1xf32>
    %288 = vector.broadcast %287 : vector<16x1xf32> to vector<16x16xf32>
    %289 = arith.subf %285, %288 : vector<16x16xf32>
    %290 = math.exp %289 : vector<16x16xf32>
    %cst_138 = arith.constant dense<0.000000e+00> : vector<16xf32>
    %291 = vector.multi_reduction <add>, %290, %cst_138 [1] : vector<16x16xf32> to vector<16xf32>
    %292 = vector.shape_cast %291 : vector<16xf32> to vector<16x1xf32>
    %cst_139 = arith.constant dense<0.000000e+00> : vector<16x8xf32>
    %293 = tpu.matmul %290, %280, %cst_139 {dimension_numbers = #tpu.dot_dimension_numbers<[1], [0], [0], [1], [0, 0, 1, 1], [], []>} : vector<16x16xf32>, vector<16x8xf32>, vector<16x8xf32> -> vector<16x8xf32>
    %294 = tpu.reciprocal %292 {approx = true} : vector<16x1xf32> -> vector<16x1xf32>
    %295 = vector.broadcast %294 : vector<16x1xf32> to vector<16x8xf32>
    %296 = arith.mulf %293, %295 : vector<16x8xf32>
    %297 = vector.extract_strided_slice %210 {offsets = [24, 0], sizes = [8, 32], strides = [1, 1]} : vector<32x32xf32> to vector<8x32xf32>
    %cst_140 = arith.constant dense<0.000000e+00> : vector<16x32xf32>
    %298 = tpu.matmul %296, %297, %cst_140 {dimension_numbers = #tpu.dot_dimension_numbers<[1], [0], [0], [1], [0, 0, 1, 1], [], []>} : vector<16x8xf32>, vector<8x32xf32>, vector<16x32xf32> -> vector<16x32xf32>
    %299 = arith.addf %277, %298 : vector<16x32xf32>
    %300 = arith.addf %187, %299 : vector<16x32xf32>
    %c1_141 = arith.constant 1 : index
    %c0_142 = arith.constant 0 : index
    %c0_143 = arith.constant 0 : index
    %301 = vector.load %arg11[%c1_141, %c0_142, %c0_143] : memref<2x1x32xf32, #tpu.memory_space<vmem>>, vector<1x1x32xf32>
    %302 = vector.shape_cast %301 : vector<1x1x32xf32> to vector<1x32xf32>
    %303 = vector.broadcast %302 : vector<1x32xf32> to vector<16x32xf32>
    %304 = arith.addf %300, %303 : vector<16x32xf32>
    %c1_144 = arith.constant 1 : index
    %c0_145 = arith.constant 0 : index
    %c0_146 = arith.constant 0 : index
    %305 = vector.load %arg12[%c1_144, %c0_145, %c0_146] : memref<2x1x32xf32, #tpu.memory_space<vmem>>, vector<1x1x32xf32>
    %306 = vector.shape_cast %305 : vector<1x1x32xf32> to vector<1x32xf32>
    %c1_147 = arith.constant 1 : index
    %c0_148 = arith.constant 0 : index
    %c0_149 = arith.constant 0 : index
    %307 = vector.load %arg13[%c1_147, %c0_148, %c0_149] : memref<2x1x32xf32, #tpu.memory_space<vmem>>, vector<1x1x32xf32>
    %308 = vector.shape_cast %307 : vector<1x1x32xf32> to vector<1x32xf32>
    %cst_150 = arith.constant dense<0.000000e+00> : vector<16xf32>
    %309 = vector.multi_reduction <add>, %304, %cst_150 [1] : vector<16x32xf32> to vector<16xf32>
    %310 = vector.shape_cast %309 : vector<16xf32> to vector<16x1xf32>
    %cst_151 = arith.constant 3.200000e+01 : f32
    %311 = vector.broadcast %cst_151 : f32 to vector<16x1xf32>
    %312 = arith.divf %310, %311 : vector<16x1xf32>
    %313 = vector.broadcast %312 : vector<16x1xf32> to vector<16x32xf32>
    %314 = arith.subf %304, %313 : vector<16x32xf32>
    %315 = arith.mulf %314, %314 : vector<16x32xf32>
    %cst_152 = arith.constant dense<0.000000e+00> : vector<16xf32>
    %316 = vector.multi_reduction <add>, %315, %cst_152 [1] : vector<16x32xf32> to vector<16xf32>
    %317 = vector.shape_cast %316 : vector<16xf32> to vector<16x1xf32>
    %cst_153 = arith.constant 3.200000e+01 : f32
    %318 = vector.broadcast %cst_153 : f32 to vector<16x1xf32>
    %319 = arith.divf %317, %318 : vector<16x1xf32>
    %cst_154 = arith.constant 9.99999974E-6 : f32
    %320 = vector.broadcast %cst_154 : f32 to vector<16x1xf32>
    %321 = arith.addf %319, %320 : vector<16x1xf32>
    %322 = math.rsqrt %321 : vector<16x1xf32>
    %323 = vector.broadcast %322 : vector<16x1xf32> to vector<16x32xf32>
    %324 = arith.mulf %314, %323 : vector<16x32xf32>
    %325 = vector.broadcast %306 : vector<1x32xf32> to vector<16x32xf32>
    %326 = arith.mulf %324, %325 : vector<16x32xf32>
    %327 = vector.broadcast %308 : vector<1x32xf32> to vector<16x32xf32>
    %328 = arith.addf %326, %327 : vector<16x32xf32>
    %329 = arith.truncf %328 : vector<16x32xf32> to vector<16x32xbf16>
    %c1_155 = arith.constant 1 : index
    %c0_156 = arith.constant 0 : index
    %c0_157 = arith.constant 0 : index
    %330 = vector.load %arg14[%c1_155, %c0_156, %c0_157] : memref<2x32x2048xbf16, #tpu.memory_space<vmem>>, vector<1x32x2048xbf16>
    %331 = vector.shape_cast %330 : vector<1x32x2048xbf16> to vector<32x2048xbf16>
    %cst_158 = arith.constant dense<0.000000e+00> : vector<16x2048xf32>
    %332 = tpu.matmul %329, %331, %cst_158 {dimension_numbers = #tpu.dot_dimension_numbers<[1], [0], [0], [1], [0, 0, 1, 1], [], []>} : vector<16x32xbf16>, vector<32x2048xbf16>, vector<16x2048xf32> -> vector<16x2048xf32>
    %c1_159 = arith.constant 1 : index
    %c0_160 = arith.constant 0 : index
    %c0_161 = arith.constant 0 : index
    %333 = vector.load %arg15[%c1_159, %c0_160, %c0_161] : memref<2x1x2048xf32, #tpu.memory_space<vmem>>, vector<1x1x2048xf32>
    %334 = vector.shape_cast %333 : vector<1x1x2048xf32> to vector<1x2048xf32>
    %335 = vector.broadcast %334 : vector<1x2048xf32> to vector<16x2048xf32>
    %336 = arith.addf %332, %335 : vector<16x2048xf32>
    %cst_162 = arith.constant 0.000000e+00 : f32
    %337 = vector.broadcast %cst_162 : f32 to vector<16x2048xf32>
    %338 = arith.maximumf %336, %337 : vector<16x2048xf32>
    %339 = arith.truncf %338 : vector<16x2048xf32> to vector<16x2048xbf16>
    %c1_163 = arith.constant 1 : index
    %c0_164 = arith.constant 0 : index
    %c0_165 = arith.constant 0 : index
    %340 = vector.load %arg16[%c1_163, %c0_164, %c0_165] : memref<2x2048x32xbf16, #tpu.memory_space<vmem>>, vector<1x2048x32xbf16>
    %341 = vector.shape_cast %340 : vector<1x2048x32xbf16> to vector<2048x32xbf16>
    %cst_166 = arith.constant dense<0.000000e+00> : vector<16x32xf32>
    %342 = tpu.matmul %339, %341, %cst_166 {dimension_numbers = #tpu.dot_dimension_numbers<[1], [0], [0], [1], [0, 0, 1, 1], [], []>} : vector<16x2048xbf16>, vector<2048x32xbf16>, vector<16x32xf32> -> vector<16x32xf32>
    %c1_167 = arith.constant 1 : index
    %c0_168 = arith.constant 0 : index
    %c0_169 = arith.constant 0 : index
    %343 = vector.load %arg17[%c1_167, %c0_168, %c0_169] : memref<2x1x32xf32, #tpu.memory_space<vmem>>, vector<1x1x32xf32>
    %344 = vector.shape_cast %343 : vector<1x1x32xf32> to vector<1x32xf32>
    %345 = vector.broadcast %344 : vector<1x32xf32> to vector<16x32xf32>
    %346 = arith.addf %342, %345 : vector<16x32xf32>
    %347 = arith.addf %328, %346 : vector<16x32xf32>
    %c1_170 = arith.constant 1 : index
    %c0_171 = arith.constant 0 : index
    %c0_172 = arith.constant 0 : index
    %348 = vector.load %arg18[%c1_170, %c0_171, %c0_172] : memref<2x1x32xf32, #tpu.memory_space<vmem>>, vector<1x1x32xf32>
    %349 = vector.shape_cast %348 : vector<1x1x32xf32> to vector<1x32xf32>
    %c1_173 = arith.constant 1 : index
    %c0_174 = arith.constant 0 : index
    %c0_175 = arith.constant 0 : index
    %350 = vector.load %arg19[%c1_173, %c0_174, %c0_175] : memref<2x1x32xf32, #tpu.memory_space<vmem>>, vector<1x1x32xf32>
    %351 = vector.shape_cast %350 : vector<1x1x32xf32> to vector<1x32xf32>
    %cst_176 = arith.constant dense<0.000000e+00> : vector<16xf32>
    %352 = vector.multi_reduction <add>, %347, %cst_176 [1] : vector<16x32xf32> to vector<16xf32>
    %353 = vector.shape_cast %352 : vector<16xf32> to vector<16x1xf32>
    %cst_177 = arith.constant 3.200000e+01 : f32
    %354 = vector.broadcast %cst_177 : f32 to vector<16x1xf32>
    %355 = arith.divf %353, %354 : vector<16x1xf32>
    %356 = vector.broadcast %355 : vector<16x1xf32> to vector<16x32xf32>
    %357 = arith.subf %347, %356 : vector<16x32xf32>
    %358 = arith.mulf %357, %357 : vector<16x32xf32>
    %cst_178 = arith.constant dense<0.000000e+00> : vector<16xf32>
    %359 = vector.multi_reduction <add>, %358, %cst_178 [1] : vector<16x32xf32> to vector<16xf32>
    %360 = vector.shape_cast %359 : vector<16xf32> to vector<16x1xf32>
    %cst_179 = arith.constant 3.200000e+01 : f32
    %361 = vector.broadcast %cst_179 : f32 to vector<16x1xf32>
    %362 = arith.divf %360, %361 : vector<16x1xf32>
    %cst_180 = arith.constant 9.99999974E-6 : f32
    %363 = vector.broadcast %cst_180 : f32 to vector<16x1xf32>
    %364 = arith.addf %362, %363 : vector<16x1xf32>
    %365 = math.rsqrt %364 : vector<16x1xf32>
    %366 = vector.broadcast %365 : vector<16x1xf32> to vector<16x32xf32>
    %367 = arith.mulf %357, %366 : vector<16x32xf32>
    %368 = vector.broadcast %349 : vector<1x32xf32> to vector<16x32xf32>
    %369 = arith.mulf %367, %368 : vector<16x32xf32>
    %370 = vector.broadcast %351 : vector<1x32xf32> to vector<16x32xf32>
    %371 = arith.addf %369, %370 : vector<16x32xf32>
    %c0_181 = arith.constant 0 : index
    %c0_182 = arith.constant 0 : index
    %372 = vector.load %arg20[%c0_181, %c0_182] : memref<16x16xf32, #tpu.memory_space<vmem>>, vector<16x16xf32>
    %cst_183 = arith.constant 0.000000e+00 : f32
    %373 = vector.broadcast %cst_183 : f32 to vector<16x32xf32>
    %374 = arith.maximumf %371, %373 : vector<16x32xf32>
    %c0_184 = arith.constant 0 : index
    %c0_185 = arith.constant 0 : index
    %375 = vector.load %arg21[%c0_184, %c0_185] : memref<32x32xf32, #tpu.memory_space<vmem>>, vector<32x32xf32>
    %cst_186 = arith.constant dense<0.000000e+00> : vector<16x32xf32>
    %376 = tpu.matmul %374, %375, %cst_186 {dimension_numbers = #tpu.dot_dimension_numbers<[1], [0], [0], [1], [0, 0, 1, 1], [], []>} : vector<16x32xf32>, vector<32x32xf32>, vector<16x32xf32> -> vector<16x32xf32>
    %cst_187 = arith.constant dense<0.000000e+00> : vector<16x32xf32>
    %377 = tpu.matmul %372, %376, %cst_187 {dimension_numbers = #tpu.dot_dimension_numbers<[1], [0], [0], [1], [0, 0, 1, 1], [], []>} : vector<16x16xf32>, vector<16x32xf32>, vector<16x32xf32> -> vector<16x32xf32>
    %c0_188 = arith.constant 0 : index
    %c0_189 = arith.constant 0 : index
    %378 = vector.load %arg22[%c0_188, %c0_189] : memref<1x32xf32, #tpu.memory_space<vmem>>, vector<1x32xf32>
    %379 = vector.broadcast %378 : vector<1x32xf32> to vector<16x32xf32>
    %380 = arith.addf %377, %379 : vector<16x32xf32>
    %cst_190 = arith.constant 0.000000e+00 : f32
    %381 = vector.broadcast %cst_190 : f32 to vector<16x32xf32>
    %382 = arith.maximumf %380, %381 : vector<16x32xf32>
    %c0_191 = arith.constant 0 : index
    %c0_192 = arith.constant 0 : index
    %383 = vector.load %arg23[%c0_191, %c0_192] : memref<32x32xf32, #tpu.memory_space<vmem>>, vector<32x32xf32>
    %cst_193 = arith.constant dense<0.000000e+00> : vector<16x32xf32>
    %384 = tpu.matmul %382, %383, %cst_193 {dimension_numbers = #tpu.dot_dimension_numbers<[1], [0], [0], [1], [0, 0, 1, 1], [], []>} : vector<16x32xf32>, vector<32x32xf32>, vector<16x32xf32> -> vector<16x32xf32>
    %cst_194 = arith.constant dense<0.000000e+00> : vector<16x32xf32>
    %385 = tpu.matmul %372, %384, %cst_194 {dimension_numbers = #tpu.dot_dimension_numbers<[1], [0], [0], [1], [0, 0, 1, 1], [], []>} : vector<16x16xf32>, vector<16x32xf32>, vector<16x32xf32> -> vector<16x32xf32>
    %c0_195 = arith.constant 0 : index
    %c0_196 = arith.constant 0 : index
    %386 = vector.load %arg24[%c0_195, %c0_196] : memref<1x32xf32, #tpu.memory_space<vmem>>, vector<1x32xf32>
    %387 = vector.broadcast %386 : vector<1x32xf32> to vector<16x32xf32>
    %388 = arith.addf %385, %387 : vector<16x32xf32>
    %cst_197 = arith.constant 0.000000e+00 : f32
    %389 = vector.broadcast %cst_197 : f32 to vector<16x32xf32>
    %390 = arith.maximumf %388, %389 : vector<16x32xf32>
    %c0_198 = arith.constant 0 : index
    %c0_199 = arith.constant 0 : index
    %391 = vector.load %arg25[%c0_198, %c0_199] : memref<32x128xf32, #tpu.memory_space<vmem>>, vector<32x128xf32>
    %cst_200 = arith.constant dense<0.000000e+00> : vector<16x128xf32>
    %392 = tpu.matmul %390, %391, %cst_200 {dimension_numbers = #tpu.dot_dimension_numbers<[1], [0], [0], [1], [0, 0, 1, 1], [], []>} : vector<16x32xf32>, vector<32x128xf32>, vector<16x128xf32> -> vector<16x128xf32>
    %c0_201 = arith.constant 0 : index
    %c0_202 = arith.constant 0 : index
    %393 = vector.load %arg26[%c0_201, %c0_202] : memref<1x128xf32, #tpu.memory_space<vmem>>, vector<1x128xf32>
    %394 = vector.broadcast %393 : vector<1x128xf32> to vector<16x128xf32>
    %395 = arith.addf %392, %394 : vector<16x128xf32>
    %c0_203 = arith.constant 0 : index
    %c0_204 = arith.constant 0 : index
    %396 = vector.load %arg27[%c0_203, %c0_204] : memref<16x128xf32, #tpu.memory_space<vmem>>, vector<16x128xf32>
    tpu.vector_store %arg27[%c0_203, %c0_204], %395 {strides = array<i32>} : memref<16x128xf32, #tpu.memory_space<vmem>>, vector<16x128xf32>,
    return
  }
  func.func @transform_0(%arg0: i32) -> (i32, i32) {
    %c0_i32 = arith.constant 0 : i32
    %c0_i32_0 = arith.constant 0 : i32
    return %arg0, %c0_i32 : i32, i32
  }
  func.func @transform_1(%arg0: i32) -> (i32, i32) {
    %c0_i32 = arith.constant 0 : i32
    %c0_i32_0 = arith.constant 0 : i32
    %c0_i32_1 = arith.constant 0 : i32
    return %c0_i32, %c0_i32_0 : i32, i32
  }
  func.func @transform_2(%arg0: i32) -> (i32, i32) {
    %c0_i32 = arith.constant 0 : i32
    %c0_i32_0 = arith.constant 0 : i32
    %c0_i32_1 = arith.constant 0 : i32
    return %c0_i32, %c0_i32_0 : i32, i32
  }
  func.func @transform_3(%arg0: i32) -> (i32, i32, i32) {
    %c0_i32 = arith.constant 0 : i32
    %c0_i32_0 = arith.constant 0 : i32
    %c0_i32_1 = arith.constant 0 : i32
    %c0_i32_2 = arith.constant 0 : i32
    return %c0_i32, %c0_i32_0, %c0_i32_1 : i32, i32, i32
  }
  func.func @transform_4(%arg0: i32) -> (i32, i32, i32) {
    %c0_i32 = arith.constant 0 : i32
    %c0_i32_0 = arith.constant 0 : i32
    %c0_i32_1 = arith.constant 0 : i32
    %c0_i32_2 = arith.constant 0 : i32
    return %c0_i32, %c0_i32_0, %c0_i32_1 : i32, i32, i32
  }
  func.func @transform_5(%arg0: i32) -> (i32, i32, i32) {
    %c0_i32 = arith.constant 0 : i32
    %c0_i32_0 = arith.constant 0 : i32
    %c0_i32_1 = arith.constant 0 : i32
    %c0_i32_2 = arith.constant 0 : i32
    return %c0_i32, %c0_i32_0, %c0_i32_1 : i32, i32, i32
  }
  func.func @transform_6(%arg0: i32) -> (i32, i32, i32) {
    %c0_i32 = arith.constant 0 : i32
    %c0_i32_0 = arith.constant 0 : i32
    %c0_i32_1 = arith.constant 0 : i32
    %c0_i32_2 = arith.constant 0 : i32
    return %c0_i32, %c0_i32_0, %c0_i32_1 : i32, i32, i32
  }
  func.func @transform_7(%arg0: i32) -> (i32, i32, i32) {
    %c0_i32 = arith.constant 0 : i32
    %c0_i32_0 = arith.constant 0 : i32
    %c0_i32_1 = arith.constant 0 : i32
    %c0_i32_2 = arith.constant 0 : i32
    return %c0_i32, %c0_i32_0, %c0_i32_1 : i32, i32, i32
  }
  func.func @transform_8(%arg0: i32) -> (i32, i32, i32) {
    %c0_i32 = arith.constant 0 : i32
    %c0_i32_0 = arith.constant 0 : i32
    %c0_i32_1 = arith.constant 0 : i32
    %c0_i32_2 = arith.constant 0 : i32
    return %c0_i32, %c0_i32_0, %c0_i32_1 : i32, i32, i32
  }
  func.func @transform_9(%arg0: i32) -> (i32, i32, i32) {
    %c0_i32 = arith.constant 0 : i32
    %c0_i32_0 = arith.constant 0 : i32
    %c0_i32_1 = arith.constant 0 : i32
    %c0_i32_2 = arith.constant 0 : i32
    return %c0_i32, %c0_i32_0, %c0_i32_1 : i32, i32, i32
  }
  func.func @transform_10(%arg0: i32) -> (i32, i32, i32) {
    %c0_i32 = arith.constant 0 : i32
    %c0_i32_0 = arith.constant 0 : i32
    %c0_i32_1 = arith.constant 0 : i32
    %c0_i32_2 = arith.constant 0 : i32
    return %c0_i32, %c0_i32_0, %c0_i32_1 : i32, i32, i32
  }
  func.func @transform_11(%arg0: i32) -> (i32, i32, i32) {
    %c0_i32 = arith.constant 0 : i32
    %c0_i32_0 = arith.constant 0 : i32
    %c0_i32_1 = arith.constant 0 : i32
    %c0_i32_2 = arith.constant 0 : i32
    return %c0_i32, %c0_i32_0, %c0_i32_1 : i32, i32, i32
  }
  func.func @transform_12(%arg0: i32) -> (i32, i32, i32) {
    %c0_i32 = arith.constant 0 : i32
    %c0_i32_0 = arith.constant 0 : i32
    %c0_i32_1 = arith.constant 0 : i32
    %c0_i32_2 = arith.constant 0 : i32
    return %c0_i32, %c0_i32_0, %c0_i32_1 : i32, i32, i32
  }
  func.func @transform_13(%arg0: i32) -> (i32, i32, i32) {
    %c0_i32 = arith.constant 0 : i32
    %c0_i32_0 = arith.constant 0 : i32
    %c0_i32_1 = arith.constant 0 : i32
    %c0_i32_2 = arith.constant 0 : i32
    return %c0_i32, %c0_i32_0, %c0_i32_1 : i32, i32, i32
  }
  func.func @transform_14(%arg0: i32) -> (i32, i32, i32) {
    %c0_i32 = arith.constant 0 : i32
    %c0_i32_0 = arith.constant 0 : i32
    %c0_i32_1 = arith.constant 0 : i32
    %c0_i32_2 = arith.constant 0 : i32
    return %c0_i32, %c0_i32_0, %c0_i32_1 : i32, i32, i32
  }
  func.func @transform_15(%arg0: i32) -> (i32, i32, i32) {
    %c0_i32 = arith.constant 0 : i32
    %c0_i32_0 = arith.constant 0 : i32
    %c0_i32_1 = arith.constant 0 : i32
    %c0_i32_2 = arith.constant 0 : i32
    return %c0_i32, %c0_i32_0, %c0_i32_1 : i32, i32, i32
  }
  func.func @transform_16(%arg0: i32) -> (i32, i32, i32) {
    %c0_i32 = arith.constant 0 : i32
    %c0_i32_0 = arith.constant 0 : i32
    %c0_i32_1 = arith.constant 0 : i32
    %c0_i32_2 = arith.constant 0 : i32
    return %c0_i32, %c0_i32_0, %c0_i32_1 : i32, i32, i32
  }
  func.func @transform_17(%arg0: i32) -> (i32, i32, i32) {
    %c0_i32 = arith.constant 0 : i32
    %c0_i32_0 = arith.constant 0 : i32
    %c0_i32_1 = arith.constant 0 : i32
    %c0_i32_2 = arith.constant 0 : i32
    return %c0_i32, %c0_i32_0, %c0_i32_1 : i32, i32, i32
  }
  func.func @transform_18(%arg0: i32) -> (i32, i32, i32) {
    %c0_i32 = arith.constant 0 : i32
    %c0_i32_0 = arith.constant 0 : i32
    %c0_i32_1 = arith.constant 0 : i32
    %c0_i32_2 = arith.constant 0 : i32
    return %c0_i32, %c0_i32_0, %c0_i32_1 : i32, i32, i32
  }
  func.func @transform_19(%arg0: i32) -> (i32, i32) {
    %c0_i32 = arith.constant 0 : i32
    %c0_i32_0 = arith.constant 0 : i32
    %c0_i32_1 = arith.constant 0 : i32
    return %c0_i32, %c0_i32_0 : i32, i32
  }
  func.func @transform_20(%arg0: i32) -> (i32, i32) {
    %c0_i32 = arith.constant 0 : i32
    %c0_i32_0 = arith.constant 0 : i32
    %c0_i32_1 = arith.constant 0 : i32
    return %c0_i32, %c0_i32_0 : i32, i32
  }
  func.func @transform_21(%arg0: i32) -> (i32, i32) {
    %c0_i32 = arith.constant 0 : i32
    %c0_i32_0 = arith.constant 0 : i32
    %c0_i32_1 = arith.constant 0 : i32
    return %c0_i32, %c0_i32_0 : i32, i32
  }
  func.func @transform_22(%arg0: i32) -> (i32, i32) {
    %c0_i32 = arith.constant 0 : i32
    %c0_i32_0 = arith.constant 0 : i32
    %c0_i32_1 = arith.constant 0 : i32
    return %c0_i32, %c0_i32_0 : i32, i32
  }
  func.func @transform_23(%arg0: i32) -> (i32, i32) {
    %c0_i32 = arith.constant 0 : i32
    %c0_i32_0 = arith.constant 0 : i32
    %c0_i32_1 = arith.constant 0 : i32
    return %c0_i32, %c0_i32_0 : i32, i32
  }
  func.func @transform_24(%arg0: i32) -> (i32, i32) {
    %c0_i32 = arith.constant 0 : i32
    %c0_i32_0 = arith.constant 0 : i32
    %c0_i32_1 = arith.constant 0 : i32
    return %c0_i32, %c0_i32_0 : i32, i32
  }
  func.func @transform_25(%arg0: i32) -> (i32, i32) {
    %c0_i32 = arith.constant 0 : i32
    %c0_i32_0 = arith.constant 0 : i32
    %c0_i32_1 = arith.constant 0 : i32
    return %c0_i32, %c0_i32_0 : i32, i32
  }
  func.func @transform_26(%arg0: i32) -> (i32, i32) {
    %c0_i32 = arith.constant 0 : i32
    %c0_i32_0 = arith.constant 0 : i32
    return %arg0, %c0_i32 : i32, i32
  }
}

</mosaic_0001>

<bundles_post_ra>
// kernel: tpu_custom_call.1
= control target key start
LH: loop header
LB: loop body
LE: loop exit
PB: predicated region body
PF: predicated region fallthrough
CT: control target
= control target key end

     0   :  { %s11441_s0 = inlined_call_operand.vmem [shape: f32[16,32], index: 0, kind: input, shape index: {}]   ;;  %s11442_s1 = inlined_call_operand.vmem [shape: f32[16,32], index: 1, kind: input, shape index: {}]   ;;  %s11443_s2 = inlined_call_operand.vmem [shape: f32[16,16], index: 2, kind: input, shape index: {}]   ;;  %s11444_s3 = inlined_call_operand.vmem [shape: f32[2,32,32], index: 3, kind: input, shape index: {}]   ;;  %s11445_s4 = inlined_call_operand.vmem [shape: f32[2,1,32], index: 4, kind: input, shape index: {}]   ;;  %s11446_s5 = inlined_call_operand.vmem [shape: f32[2,32,32], index: 5, kind: input, shape index: {}]   ;;  %s11447_s6 = inlined_call_operand.vmem [shape: f32[2,1,32], index: 6, kind: input, shape index: {}]   ;;  %s11448_s7 = inlined_call_operand.vmem [shape: f32[2,32,32], index: 7, kind: input, shape index: {}]   ;;  %s11449_s8 = inlined_call_operand.vmem [shape: f32[2,1,32], index: 8, kind: input, shape index: {}]   ;;  %s11450_s9 = inlined_call_operand.vmem [shape: f32[2,32,32], index: 9, kind: input, shape index: {}]   ;;  %s11451_s10 = inlined_call_operand.vmem [shape: f32[2,1,32], index: 10, kind: input, shape index: {}]   ;;  %s11452_s11 = inlined_call_operand.vmem [shape: f32[2,1,32], index: 11, kind: input, shape index: {}]   ;;  %s11453_s12 = inlined_call_operand.vmem [shape: f32[2,1,32], index: 12, kind: input, shape index: {}]   ;;  %s11454_s13 = inlined_call_operand.vmem [shape: bf16[2,32,2048], index: 13, kind: input, shape index: {}]   ;;  %s11455_s14 = inlined_call_operand.vmem [shape: f32[2,1,2048], index: 14, kind: input, shape index: {}]   ;;  %s11456_s15 = inlined_call_operand.vmem [shape: bf16[2,2048,32], index: 15, kind: input, shape index: {}]   ;;  %s11457_s16 = inlined_call_operand.vmem [shape: f32[2,1,32], index: 16, kind: input, shape index: {}]   ;;  %s11458_s17 = inlined_call_operand.vmem [shape: f32[2,1,32], index: 17, kind: input, shape index: {}]   ;;  %s11459_s18 = inlined_call_operand.vmem [shape: f32[2,1,32], index: 18, kind: input, shape index: {}]   ;;  %s11460_s19 = inlined_call_operand.vmem [shape: f32[16,16], index: 19, kind: input, shape index: {}]   ;;  %s11461_s20 = inlined_call_operand.vmem [shape: f32[32,32], index: 20, kind: input, shape index: {}]   ;;  %s11462_s21 = inlined_call_operand.vmem [shape: f32[1,32], index: 21, kind: input, shape index: {}]   ;;  %s11463_s22 = inlined_call_operand.vmem [shape: f32[32,32], index: 22, kind: input, shape index: {}]   ;;  %s11464_s23 = inlined_call_operand.vmem [shape: f32[1,32], index: 23, kind: input, shape index: {}]   ;;  %s11465_s24 = inlined_call_operand.vmem [shape: f32[32,128], index: 24, kind: input, shape index: {}]   ;;  %s11466_s25 = inlined_call_operand.vmem [shape: f32[1,128], index: 25, kind: input, shape index: {}]   ;;  %s11467_s26 = inlined_call_operand.hbm [shape: f32[16,128], index: 26, kind: output, shape index: {}]  }
   0x1   :  { %11485 = sst [smem:[#allocation5_spill]] %s11441_s0 }
   0x2   :  { %11486 = sst [smem:[#allocation6_spill]] %s11442_s1 }
   0x3   :  { %11487 = sst [smem:[#allocation7_spill]] %s11443_s2 }
   0x4   :  { %11488 = sst [smem:[#allocation8_spill]] %s11444_s3 }
   0x5   :  { %11489 = sst [smem:[#allocation9_spill]] %s11445_s4 }
   0x6   :  { %11490 = sst [smem:[#allocation10_spill]] %s11446_s5 }
   0x7   :  { %11491 = sst [smem:[#allocation11_spill]] %s11447_s6 }
   0x8   :  { %11492 = sst [smem:[#allocation12_spill]] %s11448_s7 }
   0x9   :  { %11493 = sst [smem:[#allocation13_spill]] %s11449_s8 }
   0xa   :  { %11494 = sst [smem:[#allocation14_spill]] %s11450_s9 }
   0xb   :  { %11495 = sst [smem:[#allocation15_spill]] %s11451_s10 }
   0xc   :  { %11496 = sst [smem:[#allocation16_spill]] %s11462_s21 }
   0xd   :  { %11497 = sst [smem:[#allocation17_spill]] %s11464_s23 }
   0xe   :  { %11498 = sst [smem:[#allocation18_spill]] %s11466_s25 }
   0xf   :  { %11499 = sst [smem:[#allocation19_spill]] %s11467_s26 }
  0x10   :  { %s11500_s7 = sld [smem:[#allocation8_spill]]  ;;  %vm104_vm0 = vcmask 261120  }
  0x11   :  { %s11501_s21 = sld [smem:[#allocation10_spill]] }
  0x12   :  { %s11502_s4 = sld [smem:[#allocation5_spill]] }
  0x13   :  { %s11503_s9 = sld [smem:[#allocation6_spill]] }
  0x14   :  { %s11504_s27 = sld [smem:[#allocation12_spill]] }
  0x16   :  { %v96_v0 = vld [vmem:[%s11500_s7 + $0x18] sm:$0xff]  ;;  %v95_v2 = vld [vmem:[%s11500_s7 + $0x10] sm:$0xff]  ;;  %v94_v4 = vld [vmem:[%s11500_s7 + $0x8] sm:$0xff] }
  0x17   :  { %v189_v1 = vld [vmem:[%s11501_s21 + $0x18] sm:$0xff]  ;;  %8903 = vmatprep.subr.mxu0 %v96_v0  ;;  %v188_v3 = vld [vmem:[%s11501_s21 + $0x10] sm:$0xff]  ;;  %v187_v5 = vld [vmem:[%s11501_s21 + $0x8] sm:$0xff] }
  0x18   :  { %8914 = vmatprep.subr.mxu1 %v189_v1  ;;  %8904 = vmatpush3.msra.mxu0 %v96_v0  ;;  %v93_v6 = vld [vmem:[%s11500_s7] sm:$0xff]  ;;  %v86_v10 = vld [vmem:[%s11502_s4 + $0x8] sm:$0xff] }
  0x19   :  { %8915 = vmatpush3.msra.mxu1 %v189_v1  ;;  %v186_v7 = vld [vmem:[%s11501_s21] sm:$0xff]  ;;  %8905 = vmatprep.subr.mxu0 %v95_v2  ;;  %v88_v11 = vld [vmem:[%s11503_s9 + $0x8] sm:$0xff] }
  0x1a   :  { %v85_v8 = vld [vmem:[%s11502_s4] sm:$0xff]  ;;  %8916 = vmatprep.subr.mxu1 %v188_v3  ;;  %8906 = vmatpush3.msra.mxu0 %v95_v2  ;;  %v9715_v13 = vadd.f32 %v88_v11, %v86_v10  ;;  %v275_v14 = vld [vmem:[%s11504_s27 + $0x18] sm:$0xff]  ;;  %v274_v15 = vld [vmem:[%s11504_s27 + $0x10] sm:$0xff] }
  0x1b   :  { %v87_v9 = vld [vmem:[%s11503_s9] sm:$0xff]  ;;  %8917 = vmatpush3.msra.mxu1 %v188_v3  ;;  %8907 = vmatprep.subr.mxu0 %v94_v4  ;;  %v273_v16 = vld [vmem:[%s11504_s27 + $0x8] sm:$0xff] }
  0x1c   :  { %v9713_v12 = vadd.f32 %v87_v9, %v85_v8  ;;  %8918 = vmatprep.subr.mxu1 %v187_v5  ;;  %8908 = vmatpush3.msra.mxu0 %v94_v4  ;;  %v272_v17 = vld [vmem:[%s11504_s27] sm:$0xff] }
  0x1d   :  { %8919 = vmatpush3.msra.mxu1 %v187_v5  ;;  %8909 = vmatprep.subr.mxu0 %v93_v6 }
  0x1e   :  { %8920 = vmatprep.subr.mxu1 %v186_v7  ;;  %8910 = vmatpush3.msra.mxu0 %v93_v6 }
  0x1f   :  { %8911 = vmatprep.mubr.msk.f32.mxu0 %vm104_vm0, %v9713_v12  ;;  %8921 = vmatpush3.msra.mxu1 %v186_v7 }
  0x20   :  { %8922 = vmatprep.mubr.msk.f32.mxu1 %vm104_vm0, %v9713_v12  ;;  %8912 = vmatmul.mubr.msk.f32.vlgmr.msra.gmra.mxu0 %vm104_vm0, %v9715_v13 }
  0x21   :  { %8923 = vmatmul.mubr.msk.f32.vlgmr.msra.gmra.mxu1 %vm104_vm0, %v9715_v13  ;;  %8933 = vmatprep.mubr.msk.f32.mxu0 %vm104_vm0, %v9713_v12 }
  0x22   :  { %8925 = vmatprep.subr.mxu0 %v275_v14 }
  0x23   :  { %8926 = vmatpush3.msra.mxu0 %v275_v14 }
  0x24   :  { %8927 = vmatprep.subr.mxu0 %v274_v15 }
  0x25   :  { %8928 = vmatpush3.msra.mxu0 %v274_v15 }
  0x26   :  { %8929 = vmatprep.subr.mxu0 %v273_v16 }
  0x27   :  { %8930 = vmatpush3.msra.mxu0 %v273_v16 }
  0x28   :  { %8931 = vmatprep.subr.mxu0 %v272_v17 }
  0x29   :  { %8932 = vmatpush3.msra.mxu0 %v272_v17 }
  0x2a   :  { %8934 = vmatmul.mubr.msk.f32.vlgmr.msra.gmra.mxu0 %vm104_vm0, %v9715_v13 }
  0x2b   :  { %31 = vsyncpa [#allocation3], 0  ;;  %s11505_s2 = sld [smem:[#allocation11_spill]]  ;;  %vm362_vm1 = vcmask 64512   ;;  %s11483_s1 = smov 120   ;;  %vm454_vm2 = vcmask 130048  }
  0x2c   :  { %s11506_s6 = sld [smem:[#allocation9_spill]]  ;;  %s11481_s5 = smov 112  }
  0x2d   :  { %s11507_s8 = sld [smem:[#allocation13_spill]]  ;;  %s11479_s4 = smov 104  }
  0x2e   :  { %s11508_s0 = sld [smem:[#allocation7_spill]]  ;;  %s9539_s23 = smov [#allocation2]  }
  0x2f   :  { %s11509_s28 = sld [smem:[#allocation14_spill]] }
  0x30   :  { %s11510_s10 = sld [smem:[#allocation15_spill]] }
  0x31   :  { %v7646_v18 = vld [vmem:[%s11505_s2] ss:$0 sm:$0xff] }
  0x32   :  { %v7643_v20 = vld [vmem:[%s11506_s6] ss:$0 sm:$0xff] }
  0x33   :  { %v7649_v28 = vld [vmem:[%s11507_s8] ss:$0 sm:$0xff] }
  0x34   :  { %v9791_v36 = vld [vmem:[%s11508_s0 + $0x8] sm:$0xff]  ;;  %v9796_v39 = vld [vmem:[%s11508_s0] sm:$0xff] }
  0x35   :  { %v359_v7 = vld [vmem:[%s11509_s28 + $0x8] sm:$0xff]  ;;  %v358_v17 = vld [vmem:[%s11509_s28] sm:$0xff] }
  0xe0   :  { %v8913_v19 = vpop.f32.mrf.mxu0 }
  0xe1   :  { %v8924_v21 = vpop.f32.mrf.mxu1  ;;  %v9765_v27 = vadd.f32 %v8913_v19, %v7643_v20 }
  0xe2   :  { %v9747_v22 = vadd.f32 %v8924_v21, %v7646_v18  ;;  %v177_v23 = vpop.f32.mrf.mxu0 }
  0xe3   :  { %v263_v24 = vpop.f32.mrf.mxu1  ;;  %v9749_v25 = vadd.f32 %v7643_v20, %v177_v23 }
  0xe4   :  { %v9751_v26 = vadd.f32 %v7646_v18, %v263_v24  ;;  %564 = vrot.lane.b32.xlu0 %v9747_v22, %s11483_s1  ;;  %8936 = vmatprep.subr.msk.mxu1 %vm362_vm1, %v9747_v22 }
  0xe5   :  { %8937 = vmatpush3.xpose.msk.msra.mxu1 %vm362_vm1, %v9747_v22  ;;  %558 = vrot.lane.b32.xlu1 %v9749_v25, %s11483_s1 }
  0xe6   :  { %8938 = vmatprep.subr.msk.mxu1 %vm362_vm1, %v9751_v26  ;;  %8940 = vmatprep.mubr.msk.f32.mxu1 %vm362_vm1, %v9749_v25 }
  0xe8   :  { %562 = vrot.lane.b32.xlu0 %v9751_v26, %s11483_s1 }
  0xe9   :  { %8939 = vmatpush3.xpose.msk.msra.mxu1 %vm362_vm1, %v9751_v26  ;;  %560 = vrot.lane.b32.xlu1 %v9765_v27, %s11483_s1 }
  0xea   :  { %v8935_v29 = vpop.f32.mrf.mxu0 }
  0xeb   :  { %v9778_v30 = vadd.f32 %v8935_v29, %v7649_v28 }
  0xec   :  { %8941 = vmatmul.mubr.msk.f32.vlgmr.msra.gmra.mxu1 %vm362_vm1, %v9765_v27  ;;  %v349_v45 = vpop.f32.mrf.mxu0 }
  0xed   :  { %8943 = vmatprep.subr.mxu0 %v9778_v30  ;;  %v9806_v46 = vadd.f32 %v7649_v28, %v349_v45 }
  0xee   :  { %8944 = vmatpush3.msra.mxu0 %v9778_v30 }
  0xef   :  { %8945 = vmatprep.subr.mxu0 %v9806_v46 }
  0xf0   :  { %8946 = vmatpush3.msra.mxu0 %v9806_v46 }
 0x156   :  { %v565_v31 = vpop.permute.xlu0 %564 }
 0x157   :  { %8950 = vmatprep.subr.msk.mxu1 %vm362_vm1, %v565_v31  ;;  %v559_v32 = vpop.permute.xlu1 %558 }
 0x158   :  { %8951 = vmatpush3.xpose.msk.msra.mxu1 %vm362_vm1, %v565_v31  ;;  %8954 = vmatprep.mubr.msk.f32.mxu1 %vm362_vm1, %v559_v32 }
 0x15a   :  { %v563_v33 = vpop.permute.xlu0 %562 }
 0x15b   :  { %8952 = vmatprep.subr.msk.mxu1 %vm362_vm1, %v563_v33  ;;  %v561_v34 = vpop.permute.xlu1 %560 }
 0x15c   :  { %8953 = vmatpush3.xpose.msk.msra.mxu1 %vm362_vm1, %v563_v33 }
 0x15d   :  { %8969 = vmatprep.subr.mxu1 %v358_v17 }
 0x15f   :  { %8955 = vmatmul.mubr.msk.f32.vlgmr.msra.gmra.mxu1 %vm362_vm1, %v561_v34 }
 0x160   :  { %8970 = vmatpush3.msra.mxu1 %v358_v17 }
 0x1ac   :  { %v8942_v35 = vpop.f32.mrf.mxu1 }
 0x1ad   :  { %v451_v37 = vmul.f32 0.35355338, %v8942_v35 }
 0x1ae   :  { %v441_v38 = vpop.f32.mrf.mxu1 }
 0x1af   :  { %v450_v40 = vmul.f32 0.35355338, %v441_v38  ;;  %v453_v41 = vadd.f32 %v451_v37, %v9791_v36 }
 0x1b1   :  { %v458_v42 = vsel %vm454_vm2, %v453_v41, -inf  ;;  %v452_v43 = vadd.f32 %v450_v40, %v9796_v39 }
 0x1b2   :  { %459 = vmax.xlane.f32.xlu1 %v458_v42 }
 0x1b3   :  { %v455_v44 = vsel %vm454_vm2, %v452_v43, -inf }
 0x1b4   :  { %456 = vmax.xlane.f32.xlu0 %v455_v44 }
 0x1c3   :  { %675 = vrot.lane.b32.xlu1 %v9778_v30, %s11483_s1 }
 0x1c7   :  { %932 = vrot.lane.b32.xlu1 %v9747_v22, %s11481_s5 }
 0x1cb   :  { %926 = vrot.lane.b32.xlu1 %v9749_v25, %s11481_s5 }
 0x21f   :  { %v8956_v47 = vpop.f32.mrf.mxu1 }
 0x220   :  { %v650_v48 = vmul.f32 0.35355338, %v8956_v47 }
 0x221   :  { %v640_v49 = vpop.f32.mrf.mxu1 }
 0x222   :  { %v649_v50 = vmul.f32 0.35355338, %v640_v49  ;;  %v652_v51 = vadd.f32 %v650_v48, %v9791_v36 }
 0x224   :  { %v656_v52 = vsel %vm454_vm2, %v652_v51, -inf  ;;  %v651_v53 = vadd.f32 %v649_v50, %v9796_v39 }
 0x225   :  { %657 = vmax.xlane.f32.xlu0 %v656_v52 }
 0x226   :  { %v653_v54 = vsel %vm454_vm2, %v651_v53, -inf }
 0x229   :  { %654 = vmax.xlane.f32.xlu0 %v653_v54 }
 0x23b   :  { %v460_v55 = vpop.xlane.xlu1 %459 }
 0x23c   :  { %v462_v56 = vsub.f32 %v453_v41, %v460_v55 }
 0x23d   :  { %v457_v57 = vpop.xlane.xlu0 %456 }
 0x23e   :  { %v461_v58 = vsub.f32 %v452_v43, %v457_v57  ;;  %v465_v59 = vmul.f32 1.442695, %v462_v56 }
 0x23f   :  { %v676_v60 = vpop.permute.xlu1 %675  ;;  %673 = vrot.lane.b32.xlu0 %v9806_v46, %s11483_s1  ;;  %s11513_s1 = smov 104  }
 0x240   :  { %v463_v61 = vmul.f32 1.442695, %v461_v58  ;;  %8957 = vmatprep.subr.mxu0 %v676_v60 }
 0x242   :  { %9431 = vpow2.f32 %v463_v61 }
 0x243   :  { %9433 = vpow2.f32 %v465_v59  ;;  %v933_v14 = vpop.permute.xlu1 %932 }
 0x247   :  { %v927_v18 = vpop.permute.xlu1 %926 }
 0x24f   :  { %v9432_v62 = vpop.eup %9431 }
 0x250   :  { %v9434_v63 = vpop.eup %9433  ;;  %8947 = vmatprep.mubr.msk.f32.mxu0 %vm454_vm2, %v9432_v62  ;;  %v467_v15 = vsel %vm454_vm2, %v9432_v62, 0.0 }
 0x251   :  { %8948 = vmatmul.mubr.msk.f32.vlgmr.msra.gmra.mxu0 %vm454_vm2, %v9434_v63  ;;  %v470_v16 = vsel %vm454_vm2, %v9434_v63, 0.0 }
 0x252   :  { %8958 = vmatpush3.msra.mxu0 %v676_v60 }
 0x2ae   :  { %v658_v0 = vpop.xlane.xlu0 %657 }
 0x2af   :  { %v660_v1 = vsub.f32 %v652_v51, %v658_v0 }
 0x2b1   :  { %v663_v2 = vmul.f32 1.442695, %v660_v1 }
 0x2b2   :  { %v655_v3 = vpop.xlane.xlu0 %654 }
 0x2b3   :  { %9435 = vpow2.f32 %v663_v2  ;;  %v659_v4 = vsub.f32 %v651_v53, %v655_v3 }
 0x2b5   :  { %v661_v5 = vmul.f32 1.442695, %v659_v4 }
 0x2b6   :  { %v674_v6 = vpop.permute.xlu0 %673 }
 0x2b7   :  { %9437 = vpow2.f32 %v661_v5  ;;  %8959 = vmatprep.subr.mxu0 %v674_v6 }
 0x2b8   :  { %8960 = vmatpush3.msra.mxu0 %v674_v6 }
 0x2b9   :  { %8964 = vmatprep.subr.mxu0 %v359_v7 }
 0x2c0   :  { %v9436_v8 = vpop.eup %9435 }
 0x2c1   :  { %v668_v9 = vsel %vm454_vm2, %v9436_v8, 0.0 }
 0x2c2   :  { %669 = vadd.xlane.f32.xlu0 %v668_v9 }
 0x2c4   :  { %v9438_v10 = vpop.eup %9437 }
 0x2c5   :  { %8961 = vmatprep.mubr.msk.f32.mxu0 %vm454_vm2, %v9438_v10  ;;  %v665_v11 = vsel %vm454_vm2, %v9438_v10, 0.0 }
 0x2c6   :  { %666 = vadd.xlane.f32.xlu1 %v665_v11  ;;  %8962 = vmatmul.mubr.msk.f32.vlgmr.msra.gmra.mxu0 %vm454_vm2, %v9436_v8  ;;  %v360_v11 = vld [vmem:[%s11509_s28 + $0x10] sm:$0xff] }
 0x2c7   :  { %8965 = vmatpush3.msra.mxu0 %v359_v7 }
 0x2c8   :  { %8974 = vmatprep.subr.msk.mxu0 %vm362_vm1, %v933_v14 }
 0x2d7   :  { %928 = vrot.lane.b32.xlu1 %v9765_v27, %s11481_s5 }
 0x2d8   :  { %930 = vrot.lane.b32.xlu0 %v9751_v26, %s11481_s5 }
 0x2db   :  { %1217 = vrot.lane.b32.xlu1 %v9751_v26, %s11479_s4 }
 0x2dc   :  { %1219 = vrot.lane.b32.xlu0 %v9747_v22, %s11479_s4 }
 0x2df   :  { %1215 = vrot.lane.b32.xlu1 %v9765_v27, %s11479_s4 }
 0x2e0   :  { %1213 = vrot.lane.b32.xlu0 %v9749_v25, %s11479_s4 }
 0x2ff   :  { %468 = vadd.xlane.f32.xlu0 %v467_v15 }
 0x303   :  { %471 = vadd.xlane.f32.xlu1 %v470_v16 }
 0x311   :  { %v8949_v24 = vpop.f32.mrf.mxu0 }
 0x313   :  { %v545_v26 = vpop.f32.mrf.mxu0 }
 0x314   :  { %1041 = vrot.lane.b32.xlu1 %v9778_v30, %s11481_s5 }
 0x34b   :  { %v670_v19 = vpop.xlane.xlu0 %669 }
 0x34f   :  { %v667_v20 = vpop.xlane.xlu1 %666  ;;  %v931_v21 = vpop.permute.xlu0 %930 }
 0x350   :  { %9439 = vrcp.f32 %v667_v20 }
 0x351   :  { %9441 = vrcp.f32 %v670_v19 }
 0x353   :  { %v929_v22 = vpop.permute.xlu1 %928  ;;  %v1220_v23 = vpop.permute.xlu0 %1219 }
 0x357   :  { %v1218_v25 = vpop.permute.xlu1 %1217  ;;  %v1214_v27 = vpop.permute.xlu0 %1213 }
 0x35b   :  { %v1216_v29 = vpop.permute.xlu1 %1215 }
 0x35d   :  { %v9440_v31 = vpop.eup %9439 }
 0x35e   :  { %v9442_v34 = vpop.eup %9441 }
 0x386   :  { %v8963_v28 = vpop.f32.mrf.mxu0 }
 0x387   :  { %v763_v37 = vmul.f32 %v9442_v34, %v8963_v28  ;;  %v361_v34 = vld [vmem:[%s11509_s28 + $0x18] sm:$0xff] }
 0x388   :  { %v751_v32 = vpop.f32.mrf.mxu0  ;;  %v469_v33 = vpop.xlane.xlu0 %468 }
 0x389   :  { %v762_v35 = vmul.f32 %v9440_v31, %v751_v32  ;;  %9443 = vrcp.f32 %v469_v33 }
 0x38b   :  { %8966 = vmatprep.mubr.msk.f32.mxu0 %vm362_vm1, %v762_v35 }
 0x38c   :  { %v472_v38 = vpop.xlane.xlu1 %471  ;;  %8967 = vmatmul.mubr.msk.f32.vlgmr.msra.gmra.mxu0 %vm362_vm1, %v763_v37 }
 0x38d   :  { %9445 = vrcp.f32 %v472_v38  ;;  %8975 = vmatpush3.xpose.msk.msra.mxu0 %vm362_vm1, %v933_v14  ;;  %8978 = vmatprep.mubr.msk.f32.mxu0 %vm362_vm1, %v927_v18 }
 0x38e   :  { %8976 = vmatprep.subr.msk.mxu0 %vm362_vm1, %v931_v21 }
 0x390   :  { %v1042_v40 = vpop.permute.xlu1 %1041 }
 0x391   :  { %8977 = vmatpush3.xpose.msk.msra.mxu0 %vm362_vm1, %v931_v21  ;;  %8981 = vmatprep.subr.mxu1 %v1042_v40 }
 0x392   :  { %8993 = vmatprep.subr.msk.mxu0 %vm362_vm1, %v1220_v23 }
 0x394   :  { %8979 = vmatmul.mubr.msk.f32.vlgmr.msra.gmra.mxu0 %vm362_vm1, %v929_v22 }
 0x395   :  { %8994 = vmatpush3.xpose.msk.msra.mxu0 %vm362_vm1, %v1220_v23  ;;  %8997 = vmatprep.mubr.msk.f32.mxu0 %vm362_vm1, %v1214_v27 }
 0x396   :  { %v9444_v41 = vpop.eup %9443  ;;  %8995 = vmatprep.subr.msk.mxu0 %vm362_vm1, %v1218_v25 }
 0x397   :  { %v556_v42 = vmul.f32 %v9444_v41, %v545_v26 }
 0x399   :  { %8996 = vmatpush3.xpose.msk.msra.mxu0 %vm362_vm1, %v1218_v25  ;;  %8971 = vmatprep.mubr.msk.f32.mxu1 %vm362_vm1, %v556_v42 }
 0x39a   :  { %v9446_v43 = vpop.eup %9445 }
 0x39b   :  { %v557_v44 = vmul.f32 %v9446_v43, %v8949_v24 }
 0x39c   :  { %8998 = vmatmul.mubr.msk.f32.vlgmr.msra.gmra.mxu0 %vm362_vm1, %v1216_v29 }
 0x39d   :  { %8972 = vmatmul.mubr.msk.f32.vlgmr.msra.gmra.mxu1 %vm362_vm1, %v557_v44 }
 0x39e   :  { %8982 = vmatpush3.msra.mxu1 %v1042_v40 }
 0x44c   :  { %v8968_v45 = vpop.f32.mrf.mxu0 }
 0x44e   :  { %v9862_v47 = vpop.f32.mrf.mxu0 }
 0x454   :  { %v8980_v48 = vpop.f32.mrf.mxu0 }
 0x455   :  { %v1018_v49 = vmul.f32 0.35355338, %v8980_v48 }
 0x456   :  { %v1008_v50 = vpop.f32.mrf.mxu0 }
 0x457   :  { %v1017_v51 = vmul.f32 0.35355338, %v1008_v50  ;;  %v1020_v52 = vadd.f32 %v1018_v49, %v9791_v36 }
 0x459   :  { %v1024_v53 = vsel %vm454_vm2, %v1020_v52, -inf  ;;  %v1019_v54 = vadd.f32 %v1017_v51, %v9796_v39 }
 0x45a   :  { %1025 = vmax.xlane.f32.xlu0 %v1024_v53 }
 0x45b   :  { %v1021_v56 = vsel %vm454_vm2, %v1019_v54, -inf }
 0x45c   :  { %v8999_v55 = vpop.f32.mrf.mxu0 }
 0x45d   :  { %v8973_v57 = vpop.f32.mrf.mxu1  ;;  %v1305_v63 = vmul.f32 0.35355338, %v8999_v55 }
 0x45e   :  { %1022 = vmax.xlane.f32.xlu0 %v1021_v56  ;;  %v9868_v58 = vadd.f32 %v8973_v57, %v8968_v45  ;;  %v1295_v59 = vpop.f32.mrf.mxu0 }
 0x45f   :  { %v1304_v60 = vmul.f32 0.35355338, %v1295_v59  ;;  %v1307_v0 = vadd.f32 %v1305_v63, %v9791_v36  ;;  %v917_v25 = vpop.f32.mrf.mxu1 }
 0x460   :  { %v918_v40 = vadd.f32 %v917_v25, %v9862_v47  ;;  %v7684_v47 = vld [vmem:[%s11510_s10] ss:$0 sm:$0xff]  ;;  %v1584_v25 = vld [vmem:[%s11454_s13 + $0xd8] sm:$0xff] }
 0x461   :  { %v1306_v61 = vadd.f32 %v1304_v60, %v9796_v39  ;;  %v1311_v1 = vsel %vm454_vm2, %v1307_v0, -inf }
 0x463   :  { %v1308_v62 = vsel %vm454_vm2, %v1306_v61, -inf }
 0x464   :  { %1309 = vmax.xlane.f32.xlu1 %v1308_v62 }
 0x474   :  { %1039 = vrot.lane.b32.xlu0 %v9806_v46, %s11481_s5  ;;  %s11516_s5 = sld [smem:[#allocation18_spill]] }
 0x493   :  { %1312 = vmax.xlane.f32.xlu0 %v1311_v1 }
 0x4e3   :  { %v1026_v2 = vpop.xlane.xlu0 %1025 }
 0x4e4   :  { %v1028_v3 = vsub.f32 %v1020_v52, %v1026_v2 }
 0x4e6   :  { %v1031_v4 = vmul.f32 1.442695, %v1028_v3 }
 0x4e7   :  { %v1023_v5 = vpop.xlane.xlu0 %1022 }
 0x4e8   :  { %9447 = vpow2.f32 %v1031_v4  ;;  %v1027_v6 = vsub.f32 %v1019_v54, %v1023_v5 }
 0x4ea   :  { %v1029_v7 = vmul.f32 1.442695, %v1027_v6  ;;  %v1573_v6 = vld [vmem:[%s11454_s13 + $0x80] sm:$0xff] }
 0x4eb   :  { %v1040_v39 = vpop.permute.xlu0 %1039 }
 0x4ec   :  { %9449 = vpow2.f32 %v1029_v7  ;;  %8983 = vmatprep.subr.mxu1 %v1040_v39  ;;  %v1581_v7 = vld [vmem:[%s11454_s13 + $0xc0] sm:$0xff] }
 0x4ed   :  { %8984 = vmatpush3.msra.mxu1 %v1040_v39  ;;  %v1310_v14 = vpop.xlane.xlu1 %1309  ;;  %v1574_v39 = vld [vmem:[%s11454_s13 + $0x88] sm:$0xff] }
 0x4ee   :  { %8988 = vmatprep.subr.mxu1 %v360_v11  ;;  %v1314_v15 = vsub.f32 %v1306_v61, %v1310_v14  ;;  %v1557_v14 = vld [vmem:[%s11454_s13] sm:$0xff] }
 0x4f0   :  { %v1316_v16 = vmul.f32 1.442695, %v1314_v15  ;;  %v1565_v15 = vld [vmem:[%s11454_s13 + $0x40] sm:$0xff] }
 0x4f2   :  { %9451 = vpow2.f32 %v1316_v16  ;;  %v1558_v16 = vld [vmem:[%s11454_s13 + $0x8] sm:$0xff] }
 0x4f5   :  { %v9448_v8 = vpop.eup %9447 }
 0x4f6   :  { %v1036_v9 = vsel %vm454_vm2, %v9448_v8, 0.0 }
 0x4f7   :  { %1037 = vadd.xlane.f32.xlu0 %v1036_v9  ;;  %v1582_v9 = vld [vmem:[%s11454_s13 + $0xc8] sm:$0xff] }
 0x4f9   :  { %v9450_v10 = vpop.eup %9449 }
 0x4fa   :  { %8985 = vmatprep.mubr.msk.f32.mxu1 %vm454_vm2, %v9450_v10  ;;  %v1033_v36 = vsel %vm454_vm2, %v9450_v10, 0.0  ;;  %v7703_v10 = vcombine.low %v1573_v6, %v1581_v7 }
 0x4fb   :  { %1034 = vadd.xlane.f32.xlu1 %v1033_v36  ;;  %8986 = vmatmul.mubr.msk.f32.vlgmr.msra.gmra.mxu1 %vm454_vm2, %v9448_v8  ;;  %v7704_v8 = vcombine.high %v1573_v6, %v1581_v7  ;;  %v7705_v36 = vcombine.low %v1574_v39, %v1582_v9  ;;  %v1579_v6 = vld [vmem:[%s11454_s13 + $0xb0] sm:$0xff] }
 0x4fc   :  { %8989 = vmatpush3.msra.mxu1 %v360_v11  ;;  %v7706_v11 = vcombine.high %v1574_v39, %v1582_v9  ;;  %v1587_v7 = vld [vmem:[%s11454_s13 + $0xf0] sm:$0xff]  ;;  %v1580_v39 = vld [vmem:[%s11454_s13 + $0xb8] sm:$0xff] }
 0x4fd   :  { %1848 = vmatprep.subr.bf16.mxu0 %v7704_v8  ;;  %v1588_v8 = vld [vmem:[%s11454_s13 + $0xf8] sm:$0xff] }
 0x4fe   :  { %1849 = vmatpush1.bf16.msra.mxu0 %v7703_v10 }
 0x4ff   :  { %v9452_v20 = vpop.eup %9451 }
 0x500   :  { %v1320_v22 = vsel %vm454_vm2, %v9452_v20, 0.0 }
 0x50c   :  { %1328 = vrot.lane.b32.xlu1 %v9778_v30, %s11479_s4 }
 0x50d   :  { %1326 = vrot.lane.b32.xlu0 %v9806_v46, %s11479_s4  ;;  %s11512_s4 = smov 112  }
 0x51c   :  { %v1313_v17 = vpop.xlane.xlu0 %1312 }
 0x51d   :  { %v1315_v18 = vsub.f32 %v1307_v0, %v1313_v17  ;;  %v7688_v17 = vcombine.high %v1557_v14, %v1565_v15 }
 0x51f   :  { %v1318_v19 = vmul.f32 1.442695, %v1315_v18  ;;  %v1566_v18 = vld [vmem:[%s11454_s13 + $0x48] sm:$0xff]  ;;  %1850 = vmatprep.subr.bf16.mxu0 %v7688_v17  ;;  %v1572_v17 = vld [vmem:[%s11454_s13 + $0x78] sm:$0xff] }
 0x521   :  { %9453 = vpow2.f32 %v1318_v19  ;;  %v7687_v19 = vcombine.low %v1557_v14, %v1565_v15  ;;  %v1563_v14 = vld [vmem:[%s11454_s13 + $0x30] sm:$0xff] }
 0x522   :  { %v1571_v15 = vld [vmem:[%s11454_s13 + $0x70] sm:$0xff] }
 0x523   :  { %1851 = vmatpush1.bf16.msra.mxu0 %v7687_v19  ;;  %v7717_v19 = vcombine.low %v1580_v39, %v1588_v8 }
 0x52e   :  { %v9454_v21 = vpop.eup %9453 }
 0x52f   :  { %v1323_v23 = vsel %vm454_vm2, %v9454_v21, 0.0 }
 0x530   :  { %1321 = vadd.xlane.f32.xlu1 %v1320_v22  ;;  %1324 = vadd.xlane.f32.xlu0 %v1323_v23  ;;  %v1575_v22 = vld [vmem:[%s11454_s13 + $0x90] sm:$0xff] }
 0x531   :  { %v1583_v23 = vld [vmem:[%s11454_s13 + $0xd0] sm:$0xff] }
 0x580   :  { %v1038_v46 = vpop.xlane.xlu0 %1037 }
 0x584   :  { %v1035_v30 = vpop.xlane.xlu1 %1034  ;;  %v1327_v33 = vpop.permute.xlu0 %1326 }
 0x585   :  { %9455 = vrcp.f32 %v1035_v30  ;;  %v1576_v30 = vld [vmem:[%s11454_s13 + $0x98] sm:$0xff] }
 0x586   :  { %9457 = vrcp.f32 %v1038_v46  ;;  %v7708_v46 = vcombine.high %v1575_v22, %v1583_v23 }
 0x588   :  { %v1329_v24 = vpop.permute.xlu1 %1328  ;;  %1934 = vmatprep.subr.bf16.mxu0 %v7708_v46  ;;  %v9176_v46 = vld [vmem:[%s11456_s15 + $0xf8] sm:$0xff]  }
 0x589   :  { %9000 = vmatprep.subr.mxu1 %v1329_v24 }
 0x592   :  { %v9456_v27 = vpop.eup %9455 }
 0x593   :  { %v9458_v29 = vpop.eup %9457 }
 0x5b9   :  { %v1322_v35 = vpop.xlane.xlu1 %1321  ;;  %v1325_v37 = vpop.xlane.xlu0 %1324 }
 0x5ba   :  { %9459 = vrcp.f32 %v1322_v35 }
 0x5bb   :  { %v8987_v26 = vpop.f32.mrf.mxu1  ;;  %9461 = vrcp.f32 %v1325_v37 }
 0x5bc   :  { %v1129_v32 = vmul.f32 %v9458_v29, %v8987_v26  ;;  %v7707_v26 = vcombine.low %v1575_v22, %v1583_v23  ;;  %v7699_v22 = vcombine.low %v1563_v14, %v1571_v15 }
 0x5bd   :  { %v1117_v28 = vpop.f32.mrf.mxu1 }
 0x5be   :  { %v1128_v31 = vmul.f32 %v9456_v27, %v1117_v28  ;;  %v7709_v27 = vcombine.low %v1576_v30, %v1584_v25  ;;  %v7710_v28 = vcombine.high %v1576_v30, %v1584_v25  ;;  %v9175_v30 = vld [vmem:[%s11456_s15 + $0x78] sm:$0xff]  }
 0x5bf   :  { %v9177_v25 = vld [vmem:[%s11456_s15 + $0x38] sm:$0xff]  }
 0x5c0   :  { %8990 = vmatprep.mubr.msk.f32.mxu1 %vm362_vm1, %v1128_v31 }
 0x5c1   :  { %8991 = vmatmul.mubr.msk.f32.vlgmr.msra.gmra.mxu1 %vm362_vm1, %v1129_v32 }
 0x5c2   :  { %9001 = vmatpush3.msra.mxu1 %v1329_v24  ;;  %9004 = vmatprep.mubr.msk.f32.mxu1 %vm454_vm2, %v9452_v20  ;;  %v7689_v20 = vcombine.low %v1558_v16, %v1566_v18  ;;  %v9538_v24 = vmov 0  }
 0x5c3   :  { %9002 = vmatprep.subr.mxu1 %v1327_v33  ;;  %1868 = vmatprep.mubr.bf16.mxu0 %v9538_v24 }
 0x5c4   :  { %9003 = vmatpush3.msra.mxu1 %v1327_v33 }
 0x5c5   :  { %9005 = vmatmul.mubr.msk.f32.vlgmr.msra.gmra.mxu1 %vm454_vm2, %v9454_v21  ;;  %9007 = vmatprep.subr.mxu1 %v361_v34  ;;  %v7690_v21 = vcombine.high %v1558_v16, %v1566_v18  ;;  %v1564_v16 = vld [vmem:[%s11454_s13 + $0x38] sm:$0xff]  ;;  %v7715_v18 = vcombine.low %v1579_v6, %v1587_v7 }
 0x5c6   :  { %9008 = vmatpush3.msra.mxu1 %v361_v34  ;;  %v7701_v23 = vcombine.low %v1564_v16, %v1572_v17 }
 0x5c7   :  { %v9460_v45 = vpop.eup %9459  ;;  %1891 = vmatprep.subr.bf16.mxu1 %v7706_v11  ;;  %v7718_v11 = vcombine.high %v1580_v39, %v1588_v8 }
 0x5c8   :  { %v9462_v49 = vpop.eup %9461 }
 0x681   :  { %v8992_v38 = vpop.f32.mrf.mxu1 }
 0x682   :  { %v1212_v41 = vadd.f32 %v8992_v38, %v9868_v58  ;;  %v7685_v38 = vld [vmem:[%s11452_s11] ss:$0 sm:$0xff] }
 0x683   :  { %v1202_v42 = vpop.f32.mrf.mxu1 }
 0x684   :  { %v1211_v43 = vadd.f32 %v1202_v42, %v918_v40 }
 0x685   :  { %v9006_v44 = vpop.f32.mrf.mxu1 }
 0x686   :  { %v1416_v51 = vmul.f32 %v9462_v49, %v9006_v44  ;;  %v7686_v44 = vld [vmem:[%s11453_s12] ss:$0 sm:$0xff]  ;;  %v1567_v49 = vld [vmem:[%s11454_s13 + $0x50] sm:$0xff] }
 0x687   :  { %v1404_v48 = vpop.f32.mrf.mxu1 }
 0x688   :  { %v1415_v50 = vmul.f32 %v9460_v45, %v1404_v48  ;;  %v1559_v48 = vld [vmem:[%s11454_s13 + $0x10] sm:$0xff] }
 0x68a   :  { %9009 = vmatprep.mubr.msk.f32.mxu1 %vm362_vm1, %v1415_v50  ;;  %v1560_v50 = vld [vmem:[%s11454_s13 + $0x18] sm:$0xff] }
 0x68b   :  { %9010 = vmatmul.mubr.msk.f32.vlgmr.msra.gmra.mxu1 %vm362_vm1, %v1416_v51  ;;  %v1568_v51 = vld [vmem:[%s11454_s13 + $0x58] sm:$0xff] }
 0x68c   :  { %1892 = vmatpush1.bf16.msra.mxu1 %v7705_v36  ;;  %1911 = vmatprep.mubr.bf16.mxu1 %v9538_v24  ;;  %v7716_v36 = vcombine.high %v1579_v6, %v1587_v7 }
 0x68d   :  { %1893 = vmatprep.subr.bf16.mxu1 %v7690_v21  ;;  %v7702_v21 = vcombine.high %v1564_v16, %v1572_v17 }
 0x690   :  { %1894 = vmatpush1.bf16.msra.mxu1 %v7689_v20  ;;  %v7700_v20 = vcombine.high %v1563_v14, %v1571_v15 }
 0x691   :  { %1977 = vmatprep.subr.bf16.mxu1 %v7710_v28  ;;  %v9180_v28 = vld [vmem:[%s11456_s15 + $0xf0] sm:$0xff]  }
 0x74b   :  { %v9011_v52 = vpop.f32.mrf.mxu1 }
 0x74c   :  { %v1499_v53 = vadd.f32 %v9011_v52, %v1212_v41 }
 0x74d   :  { %v1489_v54 = vpop.f32.mrf.mxu1 }
 0x74e   :  { %v1501_v55 = vadd.f32 %v1499_v53, %v9715_v13  ;;  %v1498_v56 = vadd.f32 %v1489_v54, %v1211_v43 }
 0x750   :  { %v1500_v57 = vadd.f32 %v1498_v56, %v9713_v12  ;;  %v1510_v58 = vadd.f32 %v7684_v47, %v1501_v55  ;;  %v7694_v55 = vcombine.high %v1560_v50, %v1568_v51  ;;  %v1577_v56 = vld [vmem:[%s11454_s13 + $0xa0] sm:$0xff] }
 0x752   :  { %v1516_v59 = vsel %vm104_vm0, %v1510_v58, 0.0  ;;  %v1509_v60 = vadd.f32 %v7684_v47, %v1500_v57  ;;  %v7692_v47 = vcombine.high %v1559_v48, %v1567_v49  ;;  %v1585_v57 = vld [vmem:[%s11454_s13 + $0xe0] sm:$0xff] }
 0x753   :  { %1517 = vadd.xlane.f32.xlu0 %v1516_v59  ;;  %v1586_v59 = vld [vmem:[%s11454_s13 + $0xe8] sm:$0xff] }
 0x754   :  { %v1513_v61 = vsel %vm104_vm0, %v1509_v60, 0.0 }
 0x755   :  { %1514 = vadd.xlane.f32.xlu1 %v1513_v61  ;;  %v7693_v61 = vcombine.low %v1560_v50, %v1568_v51  ;;  %v9197_v50 = vld [vmem:[%s11456_s15 + $0x10] sm:$0xff]  }
 0x756   :  { %v9198_v51 = vld [vmem:[%s11456_s15 + $0x90] sm:$0xff]  }
 0x7dc   :  { %v1518_v62 = vpop.xlane.xlu0 %1517 }
 0x7dd   :  { %v1521_v63 = vmul.f32 0.03125, %v1518_v62  ;;  %v7712_v62 = vcombine.high %v1577_v56, %v1585_v57 }
 0x7de   :  { %v1515_v0 = vpop.xlane.xlu1 %1514 }
 0x7df   :  { %v1523_v1 = vsub.f32 %v1510_v58, %v1521_v63  ;;  %v1520_v2 = vmul.f32 0.03125, %v1515_v0  ;;  %v1578_v58 = vld [vmem:[%s11454_s13 + $0xa8] sm:$0xff]  ;;  %v1561_v0 = vld [vmem:[%s11454_s13 + $0x20] sm:$0xff] }
 0x7e0   :  { %v7714_v63 = vcombine.high %v1578_v58, %v1586_v59 }
 0x7e1   :  { %v1522_v3 = vsub.f32 %v1509_v60, %v1520_v2  ;;  %v1525_v4 = vmul.f32 %v1523_v1, %v1523_v1  ;;  %v7691_v60 = vcombine.low %v1559_v48, %v1567_v49  ;;  %v1562_v2 = vld [vmem:[%s11454_s13 + $0x28] sm:$0xff]  ;;  %v9195_v48 = vld [vmem:[%s11456_s15 + $0x50] sm:$0xff]  }
 0x7e2   :  { %v9196_v49 = vld [vmem:[%s11456_s15 + $0xd0] sm:$0xff]  }
 0x7e3   :  { %v1529_v13 = vsel %vm104_vm0, %v1525_v4, 0.0  ;;  %v1524_v5 = vmul.f32 %v1522_v3, %v1522_v3  ;;  %v7711_v4 = vcombine.low %v1577_v56, %v1585_v57  ;;  %v9202_v56 = vld [vmem:[%s11456_s15 + $0x88] sm:$0xff]   ;;  %v9203_v57 = vld [vmem:[%s11456_s15 + $0x40] sm:$0xff]  }
 0x7e4   :  { %1530 = vadd.xlane.f32.xlu0 %v1529_v13  ;;  %v7713_v13 = vcombine.low %v1578_v58, %v1586_v59  ;;  %v9204_v58 = vld [vmem:[%s11456_s15 + $0xc0] sm:$0xff]  }
 0x7e5   :  { %v1526_v12 = vsel %vm104_vm0, %v1524_v5, 0.0  ;;  %v9205_v59 = vld [vmem:[%s11456_s15] sm:$0xff]  }
 0x7e6   :  { %1527 = vadd.xlane.f32.xlu1 %v1526_v12 }
 0x86d   :  { %v1531_v29 = vpop.xlane.xlu0 %1530 }
 0x86e   :  { %v1533_v31 = vmul.f32 0.03125, %v1531_v29  ;;  %v9181_v29 = vld [vmem:[%s11456_s15 + $0x30] sm:$0xff]  }
 0x86f   :  { %v1528_v32 = vpop.xlane.xlu1 %1527 }
 0x870   :  { %v1535_v33 = vadd.f32 1e-05, %v1533_v31  ;;  %v1532_v34 = vmul.f32 0.03125, %v1528_v32  ;;  %v9182_v31 = vld [vmem:[%s11456_s15 + $0xb0] sm:$0xff]   ;;  %v9183_v32 = vld [vmem:[%s11456_s15 + $0x68] sm:$0xff]  }
 0x872   :  { %9463 = vrsqrt.f32 %v1535_v33  ;;  %v1534_v35 = vadd.f32 1e-05, %v1532_v34  ;;  %v9184_v33 = vld [vmem:[%s11456_s15 + $0xe8] sm:$0xff]  }
 0x873   :  { %v9185_v34 = vld [vmem:[%s11456_s15 + $0x28] sm:$0xff]  }
 0x874   :  { %9465 = vrsqrt.f32 %v1534_v35  ;;  %v9186_v35 = vld [vmem:[%s11456_s15 + $0xa8] sm:$0xff]  }
 0x87f   :  { %v9464_v37 = vpop.eup %9463 }
 0x880   :  { %v1539_v40 = vmul.f32 %v9464_v37, %v1523_v1  ;;  %v1569_v1 = vld [vmem:[%s11454_s13 + $0x60] sm:$0xff] }
 0x881   :  { %v9466_v41 = vpop.eup %9465  ;;  %v7696_v5 = vcombine.high %v1561_v0, %v1569_v1  ;;  %v7695_v9 = vcombine.low %v1561_v0, %v1569_v1  ;;  %v9187_v37 = vld [vmem:[%s11456_s15 + $0x60] sm:$0xff]  }
 0x882   :  { %v1547_v42 = vmul.f32 %v7685_v38, %v1539_v40  ;;  %v1538_v43 = vmul.f32 %v9466_v41, %v1522_v3  ;;  %v1570_v3 = vld [vmem:[%s11454_s13 + $0x68] sm:$0xff]  ;;  %v9189_v40 = vld [vmem:[%s11456_s15 + $0x20] sm:$0xff]  }
 0x883   :  { %v7698_v12 = vcombine.high %v1562_v2, %v1570_v3  ;;  %v7697_v10 = vcombine.low %v1562_v2, %v1570_v3  ;;  %v9190_v41 = vld [vmem:[%s11456_s15 + $0xa0] sm:$0xff]  }
 0x884   :  { %v1546_v45 = vmul.f32 %v7685_v38, %v1538_v43  ;;  %v9965_v52 = vadd.f32 %v7686_v44, %v1547_v42  ;;  %v9188_v38 = vld [vmem:[%s11456_s15 + $0xe0] sm:$0xff]   ;;  %v9191_v42 = vld [vmem:[%s11456_s15 + $0x58] sm:$0xff]  }
 0x885   :  { %v9192_v43 = vld [vmem:[%s11456_s15 + $0xd8] sm:$0xff]  }
 0x886   :  { %v9967_v53 = vadd.f32 %v7686_v44, %v1546_v45  ;;  %v9193_v44 = vld [vmem:[%s11456_s15 + $0x18] sm:$0xff]  }
 0x887   :  { %v9194_v45 = vld [vmem:[%s11456_s15 + $0x98] sm:$0xff]  }
 0x888   :  { %v9971_v54 = vpack.c.bf16 %v9965_v52, %v9967_v53 }
 0x88a   :  { %7719 = vmatmul.mubr.msk.bf16.vlgmr.msra.gmra.mxu0 %vm104_vm0, %v9971_v54  ;;  %7720 = vmatmul.mubr.msk.bf16.vlgmr.msra.gmra.mxu1 %vm104_vm0, %v9971_v54 }
 0x88b   :  { %1935 = vmatpush1.bf16.msra.mxu0 %v7707_v26  ;;  %1978 = vmatpush1.bf16.msra.mxu1 %v7709_v27  ;;  %v9178_v26 = vld [vmem:[%s11456_s15 + $0xb8] sm:$0xff]   ;;  %v9179_v27 = vld [vmem:[%s11456_s15 + $0x70] sm:$0xff]  }
 0x88c   :  { %1936 = vmatprep.subr.bf16.mxu0 %v7692_v47  ;;  %1979 = vmatprep.subr.bf16.mxu1 %v7694_v55  ;;  %v9200_v47 = vld [vmem:[%s11456_s15 + $0xc8] sm:$0xff]  }
 0x88d   :  { %1954 = vmatprep.mubr.bf16.mxu0 %v9538_v24  ;;  %1997 = vmatprep.mubr.bf16.mxu1 %v9538_v24  ;;  %v9201_v55 = vld [vmem:[%s11456_s15 + $0x8] sm:$0xff]  }
 0x88f   :  { %1937 = vmatpush1.bf16.msra.mxu0 %v7691_v60  ;;  %1980 = vmatpush1.bf16.msra.mxu1 %v7693_v61  ;;  %v9206_v60 = vld [vmem:[%s11456_s15 + $0x80] sm:$0xff]   ;;  %v9207_v61 = vld [vmem:[%s11456_s15 + $0x178] sm:$0xff]  }
 0x890   :  { %2020 = vmatprep.subr.bf16.mxu0 %v7712_v62  ;;  %2063 = vmatprep.subr.bf16.mxu1 %v7714_v63  ;;  %v9208_v62 = vld [vmem:[%s11456_s15 + $0x1f8] sm:$0xff]   ;;  %v1593_v63 = vlaneseq }
 0x892   :  { %7721 = vmatmul.mubr.msk.bf16.vlgmr.msra.gmra.mxu0 %vm104_vm0, %v9971_v54  ;;  %7722 = vmatmul.mubr.msk.bf16.vlgmr.msra.gmra.mxu1 %vm104_vm0, %v9971_v54  ;;  %v10145_v0 = vshrl.u32 %v1593_v63, 7  ;;  %v9215_v63 = vld [vmem:[%s11456_s15 + $0x168] sm:$0xff]  }
 0x893   :  { %2021 = vmatpush1.bf16.msra.mxu0 %v7711_v4  ;;  %2064 = vmatpush1.bf16.msra.mxu1 %v7713_v13  ;;  %v10162_v13 = vld [vmem:[%s11455_s14] sm:$0xff] }
 0x894   :  { %2022 = vmatprep.subr.bf16.mxu0 %v7696_v5  ;;  %2065 = vmatprep.subr.bf16.mxu1 %v7698_v12  ;;  %v10148_v1 = vsub.s32 1, %v10145_v0  ;;  %v10151_v2 = vsub.s32 3, %v10145_v0  ;;  %v10154_v3 = vsub.s32 0, %v10145_v0  ;;  %v10157_v4 = vsub.s32 2, %v10145_v0 }
 0x895   :  { %2040 = vmatprep.mubr.bf16.mxu0 %v9538_v24  ;;  %2083 = vmatprep.mubr.bf16.mxu1 %v9538_v24  ;;  %v10173_v14 = vsub.s32 5, %v10145_v0  ;;  %v10176_v15 = vsub.s32 7, %v10145_v0 }
 0x896   :  { %v1600_v6 = vrot.slane %v10162_v13, %v10148_v1  ;;  %v1608_v7 = vrot.slane %v10162_v13, %v10151_v2  ;;  %v1596_v39 = vrot.slane %v10162_v13, %v10154_v3  ;;  %v1604_v8 = vrot.slane %v10162_v13, %v10157_v4 }
 0x897   :  { %2023 = vmatpush1.bf16.msra.mxu0 %v7695_v9  ;;  %2066 = vmatpush1.bf16.msra.mxu1 %v7697_v10 }
 0x898   :  { %2106 = vmatprep.subr.bf16.mxu0 %v7716_v36  ;;  %2149 = vmatprep.subr.bf16.mxu1 %v7718_v11 }
 0x89a   :  { %7723 = vmatmul.mubr.msk.bf16.vlgmr.msra.gmra.mxu0 %vm104_vm0, %v9971_v54  ;;  %7724 = vmatmul.mubr.msk.bf16.vlgmr.msra.gmra.mxu1 %vm104_vm0, %v9971_v54 }
 0x89b   :  { %2107 = vmatpush1.bf16.msra.mxu0 %v7715_v18  ;;  %2150 = vmatpush1.bf16.msra.mxu1 %v7717_v19 }
 0x89c   :  { %2108 = vmatprep.subr.bf16.mxu0 %v7700_v20  ;;  %2151 = vmatprep.subr.bf16.mxu1 %v7702_v21 }
 0x89d   :  { %2126 = vmatprep.mubr.bf16.mxu0 %v9538_v24  ;;  %2169 = vmatprep.mubr.bf16.mxu1 %v9538_v24 }
 0x89f   :  { %2109 = vmatpush1.bf16.msra.mxu0 %v7699_v22  ;;  %2152 = vmatpush1.bf16.msra.mxu1 %v7701_v23 }
 0x8a0   :  { %8463 = vmatprep.subr.bf16.mxu0 %v9175_v30  ;;  %8485 = vmatprep.subr.bf16.mxu1 %v9176_v46 }
 0x8a2   :  { %7725 = vmatmul.mubr.msk.bf16.vlgmr.msra.gmra.mxu0 %vm104_vm0, %v9971_v54  ;;  %7726 = vmatmul.mubr.msk.bf16.vlgmr.msra.gmra.mxu1 %vm104_vm0, %v9971_v54  ;;  %v9199_v54 = vld [vmem:[%s11456_s15 + $0x48] sm:$0xff]  }
 0x8a3   :  { %8464 = vmatpush3.bf16.msra.mxu0 %v9177_v25  ;;  %8486 = vmatpush3.bf16.msra.mxu1 %v9178_v26 }
 0x8a4   :  { %8465 = vmatprep.subr.bf16.mxu0 %v9179_v27  ;;  %8487 = vmatprep.subr.bf16.mxu1 %v9180_v28 }
 0x8a7   :  { %8466 = vmatpush3.bf16.msra.mxu0 %v9181_v29  ;;  %8488 = vmatpush3.bf16.msra.mxu1 %v9182_v31  ;;  %v1616_v29 = vrot.slane %v10162_v13, %v10173_v14  ;;  %v1624_v31 = vrot.slane %v10162_v13, %v10176_v15 }
 0x8a8   :  { %8467 = vmatprep.subr.bf16.mxu0 %v9183_v32  ;;  %8489 = vmatprep.subr.bf16.mxu1 %v9184_v33 }
 0x8ab   :  { %8468 = vmatpush3.bf16.msra.mxu0 %v9185_v34  ;;  %8490 = vmatpush3.bf16.msra.mxu1 %v9186_v35 }
 0x8ac   :  { %8469 = vmatprep.subr.bf16.mxu0 %v9187_v37  ;;  %8491 = vmatprep.subr.bf16.mxu1 %v9188_v38 }
 0x8af   :  { %8470 = vmatpush3.bf16.msra.mxu0 %v9189_v40  ;;  %8492 = vmatpush3.bf16.msra.mxu1 %v9190_v41 }
 0x8b0   :  { %8471 = vmatprep.subr.bf16.mxu0 %v9191_v42  ;;  %8493 = vmatprep.subr.bf16.mxu1 %v9192_v43 }
 0x8b3   :  { %8472 = vmatpush3.bf16.msra.mxu0 %v9193_v44  ;;  %8494 = vmatpush3.bf16.msra.mxu1 %v9194_v45  ;;  %v9209_v44 = vld [vmem:[%s11456_s15 + $0x138] sm:$0xff]  }
 0x8b4   :  { %8473 = vmatprep.subr.bf16.mxu0 %v9195_v48  ;;  %8495 = vmatprep.subr.bf16.mxu1 %v9196_v49  ;;  %v9210_v45 = vld [vmem:[%s11456_s15 + $0x1b8] sm:$0xff]  }
 0x8b7   :  { %8474 = vmatpush3.bf16.msra.mxu0 %v9197_v50  ;;  %8496 = vmatpush3.bf16.msra.mxu1 %v9198_v51 }
 0x8b8   :  { %8475 = vmatprep.subr.bf16.mxu0 %v9199_v54  ;;  %8497 = vmatprep.subr.bf16.mxu1 %v9200_v47  ;;  %v9211_v54 = vld [vmem:[%s11456_s15 + $0x170] sm:$0xff]  }
 0x8b9   :  { %v9212_v47 = vld [vmem:[%s11456_s15 + $0x1f0] sm:$0xff]  }
 0x8bb   :  { %8476 = vmatpush3.bf16.msra.mxu0 %v9201_v55  ;;  %8498 = vmatpush3.bf16.msra.mxu1 %v9202_v56 }
 0x8bc   :  { %8477 = vmatprep.subr.bf16.mxu0 %v9203_v57  ;;  %8499 = vmatprep.subr.bf16.mxu1 %v9204_v58 }
 0x8bf   :  { %8478 = vmatpush3.bf16.msra.mxu0 %v9205_v59  ;;  %8500 = vmatpush3.bf16.msra.mxu1 %v9206_v60 }
 0x8c0   :  { %8507 = vmatprep.subr.bf16.mxu0 %v9207_v61  ;;  %8529 = vmatprep.subr.bf16.mxu1 %v9208_v62  ;;  %v9213_v61 = vld [vmem:[%s11456_s15 + $0x130] sm:$0xff]  }
 0x8c1   :  { %v9214_v62 = vld [vmem:[%s11456_s15 + $0x1b0] sm:$0xff]  }
 0x94a   :  { %v1870_v5 = vpop.f32.mrf.mxu0  ;;  %v1913_v12 = vpop.f32.mrf.mxu1 }
 0x94b   :  { %v1871_v20 = vadd.f32 %v1870_v5, %v1596_v39  ;;  %v1914_v21 = vadd.f32 %v1913_v12, %v1604_v8 }
 0x94c   :  { %v1872_v9 = vpop.f32.mrf.mxu0  ;;  %v1915_v10 = vpop.f32.mrf.mxu1 }
 0x94d   :  { %v1873_v16 = vadd.f32 %v1872_v9, %v1600_v6  ;;  %v1916_v17 = vadd.f32 %v1915_v10, %v1608_v7  ;;  %v2180_v37 = vmax.f32 %v1871_v20, 0.0  ;;  %v2182_v38 = vmax.f32 %v1914_v21, 0.0  ;;  %v9217_v10 = vld [vmem:[%s11456_s15 + $0x128] sm:$0xff]   ;;  %v9222_v20 = vld [vmem:[%s11456_s15 + $0x1a0] sm:$0xff]   ;;  %v9223_v21 = vld [vmem:[%s11456_s15 + $0x158] sm:$0xff]  }
 0x94e   :  { %v1874_v36 = vpop.f32.mrf.mxu0  ;;  %v1917_v11 = vpop.f32.mrf.mxu1 }
 0x94f   :  { %v1875_v18 = vadd.f32 %v1874_v36, %v1596_v39  ;;  %v1918_v19 = vadd.f32 %v1917_v11, %v1604_v8  ;;  %v2181_v32 = vmax.f32 %v1873_v16, 0.0  ;;  %v2183_v33 = vmax.f32 %v1916_v17, 0.0  ;;  %v9216_v39 = vld [vmem:[%s11456_s15 + $0x1e8] sm:$0xff]   ;;  %v9219_v11 = vld [vmem:[%s11456_s15 + $0x160] sm:$0xff]  }
 0x950   :  { %v1876_v22 = vpop.f32.mrf.mxu0  ;;  %v1919_v23 = vpop.f32.mrf.mxu1  ;;  %v9218_v36 = vld [vmem:[%s11456_s15 + $0x1a8] sm:$0xff]   ;;  %v9220_v16 = vld [vmem:[%s11456_s15 + $0x1e0] sm:$0xff]  }
 0x951   :  { %v1877_v30 = vadd.f32 %v1876_v22, %v1600_v6  ;;  %v1920_v46 = vadd.f32 %v1919_v23, %v1608_v7  ;;  %v2196_v25 = vmax.f32 %v1875_v18, 0.0  ;;  %v2198_v26 = vmax.f32 %v1918_v19, 0.0  ;;  %v9221_v18 = vld [vmem:[%s11456_s15 + $0x120] sm:$0xff]   ;;  %v9224_v22 = vld [vmem:[%s11456_s15 + $0x1d8] sm:$0xff]  }
 0x952   :  { %v10178_v27 = vpop.f32.mrf.mxu0  ;;  %v10180_v28 = vpop.f32.mrf.mxu1 }
 0x953   :  { %v2197_v34 = vmax.f32 %v1877_v30, 0.0  ;;  %v2199_v35 = vmax.f32 %v1920_v46, 0.0  ;;  %v2212_v48 = vpack.c.bf16 %v2196_v25, %v2180_v37  ;;  %v2214_v49 = vpack.c.bf16 %v2198_v26, %v2182_v38  ;;  %v9225_v30 = vld [vmem:[%s11456_s15 + $0x118] sm:$0xff]   ;;  %v9227_v26 = vld [vmem:[%s11456_s15 + $0x150] sm:$0xff]   ;;  %v9232_v38 = vld [vmem:[%s11456_s15 + $0x1c8] sm:$0xff]  }
 0x954   :  { %v1958_v40 = vpop.f32.mrf.mxu0  ;;  %v2001_v41 = vpop.f32.mrf.mxu1  ;;  %v9226_v25 = vld [vmem:[%s11456_s15 + $0x198] sm:$0xff]   ;;  %v9230_v37 = vld [vmem:[%s11456_s15 + $0x190] sm:$0xff]  }
 0x955   :  { %v2213_v42 = vpack.c.bf16 %v2197_v34, %v2181_v32  ;;  %v2215_v43 = vpack.c.bf16 %v2199_v35, %v2183_v33  ;;  %v1959_v55 = vadd.f32 %v1958_v40, %v1616_v29  ;;  %v2002_v56 = vadd.f32 %v2001_v41, %v1624_v31  ;;  %v9229_v34 = vld [vmem:[%s11456_s15 + $0x110] sm:$0xff]  }
 0x956   :  { %v10192_v50 = vpop.f32.mrf.mxu0  ;;  %v10194_v51 = vpop.f32.mrf.mxu1  ;;  %v10258_v32 = vsub.s32 6, %v10145_v0 }
 0x957   :  { %3291 = vmatprep.mubr.bf16.mxu0 %v2213_v42  ;;  %3332 = vmatprep.mubr.bf16.mxu1 %v2215_v43  ;;  %v2185_v5 = vmax.f32 %v1959_v55, 0.0  ;;  %v2187_v12 = vmax.f32 %v2002_v56, 0.0  ;;  %v10283_v42 = vld [vmem:[%s11455_s14 + $0x8] sm:$0xff] }
 0x958   :  { %v1962_v57 = vpop.f32.mrf.mxu0  ;;  %v2005_v58 = vpop.f32.mrf.mxu1  ;;  %3292 = vmatmul.mubr.bf16.vlgmr.msra.gmra.mxu0 %v2212_v48  ;;  %3333 = vmatmul.mubr.bf16.vlgmr.msra.gmra.mxu1 %v2214_v49  ;;  %v1620_v41 = vrot.slane %v10162_v13, %v10258_v32  ;;  %v1632_v48 = vrot.slane %v10283_v42, %v10148_v1  ;;  %v1640_v55 = vrot.slane %v10283_v42, %v10151_v2 }
 0x959   :  { %v1963_v59 = vadd.f32 %v1962_v57, %v1616_v29  ;;  %v2006_v60 = vadd.f32 %v2005_v58, %v1624_v31  ;;  %8508 = vmatpush3.bf16.msra.mxu0 %v9209_v44  ;;  %8530 = vmatpush3.bf16.msra.mxu1 %v9210_v45  ;;  %v9228_v29 = vld [vmem:[%s11456_s15 + $0x1d0] sm:$0xff]   ;;  %v10255_v31 = vsub.s32 4, %v10145_v0  ;;  %v9231_v0 = vld [vmem:[%s11456_s15 + $0x148] sm:$0xff]  }
 0x95a   :  { %8509 = vmatprep.subr.bf16.mxu0 %v9211_v54  ;;  %8531 = vmatprep.subr.bf16.mxu1 %v9212_v47  ;;  %v10226_v17 = vpop.f32.mrf.mxu0  ;;  %v10231_v19 = vpop.f32.mrf.mxu1  ;;  %v9233_v44 = vld [vmem:[%s11456_s15 + $0x108] sm:$0xff]   ;;  %v9235_v54 = vld [vmem:[%s11456_s15 + $0x140] sm:$0xff]   ;;  %v2004_v47 = vadd.f32 %v10194_v51, %v1620_v41  ;;  %v2000_v58 = vadd.f32 %v10180_v28, %v1620_v41 }
 0x95b   :  { %v2201_v6 = vmax.f32 %v1963_v59, 0.0  ;;  %v2203_v7 = vmax.f32 %v2006_v60, 0.0  ;;  %v1612_v40 = vrot.slane %v10162_v13, %v10255_v31  ;;  %v9234_v13 = vld [vmem:[%s11456_s15 + $0x188] sm:$0xff]   ;;  %v9237_v60 = vld [vmem:[%s11456_s15 + $0x100] sm:$0xff]  }
 0x95c   :  { %v2044_v23 = vpop.f32.mrf.mxu0  ;;  %v2087_v46 = vpop.f32.mrf.mxu1  ;;  %v9254_v41 = vld [vmem:[%s11456_s15 + $0x2a0] sm:$0xff]  }
 0x95d   :  { %v2217_v8 = vpack.c.bf16 %v2201_v6, %v2185_v5  ;;  %v2219_v9 = vpack.c.bf16 %v2203_v7, %v2187_v12  ;;  %8510 = vmatpush3.bf16.msra.mxu0 %v9213_v61  ;;  %8532 = vmatpush3.bf16.msra.mxu1 %v9214_v62  ;;  %v1961_v45 = vadd.f32 %v10192_v50, %v1612_v40  ;;  %v9236_v50 = vld [vmem:[%s11456_s15 + $0x1c0] sm:$0xff]   ;;  %v9240_v5 = vld [vmem:[%s11456_s15 + $0x2f8] sm:$0xff]   ;;  %v2186_v7 = vmax.f32 %v2000_v58, 0.0  ;;  %v9263_v58 = vld [vmem:[%s11456_s15 + $0x248] sm:$0xff]  }
 0x95e   :  { %8511 = vmatprep.subr.bf16.mxu0 %v9215_v63  ;;  %8533 = vmatprep.subr.bf16.mxu1 %v9216_v39  ;;  %v10260_v33 = vpop.f32.mrf.mxu0  ;;  %v10265_v35 = vpop.f32.mrf.mxu1  ;;  %v1957_v56 = vadd.f32 %v10178_v27, %v1612_v40  ;;  %v2045_v61 = vadd.f32 %v2044_v23, %v1632_v48  ;;  %v9238_v62 = vld [vmem:[%s11456_s15 + $0x180] sm:$0xff]   ;;  %v9239_v27 = vld [vmem:[%s11456_s15 + $0x278] sm:$0xff]   ;;  %v2202_v63 = vmax.f32 %v2004_v47, 0.0  ;;  %v2088_v28 = vadd.f32 %v2087_v46, %v1640_v55  ;;  %v9245_v23 = vld [vmem:[%s11456_s15 + $0x230] sm:$0xff]  }
 0x95f   :  { %3373 = vmatprep.mubr.bf16.mxu0 %v2217_v8  ;;  %3414 = vmatprep.mubr.bf16.mxu1 %v2219_v9  ;;  %v2200_v51 = vmax.f32 %v1961_v45, 0.0  ;;  %v9241_v8 = vld [vmem:[%s11456_s15 + $0x238] sm:$0xff]   ;;  %v9247_v46 = vld [vmem:[%s11456_s15 + $0x268] sm:$0xff]   ;;  %v9260_v47 = vld [vmem:[%s11456_s15 + $0x2d0] sm:$0xff]  }
 0x960   :  { %v2048_v43 = vpop.f32.mrf.mxu0  ;;  %v2091_v49 = vpop.f32.mrf.mxu1  ;;  %v2184_v12 = vmax.f32 %v1957_v56, 0.0 }
 0x961   :  { %8512 = vmatpush3.bf16.msra.mxu0 %v9217_v10  ;;  %8534 = vmatpush3.bf16.msra.mxu1 %v9218_v36  ;;  %v2049_v57 = vadd.f32 %v2048_v43, %v1632_v48  ;;  %v2092_v59 = vadd.f32 %v2091_v49, %v1640_v55  ;;  %v2189_v10 = vmax.f32 %v2045_v61, 0.0  ;;  %v9242_v36 = vld [vmem:[%s11456_s15 + $0x2b8] sm:$0xff]  }
 0x962   :  { %8513 = vmatprep.subr.bf16.mxu0 %v9219_v11  ;;  %8535 = vmatprep.subr.bf16.mxu1 %v9220_v16  ;;  %v2216_v9 = vpack.c.bf16 %v2200_v51, %v2184_v12  ;;  %v2218_v11 = vpack.c.bf16 %v2202_v63, %v2186_v7  ;;  %v2191_v16 = vmax.f32 %v2088_v28, 0.0  ;;  %v10358_v40 = vpop.f32.mrf.mxu1  ;;  %v9255_v43 = vld [vmem:[%s11456_s15 + $0x258] sm:$0xff]   ;;  %v1636_v51 = vrot.slane %v10283_v42, %v10157_v4  ;;  %v9267_v12 = vld [vmem:[%s11456_s15 + $0x240] sm:$0xff]  }
 0x963   :  { %v2205_v6 = vmax.f32 %v2049_v57, 0.0  ;;  %v2207_v39 = vmax.f32 %v2092_v59, 0.0  ;;  %v9257_v48 = vld [vmem:[%s11456_s15 + $0x218] sm:$0xff]   ;;  %v9262_v57 = vld [vmem:[%s11456_s15 + $0x290] sm:$0xff]   ;;  %v9264_v59 = vld [vmem:[%s11456_s15 + $0x2c8] sm:$0xff]   ;;  %v1648_v63 = vrot.slane %v10283_v42, %v10173_v14  ;;  %v1656_v7 = vrot.slane %v10283_v42, %v10176_v15 }
 0x964   :  { %v2173_v49 = vpop.f32.mrf.mxu1 }
 0x965   :  { %8514 = vmatpush3.bf16.msra.mxu0 %v9221_v18  ;;  %8536 = vmatpush3.bf16.msra.mxu1 %v9222_v20  ;;  %v9243_v18 = vld [vmem:[%s11456_s15 + $0x270] sm:$0xff]   ;;  %v2221_v20 = vpack.c.bf16 %v2205_v6, %v2189_v10  ;;  %v2090_v6 = vadd.f32 %v10265_v35, %v1636_v51 }
 0x966   :  { %8515 = vmatprep.subr.bf16.mxu0 %v9223_v21  ;;  %8537 = vmatprep.subr.bf16.mxu1 %v9224_v22  ;;  %v9244_v21 = vld [vmem:[%s11456_s15 + $0x2f0] sm:$0xff]   ;;  %v2223_v22 = vpack.c.bf16 %v2207_v39, %v2191_v16  ;;  %v10386_v56 = vpop.f32.mrf.mxu1  ;;  %v9270_v16 = vld [vmem:[%s11456_s15 + $0x280] sm:$0xff]  }
 0x968   :  { %v2177_v28 = vpop.f32.mrf.mxu1 }
 0x969   :  { %8516 = vmatpush3.bf16.msra.mxu0 %v9225_v30  ;;  %8538 = vmatpush3.bf16.msra.mxu1 %v9226_v25  ;;  %v9246_v30 = vld [vmem:[%s11456_s15 + $0x2b0] sm:$0xff]   ;;  %v9248_v25 = vld [vmem:[%s11456_s15 + $0x2e8] sm:$0xff]   ;;  %v2178_v10 = vadd.f32 %v2177_v28, %v1656_v7 }
 0x96a   :  { %8517 = vmatprep.subr.bf16.mxu0 %v9227_v26  ;;  %8539 = vmatprep.subr.bf16.mxu1 %v9228_v29  ;;  %v9249_v26 = vld [vmem:[%s11456_s15 + $0x228] sm:$0xff]   ;;  %v9293_v28 = vld [vmem:[%s11456_s15 + $0x310] sm:$0xff]  }
 0x96b   :  { %v9250_v29 = vld [vmem:[%s11456_s15 + $0x2a8] sm:$0xff]  }
 0x96d   :  { %8518 = vmatpush3.bf16.msra.mxu0 %v9229_v34  ;;  %8540 = vmatpush3.bf16.msra.mxu1 %v9230_v37  ;;  %v9251_v34 = vld [vmem:[%s11456_s15 + $0x260] sm:$0xff]  }
 0x96e   :  { %8519 = vmatprep.subr.bf16.mxu0 %v9231_v0  ;;  %8541 = vmatprep.subr.bf16.mxu1 %v9232_v38  ;;  %v9252_v37 = vld [vmem:[%s11456_s15 + $0x2e0] sm:$0xff]   ;;  %v10353_v0 = vpop.f32.mrf.mxu0 }
 0x96f   :  { %v9253_v38 = vld [vmem:[%s11456_s15 + $0x220] sm:$0xff]  }
 0x970   :  { %v2130_v45 = vpop.f32.mrf.mxu0 }
 0x971   :  { %8520 = vmatpush3.bf16.msra.mxu0 %v9233_v44  ;;  %8542 = vmatpush3.bf16.msra.mxu1 %v9234_v13  ;;  %v9256_v44 = vld [vmem:[%s11456_s15 + $0x2d8] sm:$0xff]  }
 0x972   :  { %8521 = vmatprep.subr.bf16.mxu0 %v9235_v54  ;;  %8543 = vmatprep.subr.bf16.mxu1 %v9236_v50  ;;  %v9258_v13 = vld [vmem:[%s11456_s15 + $0x298] sm:$0xff]   ;;  %v9259_v54 = vld [vmem:[%s11456_s15 + $0x250] sm:$0xff]   ;;  %v10381_v55 = vpop.f32.mrf.mxu0 }
 0x973   :  { %v9261_v50 = vld [vmem:[%s11456_s15 + $0x210] sm:$0xff]  }
 0x974   :  { %v2134_v61 = vpop.f32.mrf.mxu0 }
 0x975   :  { %8522 = vmatpush3.bf16.msra.mxu0 %v9237_v60  ;;  %8544 = vmatpush3.bf16.msra.mxu1 %v9238_v62  ;;  %v1628_v60 = vrot.slane %v10283_v42, %v10154_v3  ;;  %v9265_v62 = vld [vmem:[%s11456_s15 + $0x208] sm:$0xff]  }
 0x976   :  { %8551 = vmatprep.subr.bf16.mxu0 %v9239_v27  ;;  %8573 = vmatprep.subr.bf16.mxu1 %v9240_v5  ;;  %v9266_v5 = vld [vmem:[%s11456_s15 + $0x288] sm:$0xff]  }
 0x977   :  { %v2047_v27 = vadd.f32 %v10260_v33, %v1628_v60  ;;  %v9268_v33 = vld [vmem:[%s11456_s15 + $0x2c0] sm:$0xff]   ;;  %v2043_v39 = vadd.f32 %v10226_v17, %v1628_v60  ;;  %v9271_v17 = vld [vmem:[%s11456_s15 + $0x378] sm:$0xff]  }
 0x978   :  { %3374 = vmatmul.mubr.bf16.vlgmr.msra.gmra.mxu0 %v2216_v9  ;;  %3415 = vmatmul.mubr.bf16.vlgmr.msra.gmra.mxu1 %v2218_v11  ;;  %v2086_v9 = vadd.f32 %v10231_v19, %v1636_v51  ;;  %v2131_v11 = vadd.f32 %v2130_v45, %v1648_v63  ;;  %v2174_v19 = vadd.f32 %v2173_v49, %v1656_v7  ;;  %v9277_v45 = vld [vmem:[%s11456_s15 + $0x330] sm:$0xff]   ;;  %v9279_v49 = vld [vmem:[%s11456_s15 + $0x368] sm:$0xff]   ;;  %v9287_v60 = vld [vmem:[%s11456_s15 + $0x358] sm:$0xff]  }
 0x979   :  { %8552 = vmatpush3.bf16.msra.mxu0 %v9241_v8  ;;  %3455 = vmatprep.mubr.bf16.mxu0 %v2221_v20  ;;  %v2135_v8 = vadd.f32 %v2134_v61, %v1648_v63  ;;  %v2204_v35 = vmax.f32 %v2047_v27, 0.0  ;;  %v9272_v20 = vld [vmem:[%s11456_s15 + $0x3f8] sm:$0xff]   ;;  %v9291_v27 = vld [vmem:[%s11456_s15 + $0x350] sm:$0xff]   ;;  %v1644_v7 = vrot.slane %v10283_v42, %v10255_v31 }
 0x97a   :  { %8574 = vmatpush3.bf16.msra.mxu1 %v9242_v36  ;;  %3496 = vmatprep.mubr.bf16.mxu1 %v2223_v22  ;;  %v9269_v36 = vld [vmem:[%s11456_s15 + $0x200] sm:$0xff]   ;;  %v9288_v51 = vld [vmem:[%s11456_s15 + $0x3d8] sm:$0xff]   ;;  %v9292_v63 = vld [vmem:[%s11456_s15 + $0x3d0] sm:$0xff]  }
 0x97b   :  { %8553 = vmatprep.subr.bf16.mxu0 %v9243_v18  ;;  %8575 = vmatprep.subr.bf16.mxu1 %v9244_v21  ;;  %v2206_v18 = vmax.f32 %v2090_v6, 0.0  ;;  %v2188_v21 = vmax.f32 %v2043_v39, 0.0  ;;  %v2209_v22 = vmax.f32 %v2135_v8, 0.0  ;;  %v9289_v61 = vld [vmem:[%s11456_s15 + $0x318] sm:$0xff]   ;;  %v9296_v6 = vld [vmem:[%s11456_s15 + $0x3c8] sm:$0xff]   ;;  %v2133_v8 = vadd.f32 %v10381_v55, %v1644_v7 }
 0x97c   :  { %v9297_v39 = vld [vmem:[%s11456_s15 + $0x308] sm:$0xff]  }
 0x97d   :  { %8554 = vmatpush3.bf16.msra.mxu0 %v9245_v23  ;;  %v2190_v23 = vmax.f32 %v2086_v9, 0.0  ;;  %v9298_v9 = vld [vmem:[%s11456_s15 + $0x388] sm:$0xff]  }
 0x97e   :  { %8576 = vmatpush3.bf16.msra.mxu1 %v9246_v30  ;;  %8555 = vmatprep.subr.bf16.mxu0 %v9247_v46  ;;  %v2211_v30 = vmax.f32 %v2178_v10, 0.0  ;;  %v9273_v46 = vld [vmem:[%s11456_s15 + $0x338] sm:$0xff]   ;;  %v9299_v10 = vld [vmem:[%s11456_s15 + $0x340] sm:$0xff]  }
 0x97f   :  { %8577 = vmatprep.subr.bf16.mxu1 %v9248_v25  ;;  %v2220_v25 = vpack.c.bf16 %v2204_v35, %v2188_v21  ;;  %v2129_v35 = vadd.f32 %v10353_v0, %v1644_v7 }
 0x981   :  { %8556 = vmatpush3.bf16.msra.mxu0 %v9249_v26  ;;  %v2193_v26 = vmax.f32 %v2131_v11, 0.0  ;;  %v9301_v11 = vld [vmem:[%s11456_s15 + $0x300] sm:$0xff]  }
 0x982   :  { %8578 = vmatpush3.bf16.msra.mxu1 %v9250_v29  ;;  %8557 = vmatprep.subr.bf16.mxu0 %v9251_v34  ;;  %v9274_v29 = vld [vmem:[%s11456_s15 + $0x3b8] sm:$0xff]   ;;  %v2222_v34 = vpack.c.bf16 %v2206_v18, %v2190_v23  ;;  %v2192_v18 = vmax.f32 %v2129_v35, 0.0 }
 0x983   :  { %8579 = vmatprep.subr.bf16.mxu1 %v9252_v37  ;;  %v2195_v37 = vmax.f32 %v2174_v19, 0.0 }
 0x985   :  { %8558 = vmatpush3.bf16.msra.mxu0 %v9253_v38  ;;  %v9275_v38 = vld [vmem:[%s11456_s15 + $0x370] sm:$0xff]  }
 0x986   :  { %8580 = vmatpush3.bf16.msra.mxu1 %v9254_v41  ;;  %8559 = vmatprep.subr.bf16.mxu0 %v9255_v43  ;;  %v2225_v41 = vpack.c.bf16 %v2209_v22, %v2193_v26  ;;  %v9276_v43 = vld [vmem:[%s11456_s15 + $0x3f0] sm:$0xff]  }
 0x987   :  { %8581 = vmatprep.subr.bf16.mxu1 %v9256_v44  ;;  %v2227_v44 = vpack.c.bf16 %v2211_v30, %v2195_v37 }
 0x989   :  { %8560 = vmatpush3.bf16.msra.mxu0 %v9257_v48  ;;  %v9278_v48 = vld [vmem:[%s11456_s15 + $0x3b0] sm:$0xff]  }
 0x98a   :  { %8582 = vmatpush3.bf16.msra.mxu1 %v9258_v13  ;;  %8561 = vmatprep.subr.bf16.mxu0 %v9259_v54  ;;  %v9280_v13 = vld [vmem:[%s11456_s15 + $0x3e8] sm:$0xff]  }
 0x98b   :  { %8583 = vmatprep.subr.bf16.mxu1 %v9260_v47  ;;  %v9281_v54 = vld [vmem:[%s11456_s15 + $0x328] sm:$0xff]  }
 0x98c   :  { %v9282_v47 = vld [vmem:[%s11456_s15 + $0x3a8] sm:$0xff]  }
 0x98d   :  { %8562 = vmatpush3.bf16.msra.mxu0 %v9261_v50  ;;  %v9283_v50 = vld [vmem:[%s11456_s15 + $0x360] sm:$0xff]  }
 0x98e   :  { %8584 = vmatpush3.bf16.msra.mxu1 %v9262_v57  ;;  %8563 = vmatprep.subr.bf16.mxu0 %v9263_v58  ;;  %v9284_v57 = vld [vmem:[%s11456_s15 + $0x3e0] sm:$0xff]  }
 0x98f   :  { %8585 = vmatprep.subr.bf16.mxu1 %v9264_v59  ;;  %v9285_v58 = vld [vmem:[%s11456_s15 + $0x320] sm:$0xff]  }
 0x990   :  { %v9286_v59 = vld [vmem:[%s11456_s15 + $0x3a0] sm:$0xff]  }
 0x991   :  { %8564 = vmatpush3.bf16.msra.mxu0 %v9265_v62  ;;  %v9290_v62 = vld [vmem:[%s11456_s15 + $0x398] sm:$0xff]  }
 0x992   :  { %8586 = vmatpush3.bf16.msra.mxu1 %v9266_v5  ;;  %8565 = vmatprep.subr.bf16.mxu0 %v9267_v12  ;;  %v9294_v5 = vld [vmem:[%s11456_s15 + $0x390] sm:$0xff]   ;;  %v9295_v12 = vld [vmem:[%s11456_s15 + $0x348] sm:$0xff]  }
 0x993   :  { %8587 = vmatprep.subr.bf16.mxu1 %v9268_v33  ;;  %v1652_v33 = vrot.slane %v10283_v42, %v10258_v32  ;;  %v9300_v42 = vld [vmem:[%s11456_s15 + $0x3c0] sm:$0xff]  }
 0x995   :  { %8566 = vmatpush3.bf16.msra.mxu0 %v9269_v36  ;;  %v2176_v36 = vadd.f32 %v10386_v56, %v1652_v33  ;;  %v2172_v55 = vadd.f32 %v10358_v40, %v1652_v33  ;;  %v9302_v56 = vld [vmem:[%s11456_s15 + $0x380] sm:$0xff]  }
 0x996   :  { %8588 = vmatpush3.bf16.msra.mxu1 %v9270_v16  ;;  %8595 = vmatprep.subr.bf16.mxu0 %v9271_v17  ;;  %v2208_v16 = vmax.f32 %v2133_v8, 0.0 }
 0x997   :  { %8617 = vmatprep.subr.bf16.mxu1 %v9272_v20  ;;  %v2210_v17 = vmax.f32 %v2176_v36, 0.0  ;;  %v2194_v19 = vmax.f32 %v2172_v55, 0.0 }
 0x998   :  { %3456 = vmatmul.mubr.bf16.vlgmr.msra.gmra.mxu0 %v2220_v25  ;;  %v2224_v0 = vpack.c.bf16 %v2208_v16, %v2192_v18 }
 0x999   :  { %3497 = vmatmul.mubr.bf16.vlgmr.msra.gmra.mxu1 %v2222_v34  ;;  %8596 = vmatpush3.bf16.msra.mxu0 %v9273_v46  ;;  %v2226_v40 = vpack.c.bf16 %v2210_v17, %v2194_v19 }
 0x99a   :  { %3537 = vmatprep.mubr.bf16.mxu0 %v2225_v41  ;;  %8618 = vmatpush3.bf16.msra.mxu1 %v9274_v29 }
 0x99b   :  { %3578 = vmatprep.mubr.bf16.mxu1 %v2227_v44  ;;  %8597 = vmatprep.subr.bf16.mxu0 %v9275_v38 }
 0x99c   :  { %8619 = vmatprep.subr.bf16.mxu1 %v9276_v43 }
 0x99d   :  { %8598 = vmatpush3.bf16.msra.mxu0 %v9277_v45 }
 0x99e   :  { %8620 = vmatpush3.bf16.msra.mxu1 %v9278_v48  ;;  %8599 = vmatprep.subr.bf16.mxu0 %v9279_v49  ;;  %v7727_v48 = vld [vmem:[%s11457_s16] ss:$0 sm:$0xff] }
 0x99f   :  { %8621 = vmatprep.subr.bf16.mxu1 %v9280_v13 }
 0x9a1   :  { %8600 = vmatpush3.bf16.msra.mxu0 %v9281_v54 }
 0x9a2   :  { %8622 = vmatpush3.bf16.msra.mxu1 %v9282_v47  ;;  %8601 = vmatprep.subr.bf16.mxu0 %v9283_v50 }
 0x9a3   :  { %8623 = vmatprep.subr.bf16.mxu1 %v9284_v57 }
 0x9a5   :  { %8602 = vmatpush3.bf16.msra.mxu0 %v9285_v58 }
 0x9a6   :  { %8624 = vmatpush3.bf16.msra.mxu1 %v9286_v59  ;;  %8603 = vmatprep.subr.bf16.mxu0 %v9287_v60 }
 0x9a7   :  { %8625 = vmatprep.subr.bf16.mxu1 %v9288_v51 }
 0x9a9   :  { %8604 = vmatpush3.bf16.msra.mxu0 %v9289_v61 }
 0x9aa   :  { %8626 = vmatpush3.bf16.msra.mxu1 %v9290_v62  ;;  %8605 = vmatprep.subr.bf16.mxu0 %v9291_v27 }
 0x9ab   :  { %8627 = vmatprep.subr.bf16.mxu1 %v9292_v63 }
 0x9ad   :  { %8606 = vmatpush3.bf16.msra.mxu0 %v9293_v28 }
 0x9ae   :  { %8628 = vmatpush3.bf16.msra.mxu1 %v9294_v5  ;;  %8607 = vmatprep.subr.bf16.mxu0 %v9295_v12 }
 0x9af   :  { %8629 = vmatprep.subr.bf16.mxu1 %v9296_v6 }
 0x9b1   :  { %8608 = vmatpush3.bf16.msra.mxu0 %v9297_v39 }
 0x9b2   :  { %8630 = vmatpush3.bf16.msra.mxu1 %v9298_v9  ;;  %8609 = vmatprep.subr.bf16.mxu0 %v9299_v10 }
 0x9b3   :  { %8631 = vmatprep.subr.bf16.mxu1 %v9300_v42 }
 0x9b5   :  { %8610 = vmatpush3.bf16.msra.mxu0 %v9301_v11 }
 0x9b6   :  { %8632 = vmatpush3.bf16.msra.mxu1 %v9302_v56 }
 0x9b8   :  { %3538 = vmatmul.mubr.bf16.vlgmr.msra.gmra.mxu0 %v2224_v0 }
 0x9b9   :  { %3579 = vmatmul.mubr.bf16.vlgmr.msra.gmra.mxu1 %v2226_v40 }
 0xa18   :  { %v8479_v20 = vpop.f32.mrf.mxu0  ;;  %v8501_v21 = vpop.f32.mrf.mxu1 }
 0xa1a   :  { %v8480_v22 = vpop.f32.mrf.mxu0  ;;  %v8502_v23 = vpop.f32.mrf.mxu1 }
 0xa1b   :  { %v8481_v45 = vadd.f32 %v8480_v22, %v8479_v20  ;;  %v8503_v58 = vadd.f32 %v8502_v23, %v8501_v21 }
 0xa1c   :  { %v8482_v30 = vpop.f32.mrf.mxu0  ;;  %v8504_v46 = vpop.f32.mrf.mxu1 }
 0xa1d   :  { %v3294_v54 = vadd.f32 %v8481_v45, %v7727_v48 }
 0xa1e   :  { %v8483_v25 = vpop.f32.mrf.mxu0  ;;  %v8505_v29 = vpop.f32.mrf.mxu1 }
 0xa1f   :  { %v8484_v47 = vadd.f32 %v8483_v25, %v8482_v30  ;;  %v3335_v60 = vadd.f32 %v8503_v58, %v3294_v54  ;;  %v8506_v27 = vadd.f32 %v8505_v29, %v8504_v46 }
 0xa21   :  { %v3297_v51 = vadd.f32 %v8484_v47, %v7727_v48 }
 0xa23   :  { %v3338_v5 = vadd.f32 %v8506_v27, %v3297_v51  ;;  %v7860_v51 = vld [vmem:[%s11500_s7 + $0x30] sm:$0xff]  ;;  %v7867_v27 = vld [vmem:[%s11501_s21 + $0x28] sm:$0xff] }
 0xa38   :  { %v8523_v26 = vpop.f32.mrf.mxu0  ;;  %v8545_v34 = vpop.f32.mrf.mxu1 }
 0xa3a   :  { %v8524_v37 = vpop.f32.mrf.mxu0  ;;  %v8546_v38 = vpop.f32.mrf.mxu1 }
 0xa3b   :  { %v8525_v59 = vadd.f32 %v8524_v37, %v8523_v26  ;;  %v8547_v12 = vadd.f32 %v8546_v38, %v8545_v34 }
 0xa3c   :  { %v8526_v41 = vpop.f32.mrf.mxu0  ;;  %v8548_v43 = vpop.f32.mrf.mxu1 }
 0xa3d   :  { %v3376_v63 = vadd.f32 %v8525_v59, %v3335_v60  ;;  %v7869_v60 = vld [vmem:[%s11501_s21 + $0x38] sm:$0xff] }
 0xa3e   :  { %v8527_v44 = vpop.f32.mrf.mxu0  ;;  %v8549_v13 = vpop.f32.mrf.mxu1  ;;  %9023 = vmatprep.subr.mxu1 %v7869_v60 }
 0xa3f   :  { %v8528_v28 = vadd.f32 %v8527_v44, %v8526_v41  ;;  %v3417_v39 = vadd.f32 %v8547_v12, %v3376_v63  ;;  %v8550_v9 = vadd.f32 %v8549_v13, %v8548_v43  ;;  %9024 = vmatpush3.msra.mxu1 %v7869_v60  ;;  %v7858_v63 = vld [vmem:[%s11500_s7 + $0x20] sm:$0xff] }
 0xa41   :  { %v3379_v8 = vadd.f32 %v8528_v28, %v3338_v5  ;;  %v7866_v28 = vld [vmem:[%s11501_s21 + $0x20] sm:$0xff]  ;;  %v7877_v5 = vld [vmem:[%s11504_s27 + $0x38] sm:$0xff] }
 0xa43   :  { %v3420_v55 = vadd.f32 %v8550_v9, %v3379_v8 }
 0xa58   :  { %v8567_v49 = vpop.f32.mrf.mxu0 }
 0xa59   :  { %v8589_v50 = vpop.f32.mrf.mxu1 }
 0xa5a   :  { %v8568_v57 = vpop.f32.mrf.mxu0 }
 0xa5b   :  { %v8590_v61 = vpop.f32.mrf.mxu1  ;;  %v8569_v6 = vadd.f32 %v8568_v57, %v8567_v49 }
 0xa5c   :  { %v8570_v62 = vpop.f32.mrf.mxu0  ;;  %v8591_v11 = vadd.f32 %v8590_v61, %v8589_v50  ;;  %v7868_v61 = vld [vmem:[%s11501_s21 + $0x30] sm:$0xff] }
 0xa5d   :  { %v8592_v7 = vpop.f32.mrf.mxu1  ;;  %v3458_v10 = vadd.f32 %v8569_v6, %v3417_v39  ;;  %9025 = vmatprep.subr.mxu1 %v7868_v61 }
 0xa5e   :  { %v8571_v33 = vpop.f32.mrf.mxu0  ;;  %9026 = vmatpush3.msra.mxu1 %v7868_v61 }
 0xa5f   :  { %v8572_v36 = vadd.f32 %v8571_v33, %v8570_v62  ;;  %v8593_v42 = vpop.f32.mrf.mxu1  ;;  %v3499_v17 = vadd.f32 %v8591_v11, %v3458_v10  ;;  %v7859_v62 = vld [vmem:[%s11500_s7 + $0x28] sm:$0xff]  ;;  %9027 = vmatprep.subr.mxu1 %v7867_v27  ;;  %v7856_v10 = vld [vmem:[%s11458_s17] ss:$0 sm:$0xff] }
 0xa60   :  { %v8594_v20 = vadd.f32 %v8593_v42, %v8592_v7  ;;  %9028 = vmatpush3.msra.mxu1 %v7867_v27  ;;  %v7857_v42 = vld [vmem:[%s11459_s18] ss:$0 sm:$0xff] }
 0xa61   :  { %v3461_v18 = vadd.f32 %v8572_v36, %v3420_v55  ;;  %9029 = vmatprep.subr.mxu1 %v7866_v28 }
 0xa62   :  { %9030 = vmatpush3.msra.mxu1 %v7866_v28 }
 0xa63   :  { %v3502_v46 = vadd.f32 %v8594_v20, %v3461_v18  ;;  %v7876_v18 = vld [vmem:[%s11504_s27 + $0x30] sm:$0xff] }
 0xa78   :  { %v8611_v35 = vpop.f32.mrf.mxu0 }
 0xa79   :  { %v8633_v16 = vpop.f32.mrf.mxu1 }
 0xa7a   :  { %v8612_v56 = vpop.f32.mrf.mxu0 }
 0xa7b   :  { %v8613_v19 = vadd.f32 %v8612_v56, %v8611_v35  ;;  %v8634_v0 = vpop.f32.mrf.mxu1 }
 0xa7c   :  { %v8614_v40 = vpop.f32.mrf.mxu0  ;;  %v8635_v22 = vadd.f32 %v8634_v0, %v8633_v16  ;;  %v7874_v0 = vld [vmem:[%s11504_s27 + $0x20] sm:$0xff] }
 0xa7d   :  { %v3540_v21 = vadd.f32 %v8613_v19, %v3499_v17  ;;  %v8636_v23 = vpop.f32.mrf.mxu1  ;;  %v7875_v19 = vld [vmem:[%s11504_s27 + $0x28] sm:$0xff]  ;;  %s11511_s27 = smov 120  }
 0xa7e   :  { %v8615_v30 = vpop.f32.mrf.mxu0 }
 0xa7f   :  { %v3581_v25 = vadd.f32 %v8635_v22, %v3540_v21  ;;  %v8616_v26 = vadd.f32 %v8615_v30, %v8614_v40  ;;  %v8637_v29 = vpop.f32.mrf.mxu1  ;;  %v7871_v40 = vld [vmem:[%s11505_s2 + $0x1] ss:$0 sm:$0xff] }
 0xa80   :  { %v8638_v37 = vadd.f32 %v8637_v29, %v8636_v23  ;;  %v7863_v23 = vld [vmem:[%s11506_s6 + $0x1] ss:$0 sm:$0xff] }
 0xa81   :  { %v3543_v34 = vadd.f32 %v8616_v26, %v3502_v46  ;;  %v3587_v38 = vadd.f32 %v3581_v25, %v9967_v53  ;;  %v7879_v29 = vld [vmem:[%s11507_s8 + $0x1] ss:$0 sm:$0xff]  ;;  %s11515_s8 = sld [smem:[#allocation17_spill]] }
 0xa83   :  { %v3584_v41 = vadd.f32 %v8638_v37, %v3543_v34  ;;  %v3591_v43 = vsel %vm104_vm0, %v3587_v38, 0.0 }
 0xa84   :  { %3592 = vadd.xlane.f32.xlu1 %v3591_v43 }
 0xa85   :  { %v3588_v44 = vadd.f32 %v3584_v41, %v9965_v52  ;;  %v7861_v52 = vld [vmem:[%s11500_s7 + $0x38] sm:$0xff] }
 0xa86   :  { %9012 = vmatprep.subr.mxu0 %v7861_v52 }
 0xa87   :  { %v3594_v45 = vsel %vm104_vm0, %v3588_v44, 0.0  ;;  %9013 = vmatpush3.msra.mxu0 %v7861_v52 }
 0xa88   :  { %3595 = vadd.xlane.f32.xlu0 %v3594_v45  ;;  %9014 = vmatprep.subr.mxu0 %v7860_v51 }
 0xa89   :  { %9015 = vmatpush3.msra.mxu0 %v7860_v51 }
 0xa8a   :  { %9016 = vmatprep.subr.mxu0 %v7859_v62 }
 0xa8b   :  { %9017 = vmatpush3.msra.mxu0 %v7859_v62 }
 0xa8c   :  { %9018 = vmatprep.subr.mxu0 %v7858_v63 }
 0xa8d   :  { %9019 = vmatpush3.msra.mxu0 %v7858_v63 }
 0xa8e   :  { %9034 = vmatprep.subr.mxu0 %v7877_v5 }
 0xb0d   :  { %v3593_v48 = vpop.xlane.xlu1 %3592 }
 0xb0e   :  { %v3597_v49 = vmul.f32 0.03125, %v3593_v48 }
 0xb10   :  { %v3599_v13 = vsub.f32 %v3587_v38, %v3597_v49 }
 0xb11   :  { %v3596_v54 = vpop.xlane.xlu0 %3595 }
 0xb12   :  { %v3598_v47 = vmul.f32 0.03125, %v3596_v54  ;;  %v3601_v50 = vmul.f32 %v3599_v13, %v3599_v13 }
 0xb14   :  { %v3600_v57 = vsub.f32 %v3588_v44, %v3598_v47  ;;  %v3603_v58 = vsel %vm104_vm0, %v3601_v50, 0.0 }
 0xb15   :  { %3604 = vadd.xlane.f32.xlu1 %v3603_v58 }
 0xb16   :  { %v3602_v53 = vmul.f32 %v3600_v57, %v3600_v57 }
 0xb18   :  { %v3606_v59 = vsel %vm104_vm0, %v3602_v53, 0.0 }
 0xb19   :  { %3607 = vadd.xlane.f32.xlu0 %v3606_v59  ;;  %v10659_v59 = vld [vmem:[%s11508_s0] sm:$0xff] }
 0xb9e   :  { %v3605_v12 = vpop.xlane.xlu1 %3604 }
 0xb9f   :  { %v3609_v6 = vmul.f32 0.03125, %v3605_v12 }
 0xba1   :  { %v3611_v7 = vadd.f32 1e-05, %v3609_v6 }
 0xba2   :  { %v3608_v33 = vpop.xlane.xlu0 %3607 }
 0xba3   :  { %9467 = vrsqrt.f32 %v3611_v7  ;;  %v3610_v39 = vmul.f32 0.03125, %v3608_v33 }
 0xba5   :  { %v3612_v8 = vadd.f32 1e-05, %v3610_v39 }
 0xba7   :  { %9469 = vrsqrt.f32 %v3612_v8 }
 0xbb0   :  { %v9468_v9 = vpop.eup %9467 }
 0xbb1   :  { %v3615_v36 = vmul.f32 %v9468_v9, %v3599_v13 }
 0xbb3   :  { %v3623_v35 = vmul.f32 %v7856_v10, %v3615_v36 }
 0xbb4   :  { %v9470_v55 = vpop.eup %9469 }
 0xbb5   :  { %v3616_v11 = vmul.f32 %v9470_v55, %v3600_v57  ;;  %v10573_v16 = vadd.f32 %v7857_v42, %v3623_v35  ;;  %v10652_v57 = vld [vmem:[%s11508_s0 + $0x8] sm:$0xff] }
 0xbb7   :  { %v3624_v56 = vmul.f32 %v7856_v10, %v3616_v11  ;;  %9020 = vmatprep.mubr.msk.f32.mxu0 %vm104_vm0, %v10573_v16  ;;  %9031 = vmatprep.mubr.msk.f32.mxu1 %vm104_vm0, %v10573_v16 }
 0xbb9   :  { %v10579_v17 = vadd.f32 %v7857_v42, %v3624_v56 }
 0xbbb   :  { %9021 = vmatmul.mubr.msk.f32.vlgmr.msra.gmra.mxu0 %vm104_vm0, %v10579_v17  ;;  %9032 = vmatmul.mubr.msk.f32.vlgmr.msra.gmra.mxu1 %vm104_vm0, %v10579_v17 }
 0xbbc   :  { %9035 = vmatpush3.msra.mxu0 %v7877_v5  ;;  %9042 = vmatprep.mubr.msk.f32.mxu0 %vm104_vm0, %v10573_v16 }
 0xbbd   :  { %9036 = vmatprep.subr.mxu0 %v7876_v18 }
 0xbbe   :  { %9037 = vmatpush3.msra.mxu0 %v7876_v18 }
 0xbbf   :  { %9038 = vmatprep.subr.mxu0 %v7875_v19 }
 0xbc0   :  { %9039 = vmatpush3.msra.mxu0 %v7875_v19 }
 0xbc1   :  { %9040 = vmatprep.subr.mxu0 %v7874_v0 }
 0xbc2   :  { %9041 = vmatpush3.msra.mxu0 %v7874_v0 }
 0xbc3   :  { %9043 = vmatmul.mubr.msk.f32.vlgmr.msra.gmra.mxu0 %vm104_vm0, %v10579_v17 }
 0xc7b   :  { %v9022_v20 = vpop.f32.mrf.mxu0  ;;  %v9033_v21 = vpop.f32.mrf.mxu1 }
 0xc7c   :  { %v10601_v22 = vadd.f32 %v9033_v21, %v7871_v40  ;;  %v10629_v37 = vadd.f32 %v9022_v20, %v7863_v23 }
 0xc7d   :  { %v3718_v30 = vpop.f32.mrf.mxu0  ;;  %v3806_v46 = vpop.f32.mrf.mxu1 }
 0xc7e   :  { %v10606_v25 = vadd.f32 %v7863_v23, %v3718_v30  ;;  %v10608_v26 = vadd.f32 %v7871_v40, %v3806_v46  ;;  %4108 = vrot.lane.b32.xlu1 %v10601_v22, %s11511_s27  ;;  %9045 = vmatprep.subr.msk.mxu1 %vm362_vm1, %v10601_v22  ;;  %v7883_v40 = vld [vmem:[%s11509_s28 + $0x28] sm:$0xff] }
 0xc7f   :  { %9046 = vmatpush3.xpose.msk.msra.mxu1 %vm362_vm1, %v10601_v22 }
 0xc80   :  { %4106 = vrot.lane.b32.xlu0 %v10608_v26, %s11511_s27  ;;  %9047 = vmatprep.subr.msk.mxu1 %vm362_vm1, %v10608_v26 }
 0xc81   :  { %9049 = vmatprep.mubr.msk.f32.mxu1 %vm362_vm1, %v10606_v25 }
 0xc82   :  { %4102 = vrot.lane.b32.xlu1 %v10606_v25, %s11511_s27 }
 0xc83   :  { %v9044_v34 = vpop.f32.mrf.mxu0  ;;  %9048 = vmatpush3.xpose.msk.msra.mxu1 %vm362_vm1, %v10608_v26 }
 0xc84   :  { %v10631_v38 = vadd.f32 %v9044_v34, %v7879_v29 }
 0xc85   :  { %v3894_v41 = vpop.f32.mrf.mxu0 }
 0xc86   :  { %v10633_v43 = vadd.f32 %v7879_v29, %v3894_v41  ;;  %9052 = vmatprep.subr.mxu0 %v10631_v38  ;;  %4104 = vrot.lane.b32.xlu1 %v10629_v37, %s11511_s27  ;;  %v7882_v41 = vld [vmem:[%s11509_s28 + $0x20] sm:$0xff] }
 0xc87   :  { %9053 = vmatpush3.msra.mxu0 %v10631_v38  ;;  %9050 = vmatmul.mubr.msk.f32.vlgmr.msra.gmra.mxu1 %vm362_vm1, %v10629_v37 }
 0xc88   :  { %9054 = vmatprep.subr.mxu0 %v10633_v43 }
 0xc89   :  { %9055 = vmatpush3.msra.mxu0 %v10633_v43 }
 0xcf0   :  { %v4109_v44 = vpop.permute.xlu1 %4108 }
 0xcf1   :  { %9059 = vmatprep.subr.msk.mxu1 %vm362_vm1, %v4109_v44 }
 0xcf2   :  { %v4107_v45 = vpop.permute.xlu0 %4106  ;;  %9060 = vmatpush3.xpose.msk.msra.mxu1 %vm362_vm1, %v4109_v44 }
 0xcf3   :  { %9061 = vmatprep.subr.msk.mxu1 %vm362_vm1, %v4107_v45 }
 0xcf4   :  { %v4103_v48 = vpop.permute.xlu1 %4102 }
 0xcf5   :  { %9063 = vmatprep.mubr.msk.f32.mxu1 %vm362_vm1, %v4103_v48 }
 0xcf6   :  { %9062 = vmatpush3.xpose.msk.msra.mxu1 %vm362_vm1, %v4107_v45 }
 0xcf7   :  { %9078 = vmatprep.subr.mxu1 %v7882_v41 }
 0xcf8   :  { %v4105_v49 = vpop.permute.xlu1 %4104 }
 0xcf9   :  { %9064 = vmatmul.mubr.msk.f32.vlgmr.msra.gmra.mxu1 %vm362_vm1, %v4105_v49 }
 0xcfa   :  { %9079 = vmatpush3.msra.mxu1 %v7882_v41 }
 0xd47   :  { %v9051_v13 = vpop.f32.mrf.mxu1 }
 0xd48   :  { %v3996_v54 = vmul.f32 0.35355338, %v9051_v13 }
 0xd49   :  { %v3986_v47 = vpop.f32.mrf.mxu1 }
 0xd4a   :  { %v3995_v50 = vmul.f32 0.35355338, %v3986_v47  ;;  %v3998_v58 = vadd.f32 %v10652_v57, %v3996_v54 }
 0xd4c   :  { %v4002_v53 = vsel %vm454_vm2, %v3998_v58, -inf  ;;  %v3997_v52 = vadd.f32 %v10659_v59, %v3995_v50 }
 0xd4d   :  { %4003 = vmax.xlane.f32.xlu1 %v4002_v53 }
 0xd4e   :  { %v3999_v60 = vsel %vm454_vm2, %v3997_v52, -inf }
 0xd4f   :  { %4000 = vmax.xlane.f32.xlu0 %v3999_v60 }
 0xd5e   :  { %4219 = vrot.lane.b32.xlu1 %v10631_v38, %s11511_s27 }
 0xd62   :  { %4476 = vrot.lane.b32.xlu1 %v10601_v22, %s11512_s4 }
 0xd66   :  { %4470 = vrot.lane.b32.xlu1 %v10606_v25, %s11512_s4 }
 0xdb9   :  { %v9065_v51 = vpop.f32.mrf.mxu1 }
 0xdba   :  { %v4194_v61 = vmul.f32 0.35355338, %v9065_v51 }
 0xdbb   :  { %v4184_v62 = vpop.f32.mrf.mxu1 }
 0xdbc   :  { %v4193_v27 = vmul.f32 0.35355338, %v4184_v62  ;;  %v4196_v63 = vadd.f32 %v10652_v57, %v4194_v61 }
 0xdbe   :  { %v4200_v28 = vsel %vm454_vm2, %v4196_v63, -inf  ;;  %v4195_v5 = vadd.f32 %v10659_v59, %v4193_v27 }
 0xdbf   :  { %4201 = vmax.xlane.f32.xlu0 %v4200_v28 }
 0xdc0   :  { %v4197_v12 = vsel %vm454_vm2, %v4195_v5, -inf }
 0xdc3   :  { %4198 = vmax.xlane.f32.xlu0 %v4197_v12 }
 0xdd6   :  { %v4004_v6 = vpop.xlane.xlu1 %4003 }
 0xdd7   :  { %v4006_v7 = vsub.f32 %v3998_v58, %v4004_v6 }
 0xdd8   :  { %v4001_v33 = vpop.xlane.xlu0 %4000 }
 0xdd9   :  { %v4005_v39 = vsub.f32 %v3997_v52, %v4001_v33  ;;  %4217 = vrot.lane.b32.xlu0 %v10633_v43, %s11511_s27  ;;  %v4009_v8 = vmul.f32 1.442695, %v4006_v7 }
 0xdda   :  { %v4220_v9 = vpop.permute.xlu1 %4219 }
 0xddb   :  { %v4007_v10 = vmul.f32 1.442695, %v4005_v39  ;;  %9066 = vmatprep.subr.mxu0 %v4220_v9 }
 0xddd   :  { %9471 = vpow2.f32 %v4007_v10 }
 0xdde   :  { %9473 = vpow2.f32 %v4009_v8  ;;  %v4477_v46 = vpop.permute.xlu1 %4476 }
 0xdea   :  { %v9472_v36 = vpop.eup %9471 }
 0xdeb   :  { %v9474_v42 = vpop.eup %9473  ;;  %9056 = vmatprep.mubr.msk.f32.mxu0 %vm454_vm2, %v9472_v36  ;;  %v4011_v29 = vsel %vm454_vm2, %v9472_v36, 0.0 }
 0xdec   :  { %9057 = vmatmul.mubr.msk.f32.vlgmr.msra.gmra.mxu0 %vm454_vm2, %v9474_v42  ;;  %v4014_v34 = vsel %vm454_vm2, %v9474_v42, 0.0 }
 0xded   :  { %9067 = vmatpush3.msra.mxu0 %v4220_v9 }
 0xe48   :  { %v4202_v35 = vpop.xlane.xlu0 %4201 }
 0xe49   :  { %v4204_v55 = vsub.f32 %v4196_v63, %v4202_v35 }
 0xe4b   :  { %v4207_v11 = vmul.f32 1.442695, %v4204_v55 }
 0xe4c   :  { %v4199_v56 = vpop.xlane.xlu0 %4198 }
 0xe4d   :  { %9475 = vpow2.f32 %v4207_v11  ;;  %v4203_v18 = vsub.f32 %v4195_v5, %v4199_v56 }
 0xe4f   :  { %v4205_v19 = vmul.f32 1.442695, %v4203_v18 }
 0xe50   :  { %v4218_v0 = vpop.permute.xlu0 %4217 }
 0xe51   :  { %9477 = vpow2.f32 %v4205_v19  ;;  %9068 = vmatprep.subr.mxu0 %v4218_v0 }
 0xe52   :  { %9069 = vmatpush3.msra.mxu0 %v4218_v0 }
 0xe53   :  { %9073 = vmatprep.subr.mxu0 %v7883_v40 }
 0xe5a   :  { %v9476_v20 = vpop.eup %9475 }
 0xe5b   :  { %v4212_v21 = vsel %vm454_vm2, %v9476_v20, 0.0 }
 0xe5c   :  { %4213 = vadd.xlane.f32.xlu0 %v4212_v21 }
 0xe5e   :  { %v9478_v23 = vpop.eup %9477 }
 0xe5f   :  { %9070 = vmatprep.mubr.msk.f32.mxu0 %vm454_vm2, %v9478_v23  ;;  %v4209_v30 = vsel %vm454_vm2, %v9478_v23, 0.0 }
 0xe60   :  { %4210 = vadd.xlane.f32.xlu1 %v4209_v30  ;;  %9071 = vmatmul.mubr.msk.f32.vlgmr.msra.gmra.mxu0 %vm454_vm2, %v9476_v20 }
 0xe61   :  { %9074 = vmatpush3.msra.mxu0 %v7883_v40 }
 0xe62   :  { %9083 = vmatprep.subr.msk.mxu0 %vm362_vm1, %v4477_v46 }
 0xe71   :  { %4472 = vrot.lane.b32.xlu1 %v10629_v37, %s11512_s4 }
 0xe72   :  { %4474 = vrot.lane.b32.xlu0 %v10608_v26, %s11512_s4 }
 0xe75   :  { %4761 = vrot.lane.b32.xlu1 %v10608_v26, %s11513_s1 }
 0xe76   :  { %4763 = vrot.lane.b32.xlu0 %v10601_v22, %s11513_s1  ;;  %v4471_v22 = vpop.permute.xlu1 %4470 }
 0xe79   :  { %4759 = vrot.lane.b32.xlu1 %v10629_v37, %s11513_s1 }
 0xe7a   :  { %4757 = vrot.lane.b32.xlu0 %v10606_v25, %s11513_s1 }
 0xe99   :  { %4012 = vadd.xlane.f32.xlu0 %v4011_v29 }
 0xe9d   :  { %4015 = vadd.xlane.f32.xlu1 %v4014_v34 }
 0xeac   :  { %v9058_v48 = vpop.f32.mrf.mxu0 }
 0xeae   :  { %4585 = vrot.lane.b32.xlu1 %v10631_v38, %s11512_s4  ;;  %v4089_v13 = vpop.f32.mrf.mxu0 }
 0xee5   :  { %v4214_v26 = vpop.xlane.xlu0 %4213 }
 0xee9   :  { %v4211_v37 = vpop.xlane.xlu1 %4210  ;;  %v4475_v44 = vpop.permute.xlu0 %4474 }
 0xeea   :  { %9479 = vrcp.f32 %v4211_v37 }
 0xeeb   :  { %9481 = vrcp.f32 %v4214_v26 }
 0xeed   :  { %v4473_v25 = vpop.permute.xlu1 %4472  ;;  %v4764_v45 = vpop.permute.xlu0 %4763 }
 0xef1   :  { %v4762_v49 = vpop.permute.xlu1 %4761  ;;  %v4758_v54 = vpop.permute.xlu0 %4757 }
 0xef5   :  { %v4760_v50 = vpop.permute.xlu1 %4759 }
 0xef7   :  { %v9480_v58 = vpop.eup %9479 }
 0xef8   :  { %v9482_v60 = vpop.eup %9481 }
 0xf20   :  { %v9072_v47 = vpop.f32.mrf.mxu0 }
 0xf21   :  { %v4307_v61 = vmul.f32 %v9482_v60, %v9072_v47 }
 0xf22   :  { %v4295_v53 = vpop.f32.mrf.mxu0  ;;  %v4013_v52 = vpop.xlane.xlu0 %4012 }
 0xf23   :  { %v4306_v51 = vmul.f32 %v9480_v58, %v4295_v53  ;;  %9483 = vrcp.f32 %v4013_v52 }
 0xf25   :  { %9075 = vmatprep.mubr.msk.f32.mxu0 %vm362_vm1, %v4306_v51 }
 0xf26   :  { %v4016_v62 = vpop.xlane.xlu1 %4015  ;;  %9076 = vmatmul.mubr.msk.f32.vlgmr.msra.gmra.mxu0 %vm362_vm1, %v4307_v61 }
 0xf27   :  { %9485 = vrcp.f32 %v4016_v62  ;;  %9084 = vmatpush3.xpose.msk.msra.mxu0 %vm362_vm1, %v4477_v46  ;;  %9087 = vmatprep.mubr.msk.f32.mxu0 %vm362_vm1, %v4471_v22 }
 0xf28   :  { %9085 = vmatprep.subr.msk.mxu0 %vm362_vm1, %v4475_v44 }
 0xf2a   :  { %v4586_v27 = vpop.permute.xlu1 %4585 }
 0xf2b   :  { %9086 = vmatpush3.xpose.msk.msra.mxu0 %vm362_vm1, %v4475_v44  ;;  %9090 = vmatprep.subr.mxu1 %v4586_v27 }
 0xf2c   :  { %9102 = vmatprep.subr.msk.mxu0 %vm362_vm1, %v4764_v45 }
 0xf2e   :  { %9088 = vmatmul.mubr.msk.f32.vlgmr.msra.gmra.mxu0 %vm362_vm1, %v4473_v25  ;;  %v7884_v25 = vld [vmem:[%s11509_s28 + $0x30] sm:$0xff] }
 0xf2f   :  { %9103 = vmatpush3.xpose.msk.msra.mxu0 %vm362_vm1, %v4764_v45  ;;  %9106 = vmatprep.mubr.msk.f32.mxu0 %vm362_vm1, %v4758_v54 }
 0xf30   :  { %v9484_v63 = vpop.eup %9483  ;;  %9104 = vmatprep.subr.msk.mxu0 %vm362_vm1, %v4762_v49 }
 0xf31   :  { %v4100_v28 = vmul.f32 %v9484_v63, %v4089_v13 }
 0xf33   :  { %9105 = vmatpush3.xpose.msk.msra.mxu0 %vm362_vm1, %v4762_v49  ;;  %9080 = vmatprep.mubr.msk.f32.mxu1 %vm362_vm1, %v4100_v28 }
 0xf34   :  { %v9486_v5 = vpop.eup %9485 }
 0xf35   :  { %v4101_v12 = vmul.f32 %v9486_v5, %v9058_v48 }
 0xf36   :  { %9107 = vmatmul.mubr.msk.f32.vlgmr.msra.gmra.mxu0 %vm362_vm1, %v4760_v50 }
 0xf37   :  { %9081 = vmatmul.mubr.msk.f32.vlgmr.msra.gmra.mxu1 %vm362_vm1, %v4101_v12  ;;  %5416 = vmatprep.mubr.bf16.mxu0 %v9538_v24 }
 0xf38   :  { %9091 = vmatpush3.msra.mxu1 %v4586_v27 }
 0xfe6   :  { %v9077_v6 = vpop.f32.mrf.mxu0 }
 0xfe8   :  { %v10720_v7 = vpop.f32.mrf.mxu0 }
 0xfee   :  { %v9089_v33 = vpop.f32.mrf.mxu0 }
 0xfef   :  { %v4562_v39 = vmul.f32 0.35355338, %v9089_v33 }
 0xff0   :  { %v4552_v8 = vpop.f32.mrf.mxu0 }
 0xff1   :  { %v4561_v9 = vmul.f32 0.35355338, %v4552_v8  ;;  %v4564_v10 = vadd.f32 %v10652_v57, %v4562_v39 }
 0xff3   :  { %v4568_v36 = vsel %vm454_vm2, %v4564_v10, -inf  ;;  %v4563_v42 = vadd.f32 %v10659_v59, %v4561_v9 }
 0xff4   :  { %4569 = vmax.xlane.f32.xlu0 %v4568_v36 }
 0xff5   :  { %v4565_v55 = vsel %vm454_vm2, %v4563_v42, -inf }
 0xff6   :  { %v9108_v35 = vpop.f32.mrf.mxu0 }
 0xff7   :  { %v9082_v11 = vpop.f32.mrf.mxu1  ;;  %v4849_v20 = vmul.f32 0.35355338, %v9108_v35 }
 0xff8   :  { %4566 = vmax.xlane.f32.xlu0 %v4565_v55  ;;  %v10726_v56 = vadd.f32 %v9082_v11, %v9077_v6  ;;  %v4839_v18 = vpop.f32.mrf.mxu0  ;;  %v7885_v6 = vld [vmem:[%s11509_s28 + $0x38] sm:$0xff] }
 0xff9   :  { %v4848_v19 = vmul.f32 0.35355338, %v4839_v18  ;;  %v4851_v21 = vadd.f32 %v10652_v57, %v4849_v20  ;;  %v4461_v51 = vpop.f32.mrf.mxu1 }
 0xffa   :  { %v4462_v9 = vadd.f32 %v4461_v51, %v10720_v7  ;;  %v7919_v7 = vld [vmem:[%s11510_s10 + $0x1] ss:$0 sm:$0xff]  ;;  %v7933_v51 = vld [vmem:[%s11454_s13 + $0x148] sm:$0xff] }
 0xffb   :  { %v4850_v0 = vadd.f32 %v10659_v59, %v4848_v19  ;;  %v4855_v23 = vsel %vm454_vm2, %v4851_v21, -inf }
 0xffd   :  { %v4852_v40 = vsel %vm454_vm2, %v4850_v0, -inf }
 0xffe   :  { %4853 = vmax.xlane.f32.xlu1 %v4852_v40 }
0x100e   :  { %4583 = vrot.lane.b32.xlu0 %v10633_v43, %s11512_s4 }
0x102d   :  { %4856 = vmax.xlane.f32.xlu0 %v4855_v23 }
0x107d   :  { %v4570_v30 = vpop.xlane.xlu0 %4569 }
0x107e   :  { %v4572_v46 = vsub.f32 %v4564_v10, %v4570_v30 }
0x1080   :  { %v4575_v29 = vmul.f32 1.442695, %v4572_v46 }
0x1081   :  { %v4567_v34 = vpop.xlane.xlu0 %4566 }
0x1082   :  { %9487 = vpow2.f32 %v4575_v29  ;;  %v4571_v41 = vsub.f32 %v4563_v42, %v4567_v34 }
0x1084   :  { %v4573_v22 = vmul.f32 1.442695, %v4571_v41 }
0x1085   :  { %v4584_v59 = vpop.permute.xlu0 %4583 }
0x1086   :  { %9489 = vpow2.f32 %v4573_v22  ;;  %9092 = vmatprep.subr.mxu1 %v4584_v59 }
0x1087   :  { %9093 = vmatpush3.msra.mxu1 %v4584_v59  ;;  %v4854_v45 = vpop.xlane.xlu1 %4853 }
0x1088   :  { %9097 = vmatprep.subr.mxu1 %v7884_v25  ;;  %v4858_v48 = vsub.f32 %v4850_v0, %v4854_v45 }
0x108a   :  { %v4860_v49 = vmul.f32 1.442695, %v4858_v48  ;;  %v7940_v48 = vld [vmem:[%s11454_s13 + $0x180] sm:$0xff] }
0x108c   :  { %9491 = vpow2.f32 %v4860_v49  ;;  %v7948_v49 = vld [vmem:[%s11454_s13 + $0x1c0] sm:$0xff] }
0x108f   :  { %v9488_v26 = vpop.eup %9487 }
0x1090   :  { %v4580_v37 = vsel %vm454_vm2, %v9488_v26, 0.0 }
0x1091   :  { %4581 = vadd.xlane.f32.xlu0 %v4580_v37 }
0x1093   :  { %v9490_v44 = vpop.eup %9489 }
0x1094   :  { %9094 = vmatprep.mubr.msk.f32.mxu1 %vm454_vm2, %v9490_v44  ;;  %v4577_v57 = vsel %vm454_vm2, %v9490_v44, 0.0 }
0x1095   :  { %4578 = vadd.xlane.f32.xlu1 %v4577_v57  ;;  %9095 = vmatmul.mubr.msk.f32.vlgmr.msra.gmra.mxu1 %vm454_vm2, %v9488_v26 }
0x1096   :  { %9098 = vmatpush3.msra.mxu1 %v7884_v25 }
0x1099   :  { %v9492_v50 = vpop.eup %9491 }
0x109a   :  { %v4864_v53 = vsel %vm454_vm2, %v9492_v50, 0.0 }
0x10a6   :  { %4872 = vrot.lane.b32.xlu1 %v10631_v38, %s11513_s1 }
0x10a7   :  { %4870 = vrot.lane.b32.xlu0 %v10633_v43, %s11513_s1 }
0x10b6   :  { %v4857_v13 = vpop.xlane.xlu0 %4856 }
0x10b7   :  { %v4859_v54 = vsub.f32 %v4851_v21, %v4857_v13  ;;  %v7941_v13 = vld [vmem:[%s11454_s13 + $0x188] sm:$0xff] }
0x10b9   :  { %v4862_v47 = vmul.f32 1.442695, %v4859_v54  ;;  %v7975_v54 = vcombine.high %v7940_v48, %v7948_v49 }
0x10bb   :  { %9493 = vpow2.f32 %v4862_v47  ;;  %v7949_v47 = vld [vmem:[%s11454_s13 + $0x1c8] sm:$0xff]  ;;  %5396 = vmatprep.subr.bf16.mxu0 %v7975_v54 }
0x10bc   :  { %v7937_v54 = vld [vmem:[%s11454_s13 + $0x168] sm:$0xff] }
0x10c8   :  { %v9494_v58 = vpop.eup %9493 }
0x10c9   :  { %v4867_v52 = vsel %vm454_vm2, %v9494_v58, 0.0 }
0x10ca   :  { %4865 = vadd.xlane.f32.xlu1 %v4864_v53  ;;  %4868 = vadd.xlane.f32.xlu0 %v4867_v52  ;;  %v7977_v53 = vcombine.high %v7941_v13, %v7949_v47  ;;  %v7924_v52 = vld [vmem:[%s11454_s13 + $0x100] sm:$0xff] }
0x111a   :  { %v4582_v43 = vpop.xlane.xlu0 %4581 }
0x111e   :  { %v4579_v38 = vpop.xlane.xlu1 %4578  ;;  %v4871_v12 = vpop.permute.xlu0 %4870 }
0x111f   :  { %9495 = vrcp.f32 %v4579_v38  ;;  %v7932_v38 = vld [vmem:[%s11454_s13 + $0x140] sm:$0xff] }
0x1120   :  { %9497 = vrcp.f32 %v4582_v43  ;;  %v7959_v43 = vcombine.high %v7924_v52, %v7932_v38 }
0x1122   :  { %v4873_v60 = vpop.permute.xlu1 %4872 }
0x1123   :  { %9109 = vmatprep.subr.mxu1 %v4873_v60 }
0x112c   :  { %v9496_v62 = vpop.eup %9495 }
0x112d   :  { %v9498_v63 = vpop.eup %9497 }
0x1153   :  { %v4866_v33 = vpop.xlane.xlu1 %4865  ;;  %v4869_v39 = vpop.xlane.xlu0 %4868 }
0x1154   :  { %9499 = vrcp.f32 %v4866_v33 }
0x1155   :  { %v9096_v61 = vpop.f32.mrf.mxu1  ;;  %9501 = vrcp.f32 %v4869_v39 }
0x1156   :  { %v4673_v5 = vmul.f32 %v9498_v63, %v9096_v61  ;;  %v7958_v61 = vcombine.low %v7924_v52, %v7932_v38  ;;  %v7942_v63 = vld [vmem:[%s11454_s13 + $0x190] sm:$0xff] }
0x1157   :  { %v4661_v27 = vpop.f32.mrf.mxu1  ;;  %v7946_v52 = vld [vmem:[%s11454_s13 + $0x1b0] sm:$0xff] }
0x1158   :  { %v4672_v28 = vmul.f32 %v9496_v62, %v4661_v27  ;;  %v7954_v38 = vld [vmem:[%s11454_s13 + $0x1f0] sm:$0xff] }
0x115a   :  { %9099 = vmatprep.mubr.msk.f32.mxu1 %vm362_vm1, %v4672_v28  ;;  %v7950_v28 = vld [vmem:[%s11454_s13 + $0x1d0] sm:$0xff] }
0x115b   :  { %9100 = vmatmul.mubr.msk.f32.vlgmr.msra.gmra.mxu1 %vm362_vm1, %v4673_v5  ;;  %v7943_v5 = vld [vmem:[%s11454_s13 + $0x198] sm:$0xff]  ;;  %v7978_v33 = vcombine.low %v7942_v63, %v7950_v28 }
0x115c   :  { %9110 = vmatpush3.msra.mxu1 %v4873_v60  ;;  %9113 = vmatprep.mubr.msk.f32.mxu1 %vm454_vm2, %v9492_v50  ;;  %v7974_v50 = vcombine.low %v7940_v48, %v7948_v49  ;;  %v7925_v60 = vld [vmem:[%s11454_s13 + $0x108] sm:$0xff]  ;;  %v7928_v48 = vld [vmem:[%s11454_s13 + $0x120] sm:$0xff] }
0x115d   :  { %9111 = vmatprep.subr.mxu1 %v4871_v12  ;;  %v7960_v62 = vcombine.low %v7925_v60, %v7933_v51  ;;  %v7961_v27 = vcombine.high %v7925_v60, %v7933_v51  ;;  %v7936_v49 = vld [vmem:[%s11454_s13 + $0x160] sm:$0xff]  ;;  %v7947_v60 = vld [vmem:[%s11454_s13 + $0x1b8] sm:$0xff] }
0x115e   :  { %9112 = vmatpush3.msra.mxu1 %v4871_v12  ;;  %5397 = vmatpush1.bf16.msra.mxu0 %v7974_v50  ;;  %v7979_v12 = vcombine.high %v7942_v63, %v7950_v28  ;;  %v7966_v51 = vcombine.low %v7928_v48, %v7936_v49  ;;  %v7930_v63 = vld [vmem:[%s11454_s13 + $0x130] sm:$0xff] }
0x115f   :  { %9114 = vmatmul.mubr.msk.f32.vlgmr.msra.gmra.mxu1 %vm454_vm2, %v9494_v58  ;;  %9116 = vmatprep.subr.mxu1 %v7885_v6  ;;  %v7976_v58 = vcombine.low %v7941_v13, %v7949_v47  ;;  %v7929_v13 = vld [vmem:[%s11454_s13 + $0x128] sm:$0xff]  ;;  %v7938_v28 = vld [vmem:[%s11454_s13 + $0x170] sm:$0xff] }
0x1160   :  { %9117 = vmatpush3.msra.mxu1 %v7885_v6  ;;  %5398 = vmatprep.subr.bf16.mxu0 %v7959_v43  ;;  %v7951_v6 = vld [vmem:[%s11454_s13 + $0x1d8] sm:$0xff] }
0x1161   :  { %v9500_v55 = vpop.eup %9499  ;;  %5439 = vmatprep.subr.bf16.mxu1 %v7977_v53  ;;  %v7980_v39 = vcombine.low %v7943_v5, %v7951_v6  ;;  %v7969_v53 = vcombine.high %v7929_v13, %v7937_v54  ;;  %v7955_v43 = vld [vmem:[%s11454_s13 + $0x1f8] sm:$0xff] }
0x1162   :  { %v9502_v18 = vpop.eup %9501  ;;  %5399 = vmatpush1.bf16.msra.mxu0 %v7958_v61  ;;  %v7968_v61 = vcombine.low %v7929_v13, %v7937_v54  ;;  %v9333_v13 = vld [vmem:[%s11456_s15 + $0x400] sm:$0xff]  }
0x1163   :  { %5482 = vmatprep.subr.bf16.mxu0 %v7979_v12  ;;  %v7939_v12 = vld [vmem:[%s11454_s13 + $0x178] sm:$0xff]  ;;  %v9334_v54 = vld [vmem:[%s11456_s15 + $0x480] sm:$0xff]  }
0x121b   :  { %v9101_v8 = vpop.f32.mrf.mxu1 }
0x121c   :  { %v4756_v10 = vadd.f32 %v9101_v8, %v10726_v56  ;;  %v7981_v8 = vcombine.high %v7943_v5, %v7951_v6  ;;  %v7931_v5 = vld [vmem:[%s11454_s13 + $0x138] sm:$0xff]  ;;  %v7986_v6 = vcombine.low %v7946_v52, %v7954_v38 }
0x121d   :  { %v4746_v36 = vpop.f32.mrf.mxu1 }
0x121e   :  { %v4755_v42 = vadd.f32 %v4746_v36, %v4462_v9 }
0x121f   :  { %v9115_v35 = vpop.f32.mrf.mxu1 }
0x1220   :  { %v4960_v0 = vmul.f32 %v9502_v18, %v9115_v35  ;;  %v7922_v18 = vld [vmem:[%s11452_s11 + $0x1] ss:$0 sm:$0xff] }
0x1221   :  { %v4948_v11 = vpop.f32.mrf.mxu1 }
0x1222   :  { %v4959_v19 = vmul.f32 %v9500_v55, %v4948_v11 }
0x1224   :  { %9118 = vmatprep.mubr.msk.f32.mxu1 %vm362_vm1, %v4959_v19 }
0x1225   :  { %9119 = vmatmul.mubr.msk.f32.vlgmr.msra.gmra.mxu1 %vm362_vm1, %v4960_v0 }
0x1226   :  { %5459 = vmatprep.mubr.bf16.mxu1 %v9538_v24  ;;  %5440 = vmatpush1.bf16.msra.mxu1 %v7976_v58  ;;  %v7967_v58 = vcombine.high %v7928_v48, %v7936_v49  ;;  %v9331_v48 = vld [vmem:[%s11456_s15 + $0x440] sm:$0xff]  }
0x1227   :  { %5441 = vmatprep.subr.bf16.mxu1 %v7961_v27  ;;  %v7989_v27 = vcombine.high %v7947_v60, %v7955_v43  ;;  %v9332_v49 = vld [vmem:[%s11456_s15 + $0x4c0] sm:$0xff]  }
0x122a   :  { %5442 = vmatpush1.bf16.msra.mxu1 %v7960_v62  ;;  %v7987_v62 = vcombine.high %v7946_v52, %v7954_v38 }
0x122b   :  { %5525 = vmatprep.subr.bf16.mxu1 %v7981_v8  ;;  %v7973_v8 = vcombine.high %v7931_v5, %v7939_v12 }
0x12e5   :  { %v9120_v40 = vpop.f32.mrf.mxu1 }
0x12e6   :  { %v5043_v20 = vadd.f32 %v9120_v40, %v4756_v10 }
0x12e7   :  { %v5033_v21 = vpop.f32.mrf.mxu1 }
0x12e8   :  { %v5045_v56 = vadd.f32 %v5043_v20, %v10579_v17  ;;  %v5042_v23 = vadd.f32 %v5033_v21, %v4755_v42  ;;  %v7923_v21 = vld [vmem:[%s11453_s12 + $0x1] ss:$0 sm:$0xff]  ;;  %s11514_s12 = sld [smem:[#allocation16_spill]] }
0x12ea   :  { %v5044_v30 = vadd.f32 %v5042_v23, %v10573_v16  ;;  %v5055_v46 = vadd.f32 %v7919_v7, %v5045_v56  ;;  %v7926_v56 = vld [vmem:[%s11454_s13 + $0x110] sm:$0xff] }
0x12eb   :  { %v7934_v23 = vld [vmem:[%s11454_s13 + $0x150] sm:$0xff] }
0x12ec   :  { %v5063_v29 = vsel %vm104_vm0, %v5055_v46, 0.0  ;;  %v5054_v34 = vadd.f32 %v7919_v7, %v5044_v30  ;;  %v7927_v30 = vld [vmem:[%s11454_s13 + $0x118] sm:$0xff] }
0x12ed   :  { %5064 = vadd.xlane.f32.xlu0 %v5063_v29 }
0x12ee   :  { %v5060_v41 = vsel %vm104_vm0, %v5054_v34, 0.0 }
0x12ef   :  { %5061 = vadd.xlane.f32.xlu1 %v5060_v41 }
0x1376   :  { %v5065_v22 = vpop.xlane.xlu0 %5064 }
0x1377   :  { %v5067_v59 = vmul.f32 0.03125, %v5065_v22  ;;  %v7963_v22 = vcombine.high %v7926_v56, %v7934_v23 }
0x1378   :  { %v5062_v26 = vpop.xlane.xlu1 %5061 }
0x1379   :  { %v5069_v37 = vsub.f32 %v5055_v46, %v5067_v59  ;;  %v5066_v44 = vmul.f32 0.03125, %v5062_v26  ;;  %v7935_v46 = vld [vmem:[%s11454_s13 + $0x158] sm:$0xff]  ;;  %v7944_v26 = vld [vmem:[%s11454_s13 + $0x1a0] sm:$0xff] }
0x137a   :  { %v7965_v59 = vcombine.high %v7927_v30, %v7935_v46 }
0x137b   :  { %v5068_v57 = vsub.f32 %v5054_v34, %v5066_v44  ;;  %v5071_v25 = vmul.f32 %v5069_v37, %v5069_v37  ;;  %v7945_v44 = vld [vmem:[%s11454_s13 + $0x1a8] sm:$0xff] }
0x137d   :  { %v5075_v17 = vsel %vm104_vm0, %v5071_v25, 0.0  ;;  %v5070_v45 = vmul.f32 %v5068_v57, %v5068_v57  ;;  %v7962_v25 = vcombine.low %v7926_v56, %v7934_v23  ;;  %v9316_v56 = vld [vmem:[%s11456_s15 + $0x4e0] sm:$0xff]  }
0x137e   :  { %5076 = vadd.xlane.f32.xlu0 %v5075_v17  ;;  %v7964_v17 = vcombine.low %v7927_v30, %v7935_v46  ;;  %v9317_v23 = vld [vmem:[%s11456_s15 + $0x420] sm:$0xff]   ;;  %v9319_v46 = vld [vmem:[%s11456_s15 + $0x458] sm:$0xff]  }
0x137f   :  { %v5072_v16 = vsel %vm104_vm0, %v5070_v45, 0.0  ;;  %v9318_v30 = vld [vmem:[%s11456_s15 + $0x4a0] sm:$0xff]  }
0x1380   :  { %5073 = vadd.xlane.f32.xlu1 %v5072_v16 }
0x1407   :  { %v5077_v9 = vpop.xlane.xlu0 %5076 }
0x1408   :  { %v5079_v10 = vmul.f32 0.03125, %v5077_v9  ;;  %v7970_v9 = vcombine.low %v7930_v63, %v7938_v28 }
0x1409   :  { %v5074_v36 = vpop.xlane.xlu1 %5073 }
0x140a   :  { %v5081_v42 = vadd.f32 1e-05, %v5079_v10  ;;  %v5078_v35 = vmul.f32 0.03125, %v5074_v36  ;;  %v7972_v10 = vcombine.low %v7931_v5, %v7939_v12  ;;  %v9303_v36 = vld [vmem:[%s11456_s15 + $0x478] sm:$0xff]  }
0x140c   :  { %9503 = vrsqrt.f32 %v5081_v42  ;;  %v5080_v55 = vadd.f32 1e-05, %v5078_v35  ;;  %v9304_v42 = vld [vmem:[%s11456_s15 + $0x4f8] sm:$0xff]  }
0x140d   :  { %v9305_v35 = vld [vmem:[%s11456_s15 + $0x438] sm:$0xff]  }
0x140e   :  { %9505 = vrsqrt.f32 %v5080_v55  ;;  %v9306_v55 = vld [vmem:[%s11456_s15 + $0x4b8] sm:$0xff]  }
0x1419   :  { %v9504_v11 = vpop.eup %9503 }
0x141a   :  { %v5085_v19 = vmul.f32 %v9504_v11, %v5069_v37  ;;  %v7952_v37 = vld [vmem:[%s11454_s13 + $0x1e0] sm:$0xff]  ;;  %v9307_v11 = vld [vmem:[%s11456_s15 + $0x470] sm:$0xff]  }
0x141b   :  { %v9506_v0 = vpop.eup %9505  ;;  %v7983_v45 = vcombine.high %v7944_v26, %v7952_v37  ;;  %v7982_v47 = vcombine.low %v7944_v26, %v7952_v37  ;;  %v9323_v26 = vld [vmem:[%s11456_s15 + $0x450] sm:$0xff]  }
0x141c   :  { %v5093_v40 = vmul.f32 %v7922_v18, %v5085_v19  ;;  %v5084_v20 = vmul.f32 %v9506_v0, %v5068_v57  ;;  %v7953_v57 = vld [vmem:[%s11454_s13 + $0x1e8] sm:$0xff]  ;;  %v9310_v19 = vld [vmem:[%s11456_s15 + $0x4b0] sm:$0xff]   ;;  %s7632_s13 = sshll.u32 %s9539_s23, 4  ;;  %s7633_s13 = int_to_ptr.vmem [resolvable:$true] %s7632_s13 }
0x141d   :  { %v7985_v16 = vcombine.high %v7945_v44, %v7953_v57  ;;  %v7984_v50 = vcombine.low %v7945_v44, %v7953_v57  ;;  %v9311_v0 = vld [vmem:[%s11456_s15 + $0x468] sm:$0xff]   ;;  %v9324_v37 = vld [vmem:[%s11456_s15 + $0x4d0] sm:$0xff]   ;;  %p9518_p1 = scmp.lt.s32.totalorder %s7633_s13, %s7633_s13 }
0x141e   :  { %v5092_v7 = vmul.f32 %v7922_v18, %v5084_v20  ;;  %v10822_v29 = vadd.f32 %v7923_v21, %v5093_v40  ;;  %v9309_v18 = vld [vmem:[%s11456_s15 + $0x430] sm:$0xff]   ;;  %v9312_v40 = vld [vmem:[%s11456_s15 + $0x4e8] sm:$0xff]  }
0x141f   :  { %v9313_v20 = vld [vmem:[%s11456_s15 + $0x428] sm:$0xff]   ;;  %v9325_v44 = vld [vmem:[%s11456_s15 + $0x410] sm:$0xff]  }
0x1420   :  { %v10824_v34 = vadd.f32 %v7923_v21, %v5092_v7  ;;  %v9314_v21 = vld [vmem:[%s11456_s15 + $0x4a8] sm:$0xff]   ;;  %v9315_v7 = vld [vmem:[%s11456_s15 + $0x460] sm:$0xff]   ;;  %v9326_v57 = vld [vmem:[%s11456_s15 + $0x490] sm:$0xff]  }
0x1422   :  { %v10828_v41 = vpack.c.bf16 %v10822_v29, %v10824_v34 }
0x1424   :  { %7990 = vmatmul.mubr.msk.bf16.vlgmr.msra.gmra.mxu0 %vm104_vm0, %v10828_v41  ;;  %7991 = vmatmul.mubr.msk.bf16.vlgmr.msra.gmra.mxu1 %vm104_vm0, %v10828_v41 }
0x1425   :  { %5483 = vmatpush1.bf16.msra.mxu0 %v7978_v33  ;;  %5526 = vmatpush1.bf16.msra.mxu1 %v7980_v39  ;;  %v7988_v33 = vcombine.low %v7947_v60, %v7955_v43  ;;  %v7971_v39 = vcombine.high %v7930_v63, %v7938_v28 }
0x1426   :  { %5484 = vmatprep.subr.bf16.mxu0 %v7963_v22  ;;  %5527 = vmatprep.subr.bf16.mxu1 %v7965_v59  ;;  %v9321_v22 = vld [vmem:[%s11456_s15 + $0x418] sm:$0xff]  }
0x1427   :  { %5502 = vmatprep.mubr.bf16.mxu0 %v9538_v24  ;;  %5545 = vmatprep.mubr.bf16.mxu1 %v9538_v24  ;;  %v9322_v59 = vld [vmem:[%s11456_s15 + $0x498] sm:$0xff]  }
0x1429   :  { %5485 = vmatpush1.bf16.msra.mxu0 %v7962_v25  ;;  %5528 = vmatpush1.bf16.msra.mxu1 %v7964_v17  ;;  %v9327_v25 = vld [vmem:[%s11456_s15 + $0x448] sm:$0xff]  }
0x142a   :  { %5568 = vmatprep.subr.bf16.mxu0 %v7983_v45  ;;  %5611 = vmatprep.subr.bf16.mxu1 %v7985_v16  ;;  %v9328_v17 = vld [vmem:[%s11456_s15 + $0x4c8] sm:$0xff]  }
0x142b   :  { %v9329_v45 = vld [vmem:[%s11456_s15 + $0x408] sm:$0xff]  }
0x142c   :  { %7992 = vmatmul.mubr.msk.bf16.vlgmr.msra.gmra.mxu0 %vm104_vm0, %v10828_v41  ;;  %7993 = vmatmul.mubr.msk.bf16.vlgmr.msra.gmra.mxu1 %vm104_vm0, %v10828_v41  ;;  %v9330_v16 = vld [vmem:[%s11456_s15 + $0x488] sm:$0xff]  }
0x142d   :  { %5569 = vmatpush1.bf16.msra.mxu0 %v7982_v47  ;;  %5612 = vmatpush1.bf16.msra.mxu1 %v7984_v50  ;;  %v9335_v47 = vld [vmem:[%s11456_s15 + $0x578] sm:$0xff]  }
0x142e   :  { %5570 = vmatprep.subr.bf16.mxu0 %v7967_v58  ;;  %5613 = vmatprep.subr.bf16.mxu1 %v7969_v53  ;;  %v9336_v50 = vld [vmem:[%s11456_s15 + $0x5f8] sm:$0xff]   ;;  %v11005_v58 = vld [vmem:[%s11455_s14 + $0x10] sm:$0xff] }
0x142f   :  { %5588 = vmatprep.mubr.bf16.mxu0 %v9538_v24  ;;  %5631 = vmatprep.mubr.bf16.mxu1 %v9538_v24  ;;  %v5148_v38 = vrot.slane %v11005_v58, %v10148_v1  ;;  %v5156_v60 = vrot.slane %v11005_v58, %v10151_v2  ;;  %v5144_v43 = vrot.slane %v11005_v58, %v10154_v3 }
0x1431   :  { %5571 = vmatpush1.bf16.msra.mxu0 %v7966_v51  ;;  %5614 = vmatpush1.bf16.msra.mxu1 %v7968_v61  ;;  %v5152_v51 = vrot.slane %v11005_v58, %v10157_v4 }
0x1432   :  { %5654 = vmatprep.subr.bf16.mxu0 %v7987_v62  ;;  %5697 = vmatprep.subr.bf16.mxu1 %v7989_v27 }
0x1434   :  { %7994 = vmatmul.mubr.msk.bf16.vlgmr.msra.gmra.mxu0 %vm104_vm0, %v10828_v41  ;;  %7995 = vmatmul.mubr.msk.bf16.vlgmr.msra.gmra.mxu1 %vm104_vm0, %v10828_v41 }
0x1435   :  { %5655 = vmatpush1.bf16.msra.mxu0 %v7986_v6  ;;  %5698 = vmatpush1.bf16.msra.mxu1 %v7988_v33 }
0x1436   :  { %5656 = vmatprep.subr.bf16.mxu0 %v7971_v39  ;;  %5699 = vmatprep.subr.bf16.mxu1 %v7973_v8 }
0x1437   :  { %5674 = vmatprep.mubr.bf16.mxu0 %v9538_v24  ;;  %5717 = vmatprep.mubr.bf16.mxu1 %v9538_v24  ;;  %v9308_v24 = vld [vmem:[%s11456_s15 + $0x4f0] sm:$0xff]  }
0x1439   :  { %5657 = vmatpush1.bf16.msra.mxu0 %v7970_v9  ;;  %5700 = vmatpush1.bf16.msra.mxu1 %v7972_v10 }
0x143a   :  { %8701 = vmatprep.subr.bf16.mxu0 %v9303_v36  ;;  %8723 = vmatprep.subr.bf16.mxu1 %v9304_v42 }
0x143c   :  { %7996 = vmatmul.mubr.msk.bf16.vlgmr.msra.gmra.mxu0 %vm104_vm0, %v10828_v41  ;;  %7997 = vmatmul.mubr.msk.bf16.vlgmr.msra.gmra.mxu1 %vm104_vm0, %v10828_v41  ;;  %v9320_v41 = vld [vmem:[%s11456_s15 + $0x4d8] sm:$0xff]  }
0x143d   :  { %8702 = vmatpush3.bf16.msra.mxu0 %v9305_v35  ;;  %8724 = vmatpush3.bf16.msra.mxu1 %v9306_v55 }
0x143e   :  { %8703 = vmatprep.subr.bf16.mxu0 %v9307_v11  ;;  %8725 = vmatprep.subr.bf16.mxu1 %v9308_v24  ;;  %v5164_v24 = vrot.slane %v11005_v58, %v10173_v14 }
0x1441   :  { %8704 = vmatpush3.bf16.msra.mxu0 %v9309_v18  ;;  %8726 = vmatpush3.bf16.msra.mxu1 %v9310_v19  ;;  %v5172_v18 = vrot.slane %v11005_v58, %v10176_v15 }
0x1442   :  { %8705 = vmatprep.subr.bf16.mxu0 %v9311_v0  ;;  %8727 = vmatprep.subr.bf16.mxu1 %v9312_v40 }
0x1445   :  { %8706 = vmatpush3.bf16.msra.mxu0 %v9313_v20  ;;  %8728 = vmatpush3.bf16.msra.mxu1 %v9314_v21 }
0x1446   :  { %8707 = vmatprep.subr.bf16.mxu0 %v9315_v7  ;;  %8729 = vmatprep.subr.bf16.mxu1 %v9316_v56 }
0x1449   :  { %8708 = vmatpush3.bf16.msra.mxu0 %v9317_v23  ;;  %8730 = vmatpush3.bf16.msra.mxu1 %v9318_v30 }
0x144a   :  { %8709 = vmatprep.subr.bf16.mxu0 %v9319_v46  ;;  %8731 = vmatprep.subr.bf16.mxu1 %v9320_v41  ;;  %v9337_v41 = vld [vmem:[%s11456_s15 + $0x538] sm:$0xff]  }
0x144d   :  { %8710 = vmatpush3.bf16.msra.mxu0 %v9321_v22  ;;  %8732 = vmatpush3.bf16.msra.mxu1 %v9322_v59  ;;  %v9338_v22 = vld [vmem:[%s11456_s15 + $0x5b8] sm:$0xff]  }
0x144e   :  { %8711 = vmatprep.subr.bf16.mxu0 %v9323_v26  ;;  %8733 = vmatprep.subr.bf16.mxu1 %v9324_v37 }
0x1451   :  { %8712 = vmatpush3.bf16.msra.mxu0 %v9325_v44  ;;  %8734 = vmatpush3.bf16.msra.mxu1 %v9326_v57  ;;  %v9339_v57 = vld [vmem:[%s11456_s15 + $0x570] sm:$0xff]  }
0x1452   :  { %8713 = vmatprep.subr.bf16.mxu0 %v9327_v25  ;;  %8735 = vmatprep.subr.bf16.mxu1 %v9328_v17  ;;  %v9340_v25 = vld [vmem:[%s11456_s15 + $0x5f0] sm:$0xff]  }
0x1455   :  { %8714 = vmatpush3.bf16.msra.mxu0 %v9329_v45  ;;  %8736 = vmatpush3.bf16.msra.mxu1 %v9330_v16 }
0x1456   :  { %8715 = vmatprep.subr.bf16.mxu0 %v9331_v48  ;;  %8737 = vmatprep.subr.bf16.mxu1 %v9332_v49 }
0x1459   :  { %8716 = vmatpush3.bf16.msra.mxu0 %v9333_v13  ;;  %8738 = vmatpush3.bf16.msra.mxu1 %v9334_v54  ;;  %v9341_v54 = vld [vmem:[%s11456_s15 + $0x530] sm:$0xff]  }
0x145a   :  { %8745 = vmatprep.subr.bf16.mxu0 %v9335_v47  ;;  %8767 = vmatprep.subr.bf16.mxu1 %v9336_v50  ;;  %v9342_v47 = vld [vmem:[%s11456_s15 + $0x5b0] sm:$0xff]   ;;  %v9343_v50 = vld [vmem:[%s11456_s15 + $0x568] sm:$0xff]  }
0x14e4   :  { %v5418_v53 = vpop.f32.mrf.mxu0  ;;  %v5461_v52 = vpop.f32.mrf.mxu1 }
0x14e5   :  { %v5419_v33 = vadd.f32 %v5418_v53, %v5144_v43  ;;  %v5462_v39 = vadd.f32 %v5461_v52, %v5152_v51 }
0x14e6   :  { %v5420_v61 = vpop.f32.mrf.mxu0  ;;  %v5463_v62 = vpop.f32.mrf.mxu1 }
0x14e7   :  { %v5421_v28 = vadd.f32 %v5420_v61, %v5148_v38  ;;  %v5464_v5 = vadd.f32 %v5463_v62, %v5156_v60  ;;  %v5728_v21 = vmax.f32 %v5419_v33, 0.0  ;;  %v5730_v7 = vmax.f32 %v5462_v39, 0.0  ;;  %v9345_v62 = vld [vmem:[%s11456_s15 + $0x528] sm:$0xff]   ;;  %v9350_v33 = vld [vmem:[%s11456_s15 + $0x5a0] sm:$0xff]   ;;  %v9351_v39 = vld [vmem:[%s11456_s15 + $0x558] sm:$0xff]  }
0x14e8   :  { %v5422_v27 = vpop.f32.mrf.mxu0  ;;  %v5465_v63 = vpop.f32.mrf.mxu1 }
0x14e9   :  { %v5423_v12 = vadd.f32 %v5422_v27, %v5144_v43  ;;  %v5466_v6 = vadd.f32 %v5465_v63, %v5152_v51  ;;  %v5729_v19 = vmax.f32 %v5421_v28, 0.0  ;;  %v5731_v0 = vmax.f32 %v5464_v5, 0.0  ;;  %v9344_v43 = vld [vmem:[%s11456_s15 + $0x5e8] sm:$0xff]   ;;  %v9347_v63 = vld [vmem:[%s11456_s15 + $0x560] sm:$0xff]  }
0x14ea   :  { %v5424_v8 = vpop.f32.mrf.mxu0  ;;  %v5467_v9 = vpop.f32.mrf.mxu1  ;;  %v9346_v27 = vld [vmem:[%s11456_s15 + $0x5a8] sm:$0xff]   ;;  %v9348_v28 = vld [vmem:[%s11456_s15 + $0x5e0] sm:$0xff]  }
0x14eb   :  { %v5425_v10 = vadd.f32 %v5424_v8, %v5148_v38  ;;  %v5468_v36 = vadd.f32 %v5467_v9, %v5156_v60  ;;  %v5744_v42 = vmax.f32 %v5423_v12, 0.0  ;;  %v5746_v35 = vmax.f32 %v5466_v6, 0.0  ;;  %v9349_v12 = vld [vmem:[%s11456_s15 + $0x520] sm:$0xff]   ;;  %v9352_v8 = vld [vmem:[%s11456_s15 + $0x5d8] sm:$0xff]  }
0x14ec   :  { %v11015_v55 = vpop.f32.mrf.mxu0  ;;  %v11017_v11 = vpop.f32.mrf.mxu1 }
0x14ed   :  { %v5745_v40 = vmax.f32 %v5425_v10, 0.0  ;;  %v5747_v20 = vmax.f32 %v5468_v36, 0.0  ;;  %v5760_v59 = vpack.c.bf16 %v5744_v42, %v5728_v21  ;;  %v5762_v26 = vpack.c.bf16 %v5746_v35, %v5730_v7  ;;  %v9353_v10 = vld [vmem:[%s11456_s15 + $0x518] sm:$0xff]   ;;  %v9355_v35 = vld [vmem:[%s11456_s15 + $0x550] sm:$0xff]   ;;  %v9360_v21 = vld [vmem:[%s11456_s15 + $0x5c8] sm:$0xff]  }
0x14ee   :  { %v5506_v56 = vpop.f32.mrf.mxu0  ;;  %v5549_v23 = vpop.f32.mrf.mxu1  ;;  %v9354_v42 = vld [vmem:[%s11456_s15 + $0x598] sm:$0xff]   ;;  %v5160_v7 = vrot.slane %v11005_v58, %v10255_v31 }
0x14ef   :  { %v5761_v30 = vpack.c.bf16 %v5745_v40, %v5729_v19  ;;  %v5763_v46 = vpack.c.bf16 %v5747_v20, %v5731_v0  ;;  %v5507_v17 = vadd.f32 %v5506_v56, %v5164_v24  ;;  %v5550_v45 = vadd.f32 %v5549_v23, %v5172_v18  ;;  %v9357_v19 = vld [vmem:[%s11456_s15 + $0x510] sm:$0xff]   ;;  %v9359_v20 = vld [vmem:[%s11456_s15 + $0x548] sm:$0xff]   ;;  %v11114_v23 = vld [vmem:[%s11455_s14 + $0x18] sm:$0xff] }
0x14f0   :  { %v11029_v37 = vpop.f32.mrf.mxu0  ;;  %v11031_v44 = vpop.f32.mrf.mxu1  ;;  %v9358_v40 = vld [vmem:[%s11456_s15 + $0x590] sm:$0xff]   ;;  %v5168_v56 = vrot.slane %v11005_v58, %v10258_v32  ;;  %v9362_v58 = vld [vmem:[%s11456_s15 + $0x588] sm:$0xff]  }
0x14f1   :  { %6841 = vmatprep.mubr.bf16.mxu0 %v5761_v30  ;;  %6882 = vmatprep.mubr.bf16.mxu1 %v5763_v46  ;;  %v5733_v53 = vmax.f32 %v5507_v17, 0.0  ;;  %v5735_v52 = vmax.f32 %v5550_v45, 0.0  ;;  %v9361_v46 = vld [vmem:[%s11456_s15 + $0x508] sm:$0xff]  }
0x14f2   :  { %v5510_v16 = vpop.f32.mrf.mxu0  ;;  %v5553_v48 = vpop.f32.mrf.mxu1  ;;  %6842 = vmatmul.mubr.bf16.vlgmr.msra.gmra.mxu0 %v5760_v59  ;;  %6883 = vmatmul.mubr.bf16.vlgmr.msra.gmra.mxu1 %v5762_v26  ;;  %v9363_v26 = vld [vmem:[%s11456_s15 + $0x540] sm:$0xff]   ;;  %v5548_v45 = vadd.f32 %v11017_v11, %v5168_v56 }
0x14f3   :  { %v5511_v49 = vadd.f32 %v5510_v16, %v5164_v24  ;;  %v5554_v13 = vadd.f32 %v5553_v48, %v5172_v18  ;;  %8746 = vmatpush3.bf16.msra.mxu0 %v9337_v41  ;;  %8768 = vmatpush3.bf16.msra.mxu1 %v9338_v22  ;;  %v9356_v24 = vld [vmem:[%s11456_s15 + $0x5d0] sm:$0xff]   ;;  %v5509_v41 = vadd.f32 %v11029_v37, %v5160_v7  ;;  %v9365_v48 = vld [vmem:[%s11456_s15 + $0x500] sm:$0xff]  }
0x14f4   :  { %8747 = vmatprep.subr.bf16.mxu0 %v9339_v57  ;;  %8769 = vmatprep.subr.bf16.mxu1 %v9340_v25  ;;  %v11063_v5 = vpop.f32.mrf.mxu0  ;;  %v11068_v6 = vpop.f32.mrf.mxu1  ;;  %v5180_v22 = vrot.slane %v11114_v23, %v10148_v1  ;;  %v5552_v57 = vadd.f32 %v11031_v44, %v5168_v56  ;;  %v5188_v25 = vrot.slane %v11114_v23, %v10151_v2  ;;  %v9364_v1 = vld [vmem:[%s11456_s15 + $0x5c0] sm:$0xff]  }
0x14f5   :  { %v5749_v38 = vmax.f32 %v5511_v49, 0.0  ;;  %v5751_v60 = vmax.f32 %v5554_v13, 0.0  ;;  %v5505_v37 = vadd.f32 %v11015_v55, %v5160_v7  ;;  %v5748_v44 = vmax.f32 %v5509_v41, 0.0  ;;  %v9366_v2 = vld [vmem:[%s11456_s15 + $0x580] sm:$0xff]   ;;  %v9367_v55 = vld [vmem:[%s11456_s15 + $0x678] sm:$0xff]  }
0x14f6   :  { %v5592_v9 = vpop.f32.mrf.mxu0  ;;  %v5635_v36 = vpop.f32.mrf.mxu1  ;;  %v5750_v13 = vmax.f32 %v5552_v57, 0.0  ;;  %v9384_v7 = vld [vmem:[%s11456_s15 + $0x6d8] sm:$0xff]  }
0x14f7   :  { %v5765_v51 = vpack.c.bf16 %v5749_v38, %v5733_v53  ;;  %v5767_v61 = vpack.c.bf16 %v5751_v60, %v5735_v52  ;;  %8748 = vmatpush3.bf16.msra.mxu0 %v9341_v54  ;;  %8770 = vmatpush3.bf16.msra.mxu1 %v9342_v47  ;;  %v5593_v49 = vadd.f32 %v5592_v9, %v5180_v22  ;;  %v9368_v54 = vld [vmem:[%s11456_s15 + $0x6f8] sm:$0xff]   ;;  %v5732_v47 = vmax.f32 %v5505_v37, 0.0  ;;  %v9376_v9 = vld [vmem:[%s11456_s15 + $0x6e8] sm:$0xff]  }
0x14f8   :  { %8749 = vmatprep.subr.bf16.mxu0 %v9343_v50  ;;  %8771 = vmatprep.subr.bf16.mxu1 %v9344_v43  ;;  %v11091_v18 = vpop.f32.mrf.mxu0  ;;  %v11096_v0 = vpop.f32.mrf.mxu1  ;;  %v5636_v11 = vadd.f32 %v5635_v36, %v5188_v25  ;;  %v5734_v53 = vmax.f32 %v5548_v45, 0.0  ;;  %v9369_v38 = vld [vmem:[%s11456_s15 + $0x638] sm:$0xff]   ;;  %v9378_v36 = vld [vmem:[%s11456_s15 + $0x6a8] sm:$0xff]   ;;  %v5184_v45 = vrot.slane %v11114_v23, %v10157_v4  ;;  %v9395_v4 = vld [vmem:[%s11456_s15 + $0x640] sm:$0xff]  }
0x14f9   :  { %6923 = vmatprep.mubr.bf16.mxu0 %v5765_v51  ;;  %6964 = vmatprep.mubr.bf16.mxu1 %v5767_v61  ;;  %v5764_v60 = vpack.c.bf16 %v5748_v44, %v5732_v47  ;;  %v5737_v43 = vmax.f32 %v5593_v49, 0.0  ;;  %v9370_v51 = vld [vmem:[%s11456_s15 + $0x6b8] sm:$0xff]   ;;  %v9392_v37 = vld [vmem:[%s11456_s15 + $0x6c8] sm:$0xff]   ;;  %v5196_v49 = vrot.slane %v11114_v23, %v10173_v14  ;;  %v9396_v14 = vld [vmem:[%s11456_s15 + $0x6c0] sm:$0xff]  }
0x14fa   :  { %v5596_v30 = vpop.f32.mrf.mxu0  ;;  %v5639_v59 = vpop.f32.mrf.mxu1  ;;  %v5766_v61 = vpack.c.bf16 %v5750_v13, %v5734_v53  ;;  %v9386_v41 = vld [vmem:[%s11456_s15 + $0x698] sm:$0xff]   ;;  %v5204_v13 = vrot.slane %v11114_v23, %v10176_v15  ;;  %v9398_v15 = vld [vmem:[%s11456_s15 + $0x680] sm:$0xff]  }
0x14fb   :  { %8750 = vmatpush3.bf16.msra.mxu0 %v9345_v62  ;;  %8772 = vmatpush3.bf16.msra.mxu1 %v9346_v27  ;;  %v5597_v17 = vadd.f32 %v5596_v30, %v5180_v22  ;;  %v5640_v16 = vadd.f32 %v5639_v59, %v5188_v25  ;;  %v5739_v62 = vmax.f32 %v5636_v11, 0.0  ;;  %v9371_v27 = vld [vmem:[%s11456_s15 + $0x670] sm:$0xff]   ;;  %v9385_v30 = vld [vmem:[%s11456_s15 + $0x618] sm:$0xff]  }
0x14fc   :  { %8751 = vmatprep.subr.bf16.mxu0 %v9347_v63  ;;  %8773 = vmatprep.subr.bf16.mxu1 %v9348_v28  ;;  %v9372_v28 = vld [vmem:[%s11456_s15 + $0x6f0] sm:$0xff]  }
0x14fd   :  { %v5753_v50 = vmax.f32 %v5597_v17, 0.0  ;;  %v5755_v52 = vmax.f32 %v5640_v16, 0.0  ;;  %v9387_v22 = vld [vmem:[%s11456_s15 + $0x650] sm:$0xff]   ;;  %v5176_v17 = vrot.slane %v11114_v23, %v10154_v3  ;;  %v9394_v3 = vld [vmem:[%s11456_s15 + $0x688] sm:$0xff]  }
0x14fe   :  { %v9388_v59 = vld [vmem:[%s11456_s15 + $0x6d0] sm:$0xff]  }
0x14ff   :  { %8752 = vmatpush3.bf16.msra.mxu0 %v9349_v12  ;;  %8774 = vmatpush3.bf16.msra.mxu1 %v9350_v33  ;;  %v5769_v63 = vpack.c.bf16 %v5753_v50, %v5737_v43  ;;  %v5771_v12 = vpack.c.bf16 %v5755_v52, %v5739_v62  ;;  %v9373_v33 = vld [vmem:[%s11456_s15 + $0x630] sm:$0xff]   ;;  %v5595_v44 = vadd.f32 %v11091_v18, %v5176_v17  ;;  %v9397_v50 = vld [vmem:[%s11456_s15 + $0x600] sm:$0xff]   ;;  %v9401_v62 = vld [vmem:[%s11456_s15 + $0x738] sm:$0xff]  }
0x1500   :  { %8753 = vmatprep.subr.bf16.mxu0 %v9351_v39  ;;  %8775 = vmatprep.subr.bf16.mxu1 %v9352_v8  ;;  %v9374_v39 = vld [vmem:[%s11456_s15 + $0x6b0] sm:$0xff]   ;;  %v9375_v8 = vld [vmem:[%s11456_s15 + $0x668] sm:$0xff]   ;;  %v5591_v18 = vadd.f32 %v11063_v5, %v5176_v17  ;;  %v9399_v5 = vld [vmem:[%s11456_s15 + $0x778] sm:$0xff]  }
0x1501   :  { %v9390_v25 = vld [vmem:[%s11456_s15 + $0x690] sm:$0xff]  }
0x1502   :  { %v9422_v17 = vld [vmem:[%s11456_s15 + $0x790] sm:$0xff]  }
0x1503   :  { %8754 = vmatpush3.bf16.msra.mxu0 %v9353_v10  ;;  %8776 = vmatpush3.bf16.msra.mxu1 %v9354_v42  ;;  %v9377_v10 = vld [vmem:[%s11456_s15 + $0x628] sm:$0xff]   ;;  %v9379_v42 = vld [vmem:[%s11456_s15 + $0x660] sm:$0xff]  }
0x1504   :  { %8755 = vmatprep.subr.bf16.mxu0 %v9355_v35  ;;  %8777 = vmatprep.subr.bf16.mxu1 %v9356_v24  ;;  %v9380_v35 = vld [vmem:[%s11456_s15 + $0x6e0] sm:$0xff]   ;;  %v11184_v24 = vpop.f32.mrf.mxu0 }
0x1506   :  { %v5678_v56 = vpop.f32.mrf.mxu0 }
0x1507   :  { %8756 = vmatpush3.bf16.msra.mxu0 %v9357_v19  ;;  %8778 = vmatpush3.bf16.msra.mxu1 %v9358_v40  ;;  %v9381_v19 = vld [vmem:[%s11456_s15 + $0x620] sm:$0xff]   ;;  %v11189_v40 = vpop.f32.mrf.mxu1  ;;  %v5679_v53 = vadd.f32 %v5678_v56, %v5196_v49 }
0x1508   :  { %8757 = vmatprep.subr.bf16.mxu0 %v9359_v20  ;;  %8779 = vmatprep.subr.bf16.mxu1 %v9360_v21  ;;  %v9382_v20 = vld [vmem:[%s11456_s15 + $0x6a0] sm:$0xff]   ;;  %v9383_v21 = vld [vmem:[%s11456_s15 + $0x658] sm:$0xff]  }
0x1509   :  { %v9412_v56 = vld [vmem:[%s11456_s15 + $0x7e0] sm:$0xff]  }
0x150b   :  { %8758 = vmatpush3.bf16.msra.mxu0 %v9361_v46  ;;  %8780 = vmatpush3.bf16.msra.mxu1 %v9362_v58  ;;  %v5721_v46 = vpop.f32.mrf.mxu1  ;;  %v11212_v58 = vpop.f32.mrf.mxu0 }
0x150c   :  { %8759 = vmatprep.subr.bf16.mxu0 %v9363_v26  ;;  %8781 = vmatprep.subr.bf16.mxu1 %v9364_v1  ;;  %v9389_v26 = vld [vmem:[%s11456_s15 + $0x610] sm:$0xff]   ;;  %v9391_v1 = vld [vmem:[%s11456_s15 + $0x648] sm:$0xff]  }
0x150d   :  { %v11217_v57 = vpop.f32.mrf.mxu1  ;;  %v5682_v16 = vpop.f32.mrf.mxu0 }
0x150e   :  { %v5683_v11 = vadd.f32 %v5682_v16, %v5196_v49  ;;  %v9424_v16 = vld [vmem:[%s11456_s15 + $0x7c8] sm:$0xff]  }
0x150f   :  { %8760 = vmatpush3.bf16.msra.mxu0 %v9365_v48  ;;  %8782 = vmatpush3.bf16.msra.mxu1 %v9366_v2  ;;  %v9393_v48 = vld [vmem:[%s11456_s15 + $0x608] sm:$0xff]   ;;  %v5725_v2 = vpop.f32.mrf.mxu1 }
0x1510   :  { %8789 = vmatprep.subr.bf16.mxu0 %v9367_v55  ;;  %8811 = vmatprep.subr.bf16.mxu1 %v9368_v54  ;;  %v5638_v55 = vadd.f32 %v11096_v0, %v5184_v45  ;;  %v5634_v54 = vadd.f32 %v11068_v6, %v5184_v45  ;;  %v5726_v47 = vadd.f32 %v5725_v2, %v5204_v13  ;;  %v5752_v0 = vmax.f32 %v5595_v44, 0.0  ;;  %v9423_v45 = vld [vmem:[%s11456_s15 + $0x748] sm:$0xff]  }
0x1511   :  { %v5722_v6 = vadd.f32 %v5721_v46, %v5204_v13  ;;  %v5757_v43 = vmax.f32 %v5683_v11, 0.0  ;;  %v9414_v46 = vld [vmem:[%s11456_s15 + $0x7a0] sm:$0xff]   ;;  %v5200_v44 = vrot.slane %v11114_v23, %v10258_v32  ;;  %v9425_v49 = vld [vmem:[%s11456_s15 + $0x708] sm:$0xff]  }
0x1512   :  { %6924 = vmatmul.mubr.bf16.vlgmr.msra.gmra.mxu0 %v5764_v60  ;;  %6965 = vmatmul.mubr.bf16.vlgmr.msra.gmra.mxu1 %v5766_v61  ;;  %v5754_v52 = vmax.f32 %v5638_v55, 0.0  ;;  %v5736_v60 = vmax.f32 %v5591_v18, 0.0  ;;  %v5759_v61 = vmax.f32 %v5726_v47, 0.0  ;;  %v9428_v32 = vld [vmem:[%s11456_s15 + $0x7c0] sm:$0xff]  }
0x1513   :  { %8790 = vmatpush3.bf16.msra.mxu0 %v9369_v38  ;;  %7005 = vmatprep.mubr.bf16.mxu0 %v5769_v63  ;;  %v9400_v38 = vld [vmem:[%s11456_s15 + $0x7f8] sm:$0xff]   ;;  %v5741_v63 = vmax.f32 %v5679_v53, 0.0  ;;  %v9429_v55 = vld [vmem:[%s11456_s15 + $0x700] sm:$0xff]  }
0x1514   :  { %8812 = vmatpush3.bf16.msra.mxu1 %v9370_v51  ;;  %7046 = vmatprep.mubr.bf16.mxu1 %v5771_v12  ;;  %v5738_v51 = vmax.f32 %v5634_v54, 0.0 }
0x1515   :  { %8791 = vmatprep.subr.bf16.mxu0 %v9371_v27  ;;  %8813 = vmatprep.subr.bf16.mxu1 %v9372_v28  ;;  %v5768_v27 = vpack.c.bf16 %v5752_v0, %v5736_v60  ;;  %v9402_v28 = vld [vmem:[%s11456_s15 + $0x7b8] sm:$0xff]  }
0x1516   :  { %v5770_v12 = vpack.c.bf16 %v5754_v52, %v5738_v51 }
0x1517   :  { %8792 = vmatpush3.bf16.msra.mxu0 %v9373_v33  ;;  %v5743_v33 = vmax.f32 %v5722_v6, 0.0 }
0x1518   :  { %8814 = vmatpush3.bf16.msra.mxu1 %v9374_v39  ;;  %8793 = vmatprep.subr.bf16.mxu0 %v9375_v8  ;;  %v9403_v39 = vld [vmem:[%s11456_s15 + $0x770] sm:$0xff]   ;;  %v5773_v8 = vpack.c.bf16 %v5757_v43, %v5741_v63  ;;  %v8255_v63 = vld [vmem:[%s11457_s16 + $0x1] ss:$0 sm:$0xff] }
0x1519   :  { %8815 = vmatprep.subr.bf16.mxu1 %v9376_v9  ;;  %v9404_v9 = vld [vmem:[%s11456_s15 + $0x7f0] sm:$0xff]  }
0x151b   :  { %8794 = vmatpush3.bf16.msra.mxu0 %v9377_v10  ;;  %v5775_v10 = vpack.c.bf16 %v5759_v61, %v5743_v33 }
0x151c   :  { %8816 = vmatpush3.bf16.msra.mxu1 %v9378_v36  ;;  %8795 = vmatprep.subr.bf16.mxu0 %v9379_v42  ;;  %v9405_v36 = vld [vmem:[%s11456_s15 + $0x730] sm:$0xff]  }
0x151d   :  { %8817 = vmatprep.subr.bf16.mxu1 %v9380_v35  ;;  %v9406_v42 = vld [vmem:[%s11456_s15 + $0x7b0] sm:$0xff]   ;;  %v9407_v35 = vld [vmem:[%s11456_s15 + $0x768] sm:$0xff]  }
0x151f   :  { %8796 = vmatpush3.bf16.msra.mxu0 %v9381_v19  ;;  %v9408_v19 = vld [vmem:[%s11456_s15 + $0x7e8] sm:$0xff]  }
0x1520   :  { %8818 = vmatpush3.bf16.msra.mxu1 %v9382_v20  ;;  %8797 = vmatprep.subr.bf16.mxu0 %v9383_v21  ;;  %v9409_v20 = vld [vmem:[%s11456_s15 + $0x728] sm:$0xff]  }
0x1521   :  { %8819 = vmatprep.subr.bf16.mxu1 %v9384_v7  ;;  %v9410_v21 = vld [vmem:[%s11456_s15 + $0x7a8] sm:$0xff]   ;;  %v9411_v7 = vld [vmem:[%s11456_s15 + $0x760] sm:$0xff]  }
0x1523   :  { %8798 = vmatpush3.bf16.msra.mxu0 %v9385_v30  ;;  %v9413_v30 = vld [vmem:[%s11456_s15 + $0x720] sm:$0xff]  }
0x1524   :  { %8820 = vmatpush3.bf16.msra.mxu1 %v9386_v41  ;;  %8799 = vmatprep.subr.bf16.mxu0 %v9387_v22  ;;  %v9415_v41 = vld [vmem:[%s11456_s15 + $0x758] sm:$0xff]  }
0x1525   :  { %8821 = vmatprep.subr.bf16.mxu1 %v9388_v59  ;;  %v9416_v22 = vld [vmem:[%s11456_s15 + $0x7d8] sm:$0xff]  }
0x1526   :  { %v9417_v59 = vld [vmem:[%s11456_s15 + $0x718] sm:$0xff]  }
0x1527   :  { %8800 = vmatpush3.bf16.msra.mxu0 %v9389_v26  ;;  %v9418_v26 = vld [vmem:[%s11456_s15 + $0x798] sm:$0xff]  }
0x1528   :  { %8822 = vmatpush3.bf16.msra.mxu1 %v9390_v25  ;;  %8801 = vmatprep.subr.bf16.mxu0 %v9391_v1  ;;  %v9419_v25 = vld [vmem:[%s11456_s15 + $0x750] sm:$0xff]  }
0x1529   :  { %8823 = vmatprep.subr.bf16.mxu1 %v9392_v37  ;;  %v9420_v1 = vld [vmem:[%s11456_s15 + $0x7d0] sm:$0xff]  }
0x152a   :  { %v9421_v37 = vld [vmem:[%s11456_s15 + $0x710] sm:$0xff]  }
0x152b   :  { %8802 = vmatpush3.bf16.msra.mxu0 %v9393_v48  ;;  %v5192_v48 = vrot.slane %v11114_v23, %v10255_v31  ;;  %v9427_v31 = vld [vmem:[%s11456_s15 + $0x740] sm:$0xff]  }
0x152c   :  { %8824 = vmatpush3.bf16.msra.mxu1 %v9394_v3  ;;  %8803 = vmatprep.subr.bf16.mxu0 %v9395_v4  ;;  %v9426_v3 = vld [vmem:[%s11456_s15 + $0x788] sm:$0xff]   ;;  %v5724_v4 = vadd.f32 %v11217_v57, %v5200_v44  ;;  %v9430_v57 = vld [vmem:[%s11456_s15 + $0x780] sm:$0xff]  }
0x152d   :  { %8825 = vmatprep.subr.bf16.mxu1 %v9396_v14  ;;  %v5681_v2 = vadd.f32 %v11212_v58, %v5192_v48  ;;  %v5677_v23 = vadd.f32 %v11184_v24, %v5192_v48  ;;  %v5720_v58 = vadd.f32 %v11189_v40, %v5200_v44 }
0x152e   :  { %v5758_v14 = vmax.f32 %v5724_v4, 0.0 }
0x152f   :  { %8804 = vmatpush3.bf16.msra.mxu0 %v9397_v50  ;;  %v5756_v13 = vmax.f32 %v5681_v2, 0.0  ;;  %v5740_v18 = vmax.f32 %v5677_v23, 0.0  ;;  %v5742_v11 = vmax.f32 %v5720_v58, 0.0 }
0x1530   :  { %8826 = vmatpush3.bf16.msra.mxu1 %v9398_v15  ;;  %8833 = vmatprep.subr.bf16.mxu0 %v9399_v5 }
0x1531   :  { %8855 = vmatprep.subr.bf16.mxu1 %v9400_v38  ;;  %v5772_v24 = vpack.c.bf16 %v5756_v13, %v5740_v18  ;;  %v5774_v40 = vpack.c.bf16 %v5758_v14, %v5742_v11 }
0x1532   :  { %7006 = vmatmul.mubr.bf16.vlgmr.msra.gmra.mxu0 %v5768_v27 }
0x1533   :  { %7047 = vmatmul.mubr.bf16.vlgmr.msra.gmra.mxu1 %v5770_v12  ;;  %8834 = vmatpush3.bf16.msra.mxu0 %v9401_v62 }
0x1534   :  { %7087 = vmatprep.mubr.bf16.mxu0 %v5773_v8  ;;  %8856 = vmatpush3.bf16.msra.mxu1 %v9402_v28 }
0x1535   :  { %7128 = vmatprep.mubr.bf16.mxu1 %v5775_v10  ;;  %8835 = vmatprep.subr.bf16.mxu0 %v9403_v39 }
0x1536   :  { %8857 = vmatprep.subr.bf16.mxu1 %v9404_v9 }
0x1537   :  { %8836 = vmatpush3.bf16.msra.mxu0 %v9405_v36 }
0x1538   :  { %8858 = vmatpush3.bf16.msra.mxu1 %v9406_v42  ;;  %8837 = vmatprep.subr.bf16.mxu0 %v9407_v35 }
0x1539   :  { %8859 = vmatprep.subr.bf16.mxu1 %v9408_v19 }
0x153b   :  { %8838 = vmatpush3.bf16.msra.mxu0 %v9409_v20 }
0x153c   :  { %8860 = vmatpush3.bf16.msra.mxu1 %v9410_v21  ;;  %8839 = vmatprep.subr.bf16.mxu0 %v9411_v7 }
0x153d   :  { %8861 = vmatprep.subr.bf16.mxu1 %v9412_v56 }
0x153f   :  { %8840 = vmatpush3.bf16.msra.mxu0 %v9413_v30 }
0x1540   :  { %8862 = vmatpush3.bf16.msra.mxu1 %v9414_v46  ;;  %8841 = vmatprep.subr.bf16.mxu0 %v9415_v41 }
0x1541   :  { %8863 = vmatprep.subr.bf16.mxu1 %v9416_v22 }
0x1543   :  { %8842 = vmatpush3.bf16.msra.mxu0 %v9417_v59 }
0x1544   :  { %8864 = vmatpush3.bf16.msra.mxu1 %v9418_v26  ;;  %8843 = vmatprep.subr.bf16.mxu0 %v9419_v25 }
0x1545   :  { %8865 = vmatprep.subr.bf16.mxu1 %v9420_v1 }
0x1547   :  { %8844 = vmatpush3.bf16.msra.mxu0 %v9421_v37 }
0x1548   :  { %8866 = vmatpush3.bf16.msra.mxu1 %v9422_v17  ;;  %8845 = vmatprep.subr.bf16.mxu0 %v9423_v45 }
0x1549   :  { %8867 = vmatprep.subr.bf16.mxu1 %v9424_v16 }
0x154b   :  { %8846 = vmatpush3.bf16.msra.mxu0 %v9425_v49 }
0x154c   :  { %8868 = vmatpush3.bf16.msra.mxu1 %v9426_v3  ;;  %8847 = vmatprep.subr.bf16.mxu0 %v9427_v31 }
0x154d   :  { %8869 = vmatprep.subr.bf16.mxu1 %v9428_v32 }
0x154f   :  { %8848 = vmatpush3.bf16.msra.mxu0 %v9429_v55 }
0x1550   :  { %8870 = vmatpush3.bf16.msra.mxu1 %v9430_v57 }
0x1552   :  { %7088 = vmatmul.mubr.bf16.vlgmr.msra.gmra.mxu0 %v5772_v24 }
0x1553   :  { %7129 = vmatmul.mubr.bf16.vlgmr.msra.gmra.mxu1 %v5774_v40 }
0x15b2   :  { %v8717_v54 = vpop.f32.mrf.mxu0  ;;  %v8739_v47 = vpop.f32.mrf.mxu1 }
0x15b4   :  { %v8718_v50 = vpop.f32.mrf.mxu0  ;;  %v8740_v0 = vpop.f32.mrf.mxu1 }
0x15b5   :  { %v8719_v27 = vadd.f32 %v8718_v50, %v8717_v54  ;;  %v8741_v10 = vadd.f32 %v8740_v0, %v8739_v47 }
0x15b6   :  { %v8720_v53 = vpop.f32.mrf.mxu0  ;;  %v8742_v15 = vpop.f32.mrf.mxu1 }
0x15b7   :  { %v6844_v33 = vadd.f32 %v8719_v27, %v8255_v63 }
0x15b8   :  { %v8721_v5 = vpop.f32.mrf.mxu0  ;;  %v8743_v6 = vpop.f32.mrf.mxu1 }
0x15b9   :  { %v8722_v39 = vadd.f32 %v8721_v5, %v8720_v53  ;;  %v6885_v42 = vadd.f32 %v8741_v10, %v6844_v33  ;;  %v8744_v21 = vadd.f32 %v8743_v6, %v8742_v15 }
0x15bb   :  { %v6847_v35 = vadd.f32 %v8722_v39, %v8255_v63  ;;  %v7191_v63 = vld [vmem:[%s11461_s20 + $0x10] sm:$0xff] }
0x15bd   :  { %v6888_v30 = vadd.f32 %v8744_v21, %v6847_v35  ;;  %v8386_v35 = vld [vmem:[%s11458_s17 + $0x1] ss:$0 sm:$0xff] }
0x15d2   :  { %v8761_v52 = vpop.f32.mrf.mxu0  ;;  %v8783_v38 = vpop.f32.mrf.mxu1 }
0x15d4   :  { %v8762_v60 = vpop.f32.mrf.mxu0  ;;  %v8784_v43 = vpop.f32.mrf.mxu1 }
0x15d5   :  { %v8763_v36 = vadd.f32 %v8762_v60, %v8761_v52  ;;  %v8785_v46 = vadd.f32 %v8784_v43, %v8783_v38 }
0x15d6   :  { %v8764_v51 = vpop.f32.mrf.mxu0  ;;  %v8786_v61 = vpop.f32.mrf.mxu1 }
0x15d7   :  { %v6926_v7 = vadd.f32 %v8763_v36, %v6885_v42 }
0x15d8   :  { %v8765_v62 = vpop.f32.mrf.mxu0  ;;  %v8787_v12 = vpop.f32.mrf.mxu1 }
0x15d9   :  { %v8766_v56 = vadd.f32 %v8765_v62, %v8764_v51  ;;  %v6967_v26 = vadd.f32 %v8785_v46, %v6926_v7  ;;  %v8788_v1 = vadd.f32 %v8787_v12, %v8786_v61  ;;  %v7189_v12 = vld [vmem:[%s11461_s20] sm:$0xff] }
0x15db   :  { %v6929_v25 = vadd.f32 %v8766_v56, %v6888_v30 }
0x15dd   :  { %v6970_v48 = vadd.f32 %v8788_v1, %v6929_v25 }
0x15f2   :  { %v8805_v28 = vpop.f32.mrf.mxu0 }
0x15f3   :  { %v8827_v8 = vpop.f32.mrf.mxu1 }
0x15f4   :  { %v8806_v9 = vpop.f32.mrf.mxu0 }
0x15f5   :  { %v8828_v19 = vpop.f32.mrf.mxu1  ;;  %v8807_v41 = vadd.f32 %v8806_v9, %v8805_v28  ;;  %v7190_v28 = vld [vmem:[%s11461_s20 + $0x8] sm:$0xff] }
0x15f6   :  { %v8808_v20 = vpop.f32.mrf.mxu0  ;;  %v8829_v44 = vadd.f32 %v8828_v19, %v8827_v8 }
0x15f7   :  { %v8830_v22 = vpop.f32.mrf.mxu1  ;;  %v7008_v37 = vadd.f32 %v8807_v41, %v6967_v26  ;;  %v7185_v26 = vld [vmem:[%s11460_s19] sm:$0xff] }
0x15f8   :  { %v8809_v59 = vpop.f32.mrf.mxu0  ;;  %9136 = vmatprep.mubr.msk.f32.mxu1 %vm454_vm2, %v7185_v26 }
0x15f9   :  { %v8810_v17 = vadd.f32 %v8809_v59, %v8808_v20  ;;  %v8831_v45 = vpop.f32.mrf.mxu1  ;;  %v7049_v3 = vadd.f32 %v8829_v44, %v7008_v37  ;;  %v8387_v20 = vld [vmem:[%s11459_s18 + $0x1] ss:$0 sm:$0xff]  ;;  %v7186_v37 = vld [vmem:[%s11460_s19 + $0x8] sm:$0xff]  ;;  %v8390_v44 = vld [vmem:[%s11514_s12] ss:$0 sm:$0xff] }
0x15fa   :  { %v8832_v58 = vadd.f32 %v8831_v45, %v8830_v22  ;;  %v7366_v45 = vld [vmem:[%s11463_s22 + $0x10] sm:$0xff] }
0x15fb   :  { %v7011_v31 = vadd.f32 %v8810_v17, %v6970_v48  ;;  %v7367_v17 = vld [vmem:[%s11463_s22 + $0x18] sm:$0xff]  ;;  %v7364_v48 = vld [vmem:[%s11463_s22] sm:$0xff] }
0x15fd   :  { %v7052_v18 = vadd.f32 %v8832_v58, %v7011_v31 }
0x1612   :  { %v8849_v16 = vpop.f32.mrf.mxu0 }
0x1613   :  { %v8871_v49 = vpop.f32.mrf.mxu1 }
0x1614   :  { %v8850_v2 = vpop.f32.mrf.mxu0 }
0x1615   :  { %v8851_v4 = vadd.f32 %v8850_v2, %v8849_v16  ;;  %v8872_v32 = vpop.f32.mrf.mxu1  ;;  %v7365_v16 = vld [vmem:[%s11463_s22 + $0x8] sm:$0xff] }
0x1616   :  { %v8852_v23 = vpop.f32.mrf.mxu0  ;;  %v8873_v13 = vadd.f32 %v8872_v32, %v8871_v49 }
0x1617   :  { %v7090_v55 = vadd.f32 %v8851_v4, %v7049_v3  ;;  %v8874_v57 = vpop.f32.mrf.mxu1 }
0x1618   :  { %v8853_v14 = vpop.f32.mrf.mxu0 }
0x1619   :  { %v7131_v11 = vadd.f32 %v8873_v13, %v7090_v55  ;;  %v8854_v24 = vadd.f32 %v8853_v14, %v8852_v23  ;;  %v8875_v40 = vpop.f32.mrf.mxu1  ;;  %v7536_v55 = vld [vmem:[%s11465_s24 + $0x18] sm:$0xff]  ;;  %v7535_v13 = vld [vmem:[%s11465_s24 + $0x10] sm:$0xff]  ;;  %v7533_v14 = vld [vmem:[%s11465_s24] sm:$0xff] }
0x161a   :  { %v8876_v47 = vadd.f32 %v8875_v40, %v8874_v57  ;;  %v7534_v57 = vld [vmem:[%s11465_s24 + $0x8] sm:$0xff] }
0x161b   :  { %v7093_v54 = vadd.f32 %v8854_v24, %v7052_v18  ;;  %v7137_v50 = vadd.f32 %v7131_v11, %v10824_v34  ;;  %v8395_v18 = vld [vmem:[%s11515_s8] ss:$0 sm:$0xff] }
0x161d   :  { %v7134_v0 = vadd.f32 %v8876_v47, %v7093_v54  ;;  %v7143_v53 = vsel %vm104_vm0, %v7137_v50, 0.0 }
0x161e   :  { %7144 = vadd.xlane.f32.xlu1 %v7143_v53 }
0x161f   :  { %v7138_v15 = vadd.f32 %v7134_v0, %v10822_v29  ;;  %v7192_v29 = vld [vmem:[%s11461_s20 + $0x18] sm:$0xff]  ;;  %v8398_v0 = vld [vmem:[%s11516_s5] ss:$0 sm:$0xff]  ;;  %s9513_s20 = scalar_lea.vmem %s7633_s13, 256 }
0x1620   :  { %9121 = vmatprep.subr.mxu0 %v7192_v29  ;;  %p9514_p0 = scmp.ne.s32.totalorder %s7633_s13, %s9513_s20  ;;  %p9519_p2 = scmp.lt.s32.totalorder %s9513_s20, %s9513_s20 }
0x1621   :  { %v7146_v5 = vsel %vm104_vm0, %v7138_v15, 0.0  ;;  %9122 = vmatpush3.msra.mxu0 %v7192_v29 }
0x1622   :  { %7147 = vadd.xlane.f32.xlu0 %v7146_v5  ;;  %9123 = vmatprep.subr.mxu0 %v7191_v63  ;;  %p9520_p3 = por %p9519_p2, %p9518_p1 }
0x1623   :  { %9124 = vmatpush3.msra.mxu0 %v7191_v63 }
0x1624   :  { %9125 = vmatprep.subr.mxu0 %v7190_v28  ;;  %p9521_p4 = pnand %p9520_p3, %p9514_p0 }
0x1625   :  { %9126 = vmatpush3.msra.mxu0 %v7190_v28 }
0x1626   :  { %9127 = vmatprep.subr.mxu0 %v7189_v12 }
0x1627   :  { %9128 = vmatpush3.msra.mxu0 %v7189_v12 }
0x1628   :  { %9139 = vmatprep.subr.mxu0 %v7367_v17 }
0x16a7   :  { %v7145_v52 = vpop.xlane.xlu1 %7144 }
0x16a8   :  { %v7149_v6 = vmul.f32 0.03125, %v7145_v52 }
0x16aa   :  { %v7151_v38 = vsub.f32 %v7137_v50, %v7149_v6 }
0x16ab   :  { %v7148_v60 = vpop.xlane.xlu0 %7147 }
0x16ac   :  { %v7150_v43 = vmul.f32 0.03125, %v7148_v60  ;;  %v7153_v51 = vmul.f32 %v7151_v38, %v7151_v38 }
0x16ae   :  { %v7152_v61 = vsub.f32 %v7138_v15, %v7150_v43  ;;  %v7155_v62 = vsel %vm104_vm0, %v7153_v51, 0.0 }
0x16af   :  { %7156 = vadd.xlane.f32.xlu1 %v7155_v62 }
0x16b0   :  { %v7154_v34 = vmul.f32 %v7152_v61, %v7152_v61 }
0x16b2   :  { %v7158_v27 = vsel %vm104_vm0, %v7154_v34, 0.0 }
0x16b3   :  { %7159 = vadd.xlane.f32.xlu0 %v7158_v27 }
0x1738   :  { %v7157_v33 = vpop.xlane.xlu1 %7156 }
0x1739   :  { %v7161_v39 = vmul.f32 0.03125, %v7157_v33 }
0x173b   :  { %v7163_v8 = vadd.f32 1e-05, %v7161_v39 }
0x173c   :  { %v7160_v9 = vpop.xlane.xlu0 %7159 }
0x173d   :  { %9507 = vrsqrt.f32 %v7163_v8  ;;  %v7162_v10 = vmul.f32 0.03125, %v7160_v9 }
0x173f   :  { %v7164_v36 = vadd.f32 1e-05, %v7162_v10 }
0x1741   :  { %9509 = vrsqrt.f32 %v7164_v36 }
0x174a   :  { %v9508_v42 = vpop.eup %9507 }
0x174b   :  { %v7167_v19 = vmul.f32 %v9508_v42, %v7151_v38 }
0x174d   :  { %v7175_v21 = vmul.f32 %v8386_v35, %v7167_v19 }
0x174e   :  { %v9510_v7 = vpop.eup %9509 }
0x174f   :  { %v7168_v56 = vmul.f32 %v9510_v7, %v7152_v61  ;;  %v7183_v30 = vadd.f32 %v8387_v20, %v7175_v21 }
0x1751   :  { %v7176_v46 = vmul.f32 %v8386_v35, %v7168_v56  ;;  %v7187_v41 = vmax.f32 %v7183_v30, 0.0 }
0x1753   :  { %v7184_v22 = vadd.f32 %v8387_v20, %v7176_v46  ;;  %9129 = vmatprep.mubr.msk.f32.mxu0 %vm104_vm0, %v7187_v41 }
0x1755   :  { %v7188_v59 = vmax.f32 %v7184_v22, 0.0 }
0x1757   :  { %9130 = vmatmul.mubr.msk.f32.vlgmr.msra.gmra.mxu0 %vm104_vm0, %v7188_v59 }
0x1758   :  { %9140 = vmatpush3.msra.mxu0 %v7367_v17 }
0x1759   :  { %9141 = vmatprep.subr.mxu0 %v7366_v45 }
0x175a   :  { %9142 = vmatpush3.msra.mxu0 %v7366_v45 }
0x175b   :  { %9143 = vmatprep.subr.mxu0 %v7365_v16 }
0x175c   :  { %9144 = vmatpush3.msra.mxu0 %v7365_v16 }
0x175d   :  { %9145 = vmatprep.subr.mxu0 %v7364_v48 }
0x175e   :  { %9146 = vmatpush3.msra.mxu0 %v7364_v48 }
0x1817   :  { %v9131_v25 = vpop.f32.mrf.mxu0 }
0x1818   :  { %9132 = vmatprep.subr.mxu1 %v9131_v25 }
0x1819   :  { %v7265_v1 = vpop.f32.mrf.mxu0  ;;  %9133 = vmatpush3.msra.mxu1 %v9131_v25 }
0x181a   :  { %9134 = vmatprep.subr.mxu1 %v7265_v1 }
0x181b   :  { %9135 = vmatpush3.msra.mxu1 %v7265_v1 }
0x181c   :  { %9137 = vmatmul.mubr.msk.f32.vlgmr.msra.gmra.mxu1 %vm454_vm2, %v7186_v37 }
0x181d   :  { %9154 = vmatprep.mubr.msk.f32.mxu1 %vm454_vm2, %v7185_v26 }
0x18dc   :  { %v9138_v49 = vpop.f32.mrf.mxu1 }
0x18dd   :  { %v7359_v2 = vadd.f32 %v9138_v49, %v8390_v44 }
0x18de   :  { %v7353_v3 = vpop.f32.mrf.mxu1 }
0x18df   :  { %v7354_v31 = vadd.f32 %v8390_v44, %v7353_v3  ;;  %v7363_v32 = vmax.f32 %v7359_v2, 0.0 }
0x18e1   :  { %v7362_v4 = vmax.f32 %v7354_v31, 0.0 }
0x18e3   :  { %9147 = vmatprep.mubr.msk.f32.mxu0 %vm104_vm0, %v7362_v4 }
0x18e4   :  { %9148 = vmatmul.mubr.msk.f32.vlgmr.msra.gmra.mxu0 %vm104_vm0, %v7363_v32 }
0x19a4   :  { %v9149_v23 = vpop.f32.mrf.mxu0 }
0x19a5   :  { %9150 = vmatprep.subr.mxu1 %v9149_v23 }
0x19a6   :  { %v7440_v58 = vpop.f32.mrf.mxu0  ;;  %9151 = vmatpush3.msra.mxu1 %v9149_v23 }
0x19a7   :  { %9152 = vmatprep.subr.mxu1 %v7440_v58 }
0x19a8   :  { %9153 = vmatpush3.msra.mxu1 %v7440_v58 }
0x19a9   :  { %9155 = vmatmul.mubr.msk.f32.vlgmr.msra.gmra.mxu1 %vm454_vm2, %v7186_v37  ;;  %9157 = vmatprep.subr.mxu1 %v7536_v55 }
0x19aa   :  { %9158 = vmatpush3.msra.mxu1 %v7536_v55 }
0x19ab   :  { %9159 = vmatprep.subr.mxu1 %v7535_v13 }
0x19ac   :  { %9160 = vmatpush3.msra.mxu1 %v7535_v13 }
0x19ad   :  { %9161 = vmatprep.subr.mxu1 %v7534_v57 }
0x19ae   :  { %9162 = vmatpush3.msra.mxu1 %v7534_v57 }
0x19af   :  { %9163 = vmatprep.subr.mxu1 %v7533_v14 }
0x19b0   :  { %9164 = vmatpush3.msra.mxu1 %v7533_v14 }
0x1a69   :  { %v9156_v11 = vpop.f32.mrf.mxu1 }
0x1a6a   :  { %v7528_v24 = vadd.f32 %v9156_v11, %v8395_v18 }
0x1a6b   :  { %v7522_v40 = vpop.f32.mrf.mxu1 }
0x1a6c   :  { %v7523_v54 = vadd.f32 %v8395_v18, %v7522_v40  ;;  %v7532_v50 = vmax.f32 %v7528_v24, 0.0 }
0x1a6e   :  { %v7531_v47 = vmax.f32 %v7523_v54, 0.0 }
0x1a70   :  { %9165 = vmatprep.mubr.msk.f32.mxu1 %vm104_vm0, %v7531_v47 }
0x1a71   :  { %9166 = vmatmul.mubr.msk.f32.vlgmr.msra.gmra.mxu1 %vm104_vm0, %v7532_v50 }
0x1b31   :  { %v9167_v53 = vpop.f32.mrf.mxu1 }
0x1b32   :  { %v7622_v15 = vadd.f32 %v9167_v53, %v8398_v0 }
0x1b33   :  { %v7616_v5 = vpop.f32.mrf.mxu1 }
0x1b34   :  { %7626 = vst [vmem:[#allocation2 + $0x8] sm:$0xff] %v7622_v15  ;;  %v7617_v52 = vadd.f32 %v8398_v0, %v7616_v5 }
0x1b36   :  { %7625 = vst [vmem:[#allocation2] sm:$0xff] %v7617_v52 }
0x1b37   :  { %9524 = shalt.err (!%p9521_p4)
}
0x1b38   :  { %s9540_s4 = smov 128   ;;  %s9541_s17 = smov 8  }
0x1b39   :  { %s11517_s26 = sld [smem:[#allocation19_spill]] }
0x1b3f   :  { %7638 = dma.vmem_to_hbm [thread:$0]  %s7633_s13, 256, %s11517_s26, [#allocation3], %s9540_s4, %s9540_s4, %s9541_s17  }
0x1b40   :  { %9533 = dma.done.wait [#allocation3], 256  }
0x1b41   :  { %9534 = vsyncadd [#allocation3], 4294967040 }
0x1b42   :  { %7642 = vsyncpa [#allocation3], 1 }

</bundles_post_ra>
